<compile_context>
chip_gen: v6e
topology: v6e:2x2x1
jax: 0.10.0
libtpu: 0.0.40
codegen_flags: <defaults>
</compile_context>

<pallas_src>
import functools

import jax
import jax.numpy as jnp
from jax.experimental import pallas as pl
from jax.experimental.pallas import tpu as pltpu


# ----------------------------------------------------------------------------- #
# Pallas kernel: fused  Y = act( W @ X + shift )   (channel-major GEMM)
#   W: (R, K) bf16, X: (K, M) bf16, shift: (R, 1) f32 -> Y: (R, M)
# ----------------------------------------------------------------------------- #
def _fused_mm_kernel(w_ref, x_ref, shift_ref, o_ref, *, activation):
    acc = jnp.dot(w_ref[...], x_ref[...], preferred_element_type=jnp.float32)
    y = acc + shift_ref[...]
    if activation == "relu":
        y = jnp.maximum(y, 0.0)
    elif activation == "sigmoid":
        y = jax.nn.sigmoid(y)
    o_ref[...] = y.astype(o_ref.dtype)


def fused_matmul(w, x, shift, activation="none", out_dtype=jnp.bfloat16):
    """w: (R, K), x: (K, M), shift: (R,) -> (R, M).  Pixels (M) live on the lane axis."""
    R, K = w.shape
    K2, M = x.shape
    assert K == K2
    wb = w.astype(jnp.bfloat16)
    xb = x.astype(jnp.bfloat16)
    sh = shift.reshape(R, 1).astype(jnp.float32)
    kern = functools.partial(_fused_mm_kernel, activation=activation)

    if M % 256 == 0:
        # Two lane tiles -> two parallel grid steps (lets a dual-TC v7x split the work).
        TM = M // 2
        return pl.pallas_call(
            kern,
            out_shape=jax.ShapeDtypeStruct((R, M), out_dtype),
            grid=(2,),
            in_specs=[
                pl.BlockSpec((R, K), lambda i: (0, 0)),
                pl.BlockSpec((K, TM), lambda i: (0, i)),
                pl.BlockSpec((R, 1), lambda i: (0, 0)),
            ],
            out_specs=pl.BlockSpec((R, TM), lambda i: (0, i)),
            compiler_params=pltpu.CompilerParams(dimension_semantics=("parallel",)),
        )(wb, xb, sh)

    # Tiny deep layer: one whole-array VMEM block, no grid, no padding, no slicing.
    return pl.pallas_call(
        kern,
        out_shape=jax.ShapeDtypeStruct((R, M), out_dtype),
    )(wb, xb, sh)


# ----------------------------------------------------------------------------- #
# Channel-major conv helpers (layout glue in plain JAX, compute in the Pallas GEMM)
# ----------------------------------------------------------------------------- #
def im2col_cm(x, ksize, stride, padding):
    """x: (C, N, H, W) -> (k*k*C, N, Ho, Wo); row order (kh, kw, c) with c fastest."""
    C, N, H, W = x.shape
    xp = jnp.pad(x, ((0, 0), (0, 0), (padding, padding), (padding, padding)))
    Ho = (H + 2 * padding - ksize) // stride + 1
    Wo = (W + 2 * padding - ksize) // stride + 1
    rows = []
    for di in range(ksize):
        for dj in range(ksize):
            rows.append(xp[:, :, di:di + stride * Ho:stride, dj:dj + stride * Wo:stride])
    return jnp.concatenate(rows, axis=0), Ho, Wo


def conv2d_cm(x, wm, shift, ksize=3, stride=1, padding=1, activation="none",
              out_dtype=jnp.bfloat16):
    """x: (Cin, N, H, W); wm: (Cout, k*k*Cin) with BN scale pre-folded; shift: (Cout,)."""
    Cin, N, H, W = x.shape
    Cout = wm.shape[0]
    patches, Ho, Wo = im2col_cm(x, ksize, stride, padding)
    xm = patches.reshape(ksize * ksize * Cin, N * Ho * Wo)
    y = fused_matmul(wm, xm, shift, activation, out_dtype)
    return y.reshape(Cout, N, Ho, Wo)


def conv1x1_cm(x, wm, shift, activation="none", out_dtype=jnp.bfloat16):
    """x: (Cin, N, H, W); wm: (Cout, Cin)."""
    Cin, N, H, W = x.shape
    Cout = wm.shape[0]
    y = fused_matmul(wm, x.reshape(Cin, N * H * W), shift, activation, out_dtype)
    return y.reshape(Cout, N, H, W)


def conv_transpose2x2_cm(x, wm, shift4, activation="none", out_dtype=jnp.bfloat16):
    """Exact ConvTranspose2d(kernel=2, stride=2).
    x: (Cin, N, H, W); wm: (4*Cout, Cin), rows ordered (kh, kw, cout) with cout fastest;
    shift4: (4*Cout,) per-output-channel shift tiled over the 4 kernel taps."""
    Cin, N, H, W = x.shape
    Cout = wm.shape[0] // 4
    y = fused_matmul(wm, x.reshape(Cin, N * H * W), shift4, activation, out_dtype)
    y = y.reshape(2, 2, Cout, N, H, W).transpose(2, 3, 4, 0, 5, 1)  # (Cout,N,H,kh,W,kw)
    return y.reshape(Cout, N, 2 * H, 2 * W)


def upsample_nearest_cm(x, factor):
    return jnp.repeat(jnp.repeat(x, factor, axis=2), factor, axis=3)


# ----------------------------------------------------------------------------- #
# Deterministic parameter construction (same architecture / init as before)
# ----------------------------------------------------------------------------- #
def _keygen(seed=0):
    k = jax.random.PRNGKey(seed)
    while True:
        k, sub = jax.random.split(k)
        yield sub


def init_conv(ks, kh, kw, cin, cout):
    fan_in = kh * kw * cin
    return (jax.random.normal(next(ks), (kh, kw, cin, cout), jnp.float32)
            / jnp.sqrt(jnp.float32(fan_in)))


def init_bn(ks, c):
    gamma = 1.0 + 0.1 * jax.random.normal(next(ks), (c,), jnp.float32)
    beta = 0.1 * jax.random.normal(next(ks), (c,), jnp.float32)
    mean = 0.1 * jax.random.normal(next(ks), (c,), jnp.float32)
    var = 1.0 + 0.1 * jnp.abs(jax.random.normal(next(ks), (c,), jnp.float32))
    return gamma, beta, mean, var


def fold_bn(bn, bias=None, eps=1e-5):
    gamma, beta, mean, var = bn
    scale = gamma / jnp.sqrt(var + eps)
    b = bias if bias is not None else jnp.zeros_like(mean)
    shift = beta + scale * (b - mean)
    return scale, shift


def build_params():
    ks = _keygen(0)
    p = {}
    # tiny backbone: 5 strided conv+BN+ReLU blocks -> feature pyramid c2..c5
    chans = [(3, 8), (8, 16), (16, 32), (32, 64), (64, 64)]
    for i, (ci, co) in enumerate(chans, start=1):
        p[f"bb_conv{i}"] = init_conv(ks, 3, 3, ci, co)
        p[f"bb_bn{i}"] = init_bn(ks, co)
    inner = 32
    # lateral 1x1 convs (bias=False, no BN)
    for name, ci in (("in5", 64), ("in4", 64), ("in3", 32), ("in2", 16)):
        p[name] = init_conv(ks, 1, 1, ci, inner)[0, 0]            # (Cin, Cout)
    # 3x3 output convs (inner -> inner//4, bias=False)
    for name in ("out5", "out4", "out3", "out2"):
        p[name] = init_conv(ks, 3, 3, inner, inner // 4)
    # binarize head
    p["bin_conv"] = init_conv(ks, 3, 3, inner, inner // 4)
    p["bin_bn1"] = init_bn(ks, inner // 4)
    p["bin_tconv1"] = (jax.random.normal(next(ks), (inner // 4, 2, 2, inner // 4),
                                         jnp.float32) / jnp.sqrt(jnp.float32(inner // 4)))
    p["bin_tconv1_b"] = 0.1 * jax.random.normal(next(ks), (inner // 4,), jnp.float32)
    p["bin_bn2"] = init_bn(ks, inner // 4)
    p["bin_tconv2"] = (jax.random.normal(next(ks), (inner // 4, 2, 2, 1),
                                         jnp.float32) / jnp.sqrt(jnp.float32(inner // 4)))
    p["bin_tconv2_b"] = 0.1 * jax.random.normal(next(ks), (1,), jnp.float32)
    return p


def prepare_params(p):
    """Fold BN scale (and deconv biases) into the weights, transpose to (Cout, K)
    channel-major GEMM layout and cast to bf16 (done once, offline)."""
    inner = 32
    fp = {}
    # backbone conv+BN blocks
    for i in range(1, 6):
        scale, shift = fold_bn(p[f"bb_bn{i}"])
        w = p[f"bb_conv{i}"] * scale[None, None, None, :]          # (3,3,ci,co)
        kh, kw, ci, co = w.shape
        fp[f"bb{i}_w"] = w.reshape(kh * kw * ci, co).T.astype(jnp.bfloat16)
        fp[f"bb{i}_s"] = shift.astype(jnp.float32)
    # lateral 1x1 convs (no BN, no bias)
    for name in ("in5", "in4", "in3", "in2"):
        fp[f"{name}_w"] = p[name].T.astype(jnp.bfloat16)           # (32, Cin)
        fp[f"{name}_s"] = jnp.zeros((inner,), jnp.float32)
    # FPN 3x3 output convs (no BN, no bias)
    for name in ("out5", "out4", "out3", "out2"):
        fp[f"{name}_w"] = p[name].reshape(9 * inner, inner // 4).T.astype(jnp.bfloat16)
        fp[f"{name}_s"] = jnp.zeros((inner // 4,), jnp.float32)
    # binarize head: conv+BN
    sc, sh = fold_bn(p["bin_bn1"])
    w = p["bin_conv"] * sc[None, None, None, :]
    fp["bin_w"] = w.reshape(9 * inner, inner // 4).T.astype(jnp.bfloat16)
    fp["bin_s"] = sh.astype(jnp.float32)
    # deconv1 (+ its bias) + BN
    sc, sh = fold_bn(p["bin_bn2"], bias=p["bin_tconv1_b"])
    wt = jnp.transpose(p["bin_tconv1"], (1, 2, 3, 0)) * sc[None, None, :, None]  # (2,2,Co,Ci)
    fp["t1_w"] = wt.reshape(4 * (inner // 4), inner // 4).astype(jnp.bfloat16)
    fp["t1_s"] = jnp.tile(sh, 4).astype(jnp.float32)
    # deconv2 (bias only)
    wt2 = jnp.transpose(p["bin_tconv2"], (1, 2, 3, 0))              # (2,2,1,Ci)
    fp["t2_w"] = wt2.reshape(4, inner // 4).astype(jnp.bfloat16)
    fp["t2_s"] = jnp.tile(p["bin_tconv2_b"], 4).astype(jnp.float32)
    return fp


# ----------------------------------------------------------------------------- #
# SegDetectorModel forward (inference: returns the binary probability map)
# ----------------------------------------------------------------------------- #
def seg_detector_forward(fp, x_nchw):
    x = x_nchw.astype(jnp.float32)              # data = data.float()
    h = jnp.transpose(x, (1, 0, 2, 3))          # NCHW -> CNHW (channel-major)

    # ---- backbone: conv/BN/ReLU, stride 2 each ----
    feats = []
    for i in range(1, 6):
        h = conv2d_cm(h, fp[f"bb{i}_w"], fp[f"bb{i}_s"], ksize=3, stride=2,
                      padding=1, activation="relu", out_dtype=jnp.bfloat16)
        feats.append(h)
    c2, c3, c4, c5 = feats[1], feats[2], feats[3], feats[4]

    # ---- FPN decoder (SegDetector) ----
    in5 = conv1x1_cm(c5, fp["in5_w"], fp["in5_s"], out_dtype=jnp.bfloat16)
    in4 = conv1x1_cm(c4, fp["in4_w"], fp["in4_s"], out_dtype=jnp.bfloat16)
    in3 = conv1x1_cm(c3, fp["in3_w"], fp["in3_s"], out_dtype=jnp.bfloat16)
    in2 = conv1x1_cm(c2, fp["in2_w"], fp["in2_s"], out_dtype=jnp.bfloat16)

    out4 = in4 + upsample_nearest_cm(in5, 2)
    out3 = in3 + upsample_nearest_cm(out4, 2)
    out2 = in2 + upsample_nearest_cm(out3, 2)

    p5 = upsample_nearest_cm(
        conv2d_cm(in5, fp["out5_w"], fp["out5_s"], out_dtype=jnp.bfloat16), 8)
    p4 = upsample_nearest_cm(
        conv2d_cm(out4, fp["out4_w"], fp["out4_s"], out_dtype=jnp.bfloat16), 4)
    p3 = upsample_nearest_cm(
        conv2d_cm(out3, fp["out3_w"], fp["out3_s"], out_dtype=jnp.bfloat16), 2)
    p2 = conv2d_cm(out2, fp["out2_w"], fp["out2_s"], out_dtype=jnp.bfloat16)

    fuse = jnp.concatenate([p5, p4, p3, p2], axis=0)    # (32, N, H/4, W/4)

    # ---- binarize head: conv+BN+ReLU, deconv+BN+ReLU, deconv+sigmoid ----
    b = conv2d_cm(fuse, fp["bin_w"], fp["bin_s"], activation="relu",
                  out_dtype=jnp.bfloat16)
    b = conv_transpose2x2_cm(b, fp["t1_w"], fp["t1_s"], activation="relu",
                             out_dtype=jnp.bfloat16)
    b = conv_transpose2x2_cm(b, fp["t2_w"], fp["t2_s"], activation="sigmoid",
                             out_dtype=jnp.float32)

    # TODO(synk): training branch (thresh/thresh_binary maps + SegDetectorLoss) not
    # implemented; eval-mode SegDetectorModel.forward returns only the binary map.
    return jnp.transpose(b, (1, 0, 2, 3))               # CNHW -> NCHW, (N, 1, H, W)


# ----------------------------------------------------------------------------- #
if __name__ == "__main__":
    params = build_params()
    folded = prepare_params(params)                       # offline BN folding / bf16 cast

    key = jax.random.PRNGKey(0)
    x = jax.random.normal(key, (2, 3, 64, 64), jnp.float32)   # batch['image'], NCHW

    forward = jax.jit(seg_detector_forward)
    pred = forward(folded, x)
    pred = jax.block_until_ready(pred)

    assert pred.shape == (2, 1, 64, 64), pred.shape
    assert bool(jnp.all(jnp.isfinite(pred)))
    assert bool(jnp.all((pred >= 0.0) & (pred <= 1.0)))
    print("KERNEL_OK")
</pallas_src>

<mosaic_0001>
module attributes {stable_mosaic.version = 11 : i64} {
  func.func @_fused_mm_kernel(%arg0: i32, %arg1: memref<8x27xbf16, #tpu.memory_space<vmem>>, %arg2: memref<27x1024xbf16, #tpu.memory_space<vmem>>, %arg3: memref<8x1xf32, #tpu.memory_space<vmem>>, %arg4: memref<8x1024xbf16, #tpu.memory_space<vmem>>) attributes {dimension_semantics = [#tpu.dimension_semantics<parallel>], iteration_bounds = array<i64: 2>, scalar_prefetch = 0 : i64, scratch_operands = 0 : i64, tpu.core_type = #tpu.core_type<tc>, window_params = [{pipeline_mode = #tpu.pipeline_mode<synchronous>, transform_indices = @transform_0, window_bounds = array<i64: 8, 27>}, {transform_indices = @transform_1, window_bounds = array<i64: 27, 1024>}, {pipeline_mode = #tpu.pipeline_mode<synchronous>, transform_indices = @transform_2, window_bounds = array<i64: 8, 1>}, {transform_indices = @transform_3, window_bounds = array<i64: 8, 1024>}]} {
    %c0 = arith.constant 0 : index
    %c0_0 = arith.constant 0 : index
    %0 = vector.load %arg1[%c0, %c0_0] : memref<8x27xbf16, #tpu.memory_space<vmem>>, vector<8x27xbf16>
    %c0_1 = arith.constant 0 : index
    %c0_2 = arith.constant 0 : index
    %1 = vector.load %arg2[%c0_1, %c0_2] : memref<27x1024xbf16, #tpu.memory_space<vmem>>, vector<27x1024xbf16>
    %cst = arith.constant dense<0.000000e+00> : vector<8x1024xf32>
    %2 = tpu.matmul %0, %1, %cst {dimension_numbers = #tpu.dot_dimension_numbers<[1], [0], [0], [1], [0, 0, 1, 1], [], []>} : vector<8x27xbf16>, vector<27x1024xbf16>, vector<8x1024xf32> -> vector<8x1024xf32>
    %c0_3 = arith.constant 0 : index
    %c0_4 = arith.constant 0 : index
    %3 = vector.load %arg3[%c0_3, %c0_4] : memref<8x1xf32, #tpu.memory_space<vmem>>, vector<8x1xf32>
    %4 = vector.broadcast %3 : vector<8x1xf32> to vector<8x1024xf32>
    %5 = arith.addf %2, %4 : vector<8x1024xf32>
    %cst_5 = arith.constant 0.000000e+00 : f32
    %6 = vector.broadcast %cst_5 : f32 to vector<8x1024xf32>
    %7 = arith.maximumf %5, %6 : vector<8x1024xf32>
    %8 = arith.truncf %7 : vector<8x1024xf32> to vector<8x1024xbf16>
    %c0_6 = arith.constant 0 : index
    %c0_7 = arith.constant 0 : index
    %9 = vector.load %arg4[%c0_6, %c0_7] : memref<8x1024xbf16, #tpu.memory_space<vmem>>, vector<8x1024xbf16>
    tpu.vector_store %arg4[%c0_6, %c0_7], %8 {strides = array<i32>} : memref<8x1024xbf16, #tpu.memory_space<vmem>>, vector<8x1024xbf16>,
    return
  }
  func.func @transform_0(%arg0: i32) -> (i32, i32) {
    %c0_i32 = arith.constant 0 : i32
    %c0_i32_0 = arith.constant 0 : i32
    %c0_i32_1 = arith.constant 0 : i32
    return %c0_i32, %c0_i32_0 : i32, i32
  }
  func.func @transform_1(%arg0: i32) -> (i32, i32) {
    %c0_i32 = arith.constant 0 : i32
    %c0_i32_0 = arith.constant 0 : i32
    return %c0_i32, %arg0 : i32, i32
  }
  func.func @transform_2(%arg0: i32) -> (i32, i32) {
    %c0_i32 = arith.constant 0 : i32
    %c0_i32_0 = arith.constant 0 : i32
    %c0_i32_1 = arith.constant 0 : i32
    return %c0_i32, %c0_i32_0 : i32, i32
  }
  func.func @transform_3(%arg0: i32) -> (i32, i32) {
    %c0_i32 = arith.constant 0 : i32
    %c0_i32_0 = arith.constant 0 : i32
    return %c0_i32, %arg0 : i32, i32
  }
}

module attributes {stable_mosaic.version = 11 : i64} {
  func.func @_fused_mm_kernel(%arg0: i32, %arg1: memref<16x72xbf16, #tpu.memory_space<vmem>>, %arg2: memref<72x256xbf16, #tpu.memory_space<vmem>>, %arg3: memref<16x1xf32, #tpu.memory_space<vmem>>, %arg4: memref<16x256xbf16, #tpu.memory_space<vmem>>) attributes {dimension_semantics = [#tpu.dimension_semantics<parallel>], iteration_bounds = array<i64: 2>, scalar_prefetch = 0 : i64, scratch_operands = 0 : i64, tpu.core_type = #tpu.core_type<tc>, window_params = [{pipeline_mode = #tpu.pipeline_mode<synchronous>, transform_indices = @transform_0, window_bounds = array<i64: 16, 72>}, {transform_indices = @transform_1, window_bounds = array<i64: 72, 256>}, {pipeline_mode = #tpu.pipeline_mode<synchronous>, transform_indices = @transform_2, window_bounds = array<i64: 16, 1>}, {transform_indices = @transform_3, window_bounds = array<i64: 16, 256>}]} {
    %c0 = arith.constant 0 : index
    %c0_0 = arith.constant 0 : index
    %0 = vector.load %arg1[%c0, %c0_0] : memref<16x72xbf16, #tpu.memory_space<vmem>>, vector<16x72xbf16>
    %c0_1 = arith.constant 0 : index
    %c0_2 = arith.constant 0 : index
    %1 = vector.load %arg2[%c0_1, %c0_2] : memref<72x256xbf16, #tpu.memory_space<vmem>>, vector<72x256xbf16>
    %cst = arith.constant dense<0.000000e+00> : vector<16x256xf32>
    %2 = tpu.matmul %0, %1, %cst {dimension_numbers = #tpu.dot_dimension_numbers<[1], [0], [0], [1], [0, 0, 1, 1], [], []>} : vector<16x72xbf16>, vector<72x256xbf16>, vector<16x256xf32> -> vector<16x256xf32>
    %c0_3 = arith.constant 0 : index
    %c0_4 = arith.constant 0 : index
    %3 = vector.load %arg3[%c0_3, %c0_4] : memref<16x1xf32, #tpu.memory_space<vmem>>, vector<16x1xf32>
    %4 = vector.broadcast %3 : vector<16x1xf32> to vector<16x256xf32>
    %5 = arith.addf %2, %4 : vector<16x256xf32>
    %cst_5 = arith.constant 0.000000e+00 : f32
    %6 = vector.broadcast %cst_5 : f32 to vector<16x256xf32>
    %7 = arith.maximumf %5, %6 : vector<16x256xf32>
    %8 = arith.truncf %7 : vector<16x256xf32> to vector<16x256xbf16>
    %c0_6 = arith.constant 0 : index
    %c0_7 = arith.constant 0 : index
    %9 = vector.load %arg4[%c0_6, %c0_7] : memref<16x256xbf16, #tpu.memory_space<vmem>>, vector<16x256xbf16>
    tpu.vector_store %arg4[%c0_6, %c0_7], %8 {strides = array<i32>} : memref<16x256xbf16, #tpu.memory_space<vmem>>, vector<16x256xbf16>,
    return
  }
  func.func @transform_0(%arg0: i32) -> (i32, i32) {
    %c0_i32 = arith.constant 0 : i32
    %c0_i32_0 = arith.constant 0 : i32
    %c0_i32_1 = arith.constant 0 : i32
    return %c0_i32, %c0_i32_0 : i32, i32
  }
  func.func @transform_1(%arg0: i32) -> (i32, i32) {
    %c0_i32 = arith.constant 0 : i32
    %c0_i32_0 = arith.constant 0 : i32
    return %c0_i32, %arg0 : i32, i32
  }
  func.func @transform_2(%arg0: i32) -> (i32, i32) {
    %c0_i32 = arith.constant 0 : i32
    %c0_i32_0 = arith.constant 0 : i32
    %c0_i32_1 = arith.constant 0 : i32
    return %c0_i32, %c0_i32_0 : i32, i32
  }
  func.func @transform_3(%arg0: i32) -> (i32, i32) {
    %c0_i32 = arith.constant 0 : i32
    %c0_i32_0 = arith.constant 0 : i32
    return %c0_i32, %arg0 : i32, i32
  }
}

module attributes {stable_mosaic.version = 11 : i64} {
  func.func @_fused_mm_kernel(%arg0: i32, %arg1: memref<32x16xbf16, #tpu.memory_space<vmem>>, %arg2: memref<16x256xbf16, #tpu.memory_space<vmem>>, %arg3: memref<32x1xf32, #tpu.memory_space<vmem>>, %arg4: memref<32x256xbf16, #tpu.memory_space<vmem>>) attributes {dimension_semantics = [#tpu.dimension_semantics<parallel>], iteration_bounds = array<i64: 2>, scalar_prefetch = 0 : i64, scratch_operands = 0 : i64, tpu.core_type = #tpu.core_type<tc>, window_params = [{pipeline_mode = #tpu.pipeline_mode<synchronous>, transform_indices = @transform_0, window_bounds = array<i64: 32, 16>}, {transform_indices = @transform_1, window_bounds = array<i64: 16, 256>}, {pipeline_mode = #tpu.pipeline_mode<synchronous>, transform_indices = @transform_2, window_bounds = array<i64: 32, 1>}, {transform_indices = @transform_3, window_bounds = array<i64: 32, 256>}]} {
    %c0 = arith.constant 0 : index
    %c0_0 = arith.constant 0 : index
    %0 = vector.load %arg1[%c0, %c0_0] : memref<32x16xbf16, #tpu.memory_space<vmem>>, vector<32x16xbf16>
    %c0_1 = arith.constant 0 : index
    %c0_2 = arith.constant 0 : index
    %1 = vector.load %arg2[%c0_1, %c0_2] : memref<16x256xbf16, #tpu.memory_space<vmem>>, vector<16x256xbf16>
    %cst = arith.constant dense<0.000000e+00> : vector<32x256xf32>
    %2 = tpu.matmul %0, %1, %cst {dimension_numbers = #tpu.dot_dimension_numbers<[1], [0], [0], [1], [0, 0, 1, 1], [], []>} : vector<32x16xbf16>, vector<16x256xbf16>, vector<32x256xf32> -> vector<32x256xf32>
    %c0_3 = arith.constant 0 : index
    %c0_4 = arith.constant 0 : index
    %3 = vector.load %arg3[%c0_3, %c0_4] : memref<32x1xf32, #tpu.memory_space<vmem>>, vector<32x1xf32>
    %4 = vector.broadcast %3 : vector<32x1xf32> to vector<32x256xf32>
    %5 = arith.addf %2, %4 : vector<32x256xf32>
    %6 = arith.truncf %5 : vector<32x256xf32> to vector<32x256xbf16>
    %c0_5 = arith.constant 0 : index
    %c0_6 = arith.constant 0 : index
    %7 = vector.load %arg4[%c0_5, %c0_6] : memref<32x256xbf16, #tpu.memory_space<vmem>>, vector<32x256xbf16>
    tpu.vector_store %arg4[%c0_5, %c0_6], %6 {strides = array<i32>} : memref<32x256xbf16, #tpu.memory_space<vmem>>, vector<32x256xbf16>,
    return
  }
  func.func @transform_0(%arg0: i32) -> (i32, i32) {
    %c0_i32 = arith.constant 0 : i32
    %c0_i32_0 = arith.constant 0 : i32
    %c0_i32_1 = arith.constant 0 : i32
    return %c0_i32, %c0_i32_0 : i32, i32
  }
  func.func @transform_1(%arg0: i32) -> (i32, i32) {
    %c0_i32 = arith.constant 0 : i32
    %c0_i32_0 = arith.constant 0 : i32
    return %c0_i32, %arg0 : i32, i32
  }
  func.func @transform_2(%arg0: i32) -> (i32, i32) {
    %c0_i32 = arith.constant 0 : i32
    %c0_i32_0 = arith.constant 0 : i32
    %c0_i32_1 = arith.constant 0 : i32
    return %c0_i32, %c0_i32_0 : i32, i32
  }
  func.func @transform_3(%arg0: i32) -> (i32, i32) {
    %c0_i32 = arith.constant 0 : i32
    %c0_i32_0 = arith.constant 0 : i32
    return %c0_i32, %arg0 : i32, i32
  }
}

module attributes {stable_mosaic.version = 11 : i64} {
  func.func @_fused_mm_kernel(%arg0: memref<32x144xbf16, #tpu.memory_space<vmem>>, %arg1: memref<144x128xbf16, #tpu.memory_space<vmem>>, %arg2: memref<32x1xf32, #tpu.memory_space<vmem>>, %arg3: memref<32x128xbf16, #tpu.memory_space<vmem>>) attributes {dimension_semantics = [], scalar_prefetch = 0 : i64, scratch_operands = 0 : i64, tpu.core_type = #tpu.core_type<tc>} {
    %c0 = arith.constant 0 : index
    %c0_0 = arith.constant 0 : index
    %0 = vector.load %arg0[%c0, %c0_0] : memref<32x144xbf16, #tpu.memory_space<vmem>>, vector<32x144xbf16>
    %c0_1 = arith.constant 0 : index
    %c0_2 = arith.constant 0 : index
    %1 = vector.load %arg1[%c0_1, %c0_2] : memref<144x128xbf16, #tpu.memory_space<vmem>>, vector<144x128xbf16>
    %cst = arith.constant dense<0.000000e+00> : vector<32x128xf32>
    %2 = tpu.matmul %0, %1, %cst {dimension_numbers = #tpu.dot_dimension_numbers<[1], [0], [0], [1], [0, 0, 1, 1], [], []>} : vector<32x144xbf16>, vector<144x128xbf16>, vector<32x128xf32> -> vector<32x128xf32>
    %c0_3 = arith.constant 0 : index
    %c0_4 = arith.constant 0 : index
    %3 = vector.load %arg2[%c0_3, %c0_4] : memref<32x1xf32, #tpu.memory_space<vmem>>, vector<32x1xf32>
    %4 = vector.broadcast %3 : vector<32x1xf32> to vector<32x128xf32>
    %5 = arith.addf %2, %4 : vector<32x128xf32>
    %cst_5 = arith.constant 0.000000e+00 : f32
    %6 = vector.broadcast %cst_5 : f32 to vector<32x128xf32>
    %7 = arith.maximumf %5, %6 : vector<32x128xf32>
    %8 = arith.truncf %7 : vector<32x128xf32> to vector<32x128xbf16>
    %c0_6 = arith.constant 0 : index
    %c0_7 = arith.constant 0 : index
    %9 = vector.load %arg3[%c0_6, %c0_7] : memref<32x128xbf16, #tpu.memory_space<vmem>>, vector<32x128xbf16>
    tpu.vector_store %arg3[%c0_6, %c0_7], %8 {strides = array<i32>} : memref<32x128xbf16, #tpu.memory_space<vmem>>, vector<32x128xbf16>,
    return
  }
}

module attributes {stable_mosaic.version = 11 : i64} {
  func.func @_fused_mm_kernel(%arg0: memref<32x32xbf16, #tpu.memory_space<vmem>>, %arg1: memref<32x128xbf16, #tpu.memory_space<vmem>>, %arg2: memref<32x1xf32, #tpu.memory_space<vmem>>, %arg3: memref<32x128xbf16, #tpu.memory_space<vmem>>) attributes {dimension_semantics = [], scalar_prefetch = 0 : i64, scratch_operands = 0 : i64, tpu.core_type = #tpu.core_type<tc>} {
    %c0 = arith.constant 0 : index
    %c0_0 = arith.constant 0 : index
    %0 = vector.load %arg0[%c0, %c0_0] : memref<32x32xbf16, #tpu.memory_space<vmem>>, vector<32x32xbf16>
    %c0_1 = arith.constant 0 : index
    %c0_2 = arith.constant 0 : index
    %1 = vector.load %arg1[%c0_1, %c0_2] : memref<32x128xbf16, #tpu.memory_space<vmem>>, vector<32x128xbf16>
    %cst = arith.constant dense<0.000000e+00> : vector<32x128xf32>
    %2 = tpu.matmul %0, %1, %cst {dimension_numbers = #tpu.dot_dimension_numbers<[1], [0], [0], [1], [0, 0, 1, 1], [], []>} : vector<32x32xbf16>, vector<32x128xbf16>, vector<32x128xf32> -> vector<32x128xf32>
    %c0_3 = arith.constant 0 : index
    %c0_4 = arith.constant 0 : index
    %3 = vector.load %arg2[%c0_3, %c0_4] : memref<32x1xf32, #tpu.memory_space<vmem>>, vector<32x1xf32>
    %4 = vector.broadcast %3 : vector<32x1xf32> to vector<32x128xf32>
    %5 = arith.addf %2, %4 : vector<32x128xf32>
    %6 = arith.truncf %5 : vector<32x128xf32> to vector<32x128xbf16>
    %c0_5 = arith.constant 0 : index
    %c0_6 = arith.constant 0 : index
    %7 = vector.load %arg3[%c0_5, %c0_6] : memref<32x128xbf16, #tpu.memory_space<vmem>>, vector<32x128xbf16>
    tpu.vector_store %arg3[%c0_5, %c0_6], %6 {strides = array<i32>} : memref<32x128xbf16, #tpu.memory_space<vmem>>, vector<32x128xbf16>,
    return
  }
}

module attributes {stable_mosaic.version = 11 : i64} {
  func.func @_fused_mm_kernel(%arg0: memref<64x288xbf16, #tpu.memory_space<vmem>>, %arg1: memref<288x32xbf16, #tpu.memory_space<vmem>>, %arg2: memref<64x1xf32, #tpu.memory_space<vmem>>, %arg3: memref<64x32xbf16, #tpu.memory_space<vmem>>) attributes {dimension_semantics = [], scalar_prefetch = 0 : i64, scratch_operands = 0 : i64, tpu.core_type = #tpu.core_type<tc>} {
    %c0 = arith.constant 0 : index
    %c0_0 = arith.constant 0 : index
    %0 = vector.load %arg0[%c0, %c0_0] : memref<64x288xbf16, #tpu.memory_space<vmem>>, vector<64x288xbf16>
    %c0_1 = arith.constant 0 : index
    %c0_2 = arith.constant 0 : index
    %1 = vector.load %arg1[%c0_1, %c0_2] : memref<288x32xbf16, #tpu.memory_space<vmem>>, vector<288x32xbf16>
    %cst = arith.constant dense<0.000000e+00> : vector<64x32xf32>
    %2 = tpu.matmul %0, %1, %cst {dimension_numbers = #tpu.dot_dimension_numbers<[1], [0], [0], [1], [0, 0, 1, 1], [], []>} : vector<64x288xbf16>, vector<288x32xbf16>, vector<64x32xf32> -> vector<64x32xf32>
    %c0_3 = arith.constant 0 : index
    %c0_4 = arith.constant 0 : index
    %3 = vector.load %arg2[%c0_3, %c0_4] : memref<64x1xf32, #tpu.memory_space<vmem>>, vector<64x1xf32>
    %4 = vector.broadcast %3 : vector<64x1xf32> to vector<64x32xf32>
    %5 = arith.addf %2, %4 : vector<64x32xf32>
    %cst_5 = arith.constant 0.000000e+00 : f32
    %6 = vector.broadcast %cst_5 : f32 to vector<64x32xf32>
    %7 = arith.maximumf %5, %6 : vector<64x32xf32>
    %8 = arith.truncf %7 : vector<64x32xf32> to vector<64x32xbf16>
    %c0_6 = arith.constant 0 : index
    %c0_7 = arith.constant 0 : index
    %9 = vector.load %arg3[%c0_6, %c0_7] : memref<64x32xbf16, #tpu.memory_space<vmem>>, vector<64x32xbf16>
    tpu.vector_store %arg3[%c0_6, %c0_7], %8 {strides = array<i32>} : memref<64x32xbf16, #tpu.memory_space<vmem>>, vector<64x32xbf16>,
    return
  }
}

module attributes {stable_mosaic.version = 11 : i64} {
  func.func @_fused_mm_kernel(%arg0: memref<32x64xbf16, #tpu.memory_space<vmem>>, %arg1: memref<64x32xbf16, #tpu.memory_space<vmem>>, %arg2: memref<32x1xf32, #tpu.memory_space<vmem>>, %arg3: memref<32x32xbf16, #tpu.memory_space<vmem>>) attributes {dimension_semantics = [], scalar_prefetch = 0 : i64, scratch_operands = 0 : i64, tpu.core_type = #tpu.core_type<tc>} {
    %c0 = arith.constant 0 : index
    %c0_0 = arith.constant 0 : index
    %0 = vector.load %arg0[%c0, %c0_0] : memref<32x64xbf16, #tpu.memory_space<vmem>>, vector<32x64xbf16>
    %c0_1 = arith.constant 0 : index
    %c0_2 = arith.constant 0 : index
    %1 = vector.load %arg1[%c0_1, %c0_2] : memref<64x32xbf16, #tpu.memory_space<vmem>>, vector<64x32xbf16>
    %cst = arith.constant dense<0.000000e+00> : vector<32x32xf32>
    %2 = tpu.matmul %0, %1, %cst {dimension_numbers = #tpu.dot_dimension_numbers<[1], [0], [0], [1], [0, 0, 1, 1], [], []>} : vector<32x64xbf16>, vector<64x32xbf16>, vector<32x32xf32> -> vector<32x32xf32>
    %c0_3 = arith.constant 0 : index
    %c0_4 = arith.constant 0 : index
    %3 = vector.load %arg2[%c0_3, %c0_4] : memref<32x1xf32, #tpu.memory_space<vmem>>, vector<32x1xf32>
    %4 = vector.broadcast %3 : vector<32x1xf32> to vector<32x32xf32>
    %5 = arith.addf %2, %4 : vector<32x32xf32>
    %6 = arith.truncf %5 : vector<32x32xf32> to vector<32x32xbf16>
    %c0_5 = arith.constant 0 : index
    %c0_6 = arith.constant 0 : index
    %7 = vector.load %arg3[%c0_5, %c0_6] : memref<32x32xbf16, #tpu.memory_space<vmem>>, vector<32x32xbf16>
    tpu.vector_store %arg3[%c0_5, %c0_6], %6 {strides = array<i32>} : memref<32x32xbf16, #tpu.memory_space<vmem>>, vector<32x32xbf16>,
    return
  }
}

module attributes {stable_mosaic.version = 11 : i64} {
  func.func @_fused_mm_kernel(%arg0: memref<64x576xbf16, #tpu.memory_space<vmem>>, %arg1: memref<576x8xbf16, #tpu.memory_space<vmem>>, %arg2: memref<64x1xf32, #tpu.memory_space<vmem>>, %arg3: memref<64x8xbf16, #tpu.memory_space<vmem>>) attributes {dimension_semantics = [], scalar_prefetch = 0 : i64, scratch_operands = 0 : i64, tpu.core_type = #tpu.core_type<tc>} {
    %c0 = arith.constant 0 : index
    %c0_0 = arith.constant 0 : index
    %0 = vector.load %arg0[%c0, %c0_0] : memref<64x576xbf16, #tpu.memory_space<vmem>>, vector<64x576xbf16>
    %c0_1 = arith.constant 0 : index
    %c0_2 = arith.constant 0 : index
    %1 = vector.load %arg1[%c0_1, %c0_2] : memref<576x8xbf16, #tpu.memory_space<vmem>>, vector<576x8xbf16>
    %cst = arith.constant dense<0.000000e+00> : vector<64x8xf32>
    %2 = tpu.matmul %0, %1, %cst {dimension_numbers = #tpu.dot_dimension_numbers<[1], [0], [0], [1], [0, 0, 1, 1], [], []>} : vector<64x576xbf16>, vector<576x8xbf16>, vector<64x8xf32> -> vector<64x8xf32>
    %c0_3 = arith.constant 0 : index
    %c0_4 = arith.constant 0 : index
    %3 = vector.load %arg2[%c0_3, %c0_4] : memref<64x1xf32, #tpu.memory_space<vmem>>, vector<64x1xf32>
    %4 = vector.broadcast %3 : vector<64x1xf32> to vector<64x8xf32>
    %5 = arith.addf %2, %4 : vector<64x8xf32>
    %cst_5 = arith.constant 0.000000e+00 : f32
    %6 = vector.broadcast %cst_5 : f32 to vector<64x8xf32>
    %7 = arith.maximumf %5, %6 : vector<64x8xf32>
    %8 = arith.truncf %7 : vector<64x8xf32> to vector<64x8xbf16>
    %c0_6 = arith.constant 0 : index
    %c0_7 = arith.constant 0 : index
    %9 = vector.load %arg3[%c0_6, %c0_7] : memref<64x8xbf16, #tpu.memory_space<vmem>>, vector<64x8xbf16>
    tpu.vector_store %arg3[%c0_6, %c0_7], %8 {strides = array<i32>} : memref<64x8xbf16, #tpu.memory_space<vmem>>, vector<64x8xbf16>,
    return
  }
}

module attributes {stable_mosaic.version = 11 : i64} {
  func.func @_fused_mm_kernel(%arg0: memref<32x64xbf16, #tpu.memory_space<vmem>>, %arg1: memref<64x8xbf16, #tpu.memory_space<vmem>>, %arg2: memref<32x1xf32, #tpu.memory_space<vmem>>, %arg3: memref<32x8xbf16, #tpu.memory_space<vmem>>) attributes {dimension_semantics = [], scalar_prefetch = 0 : i64, scratch_operands = 0 : i64, tpu.core_type = #tpu.core_type<tc>} {
    %c0 = arith.constant 0 : index
    %c0_0 = arith.constant 0 : index
    %0 = vector.load %arg0[%c0, %c0_0] : memref<32x64xbf16, #tpu.memory_space<vmem>>, vector<32x64xbf16>
    %c0_1 = arith.constant 0 : index
    %c0_2 = arith.constant 0 : index
    %1 = vector.load %arg1[%c0_1, %c0_2] : memref<64x8xbf16, #tpu.memory_space<vmem>>, vector<64x8xbf16>
    %cst = arith.constant dense<0.000000e+00> : vector<32x8xf32>
    %2 = tpu.matmul %0, %1, %cst {dimension_numbers = #tpu.dot_dimension_numbers<[1], [0], [0], [1], [0, 0, 1, 1], [], []>} : vector<32x64xbf16>, vector<64x8xbf16>, vector<32x8xf32> -> vector<32x8xf32>
    %c0_3 = arith.constant 0 : index
    %c0_4 = arith.constant 0 : index
    %3 = vector.load %arg2[%c0_3, %c0_4] : memref<32x1xf32, #tpu.memory_space<vmem>>, vector<32x1xf32>
    %4 = vector.broadcast %3 : vector<32x1xf32> to vector<32x8xf32>
    %5 = arith.addf %2, %4 : vector<32x8xf32>
    %6 = arith.truncf %5 : vector<32x8xf32> to vector<32x8xbf16>
    %c0_5 = arith.constant 0 : index
    %c0_6 = arith.constant 0 : index
    %7 = vector.load %arg3[%c0_5, %c0_6] : memref<32x8xbf16, #tpu.memory_space<vmem>>, vector<32x8xbf16>
    tpu.vector_store %arg3[%c0_5, %c0_6], %6 {strides = array<i32>} : memref<32x8xbf16, #tpu.memory_space<vmem>>, vector<32x8xbf16>,
    return
  }
}

module attributes {stable_mosaic.version = 11 : i64} {
  func.func @_fused_mm_kernel(%arg0: memref<8x288xbf16, #tpu.memory_space<vmem>>, %arg1: memref<288x8xbf16, #tpu.memory_space<vmem>>, %arg2: memref<8x1xf32, #tpu.memory_space<vmem>>, %arg3: memref<8x8xbf16, #tpu.memory_space<vmem>>) attributes {dimension_semantics = [], scalar_prefetch = 0 : i64, scratch_operands = 0 : i64, tpu.core_type = #tpu.core_type<tc>} {
    %c0 = arith.constant 0 : index
    %c0_0 = arith.constant 0 : index
    %0 = vector.load %arg0[%c0, %c0_0] : memref<8x288xbf16, #tpu.memory_space<vmem>>, vector<8x288xbf16>
    %c0_1 = arith.constant 0 : index
    %c0_2 = arith.constant 0 : index
    %1 = vector.load %arg1[%c0_1, %c0_2] : memref<288x8xbf16, #tpu.memory_space<vmem>>, vector<288x8xbf16>
    %cst = arith.constant dense<0.000000e+00> : vector<8x8xf32>
    %2 = tpu.matmul %0, %1, %cst {dimension_numbers = #tpu.dot_dimension_numbers<[1], [0], [0], [1], [0, 0, 1, 1], [], []>} : vector<8x288xbf16>, vector<288x8xbf16>, vector<8x8xf32> -> vector<8x8xf32>
    %c0_3 = arith.constant 0 : index
    %c0_4 = arith.constant 0 : index
    %3 = vector.load %arg2[%c0_3, %c0_4] : memref<8x1xf32, #tpu.memory_space<vmem>>, vector<8x1xf32>
    %4 = vector.broadcast %3 : vector<8x1xf32> to vector<8x8xf32>
    %5 = arith.addf %2, %4 : vector<8x8xf32>
    %6 = arith.truncf %5 : vector<8x8xf32> to vector<8x8xbf16>
    %c0_5 = arith.constant 0 : index
    %c0_6 = arith.constant 0 : index
    %7 = vector.load %arg3[%c0_5, %c0_6] : memref<8x8xbf16, #tpu.memory_space<vmem>>, vector<8x8xbf16>
    tpu.vector_store %arg3[%c0_5, %c0_6], %6 {strides = array<i32>} : memref<8x8xbf16, #tpu.memory_space<vmem>>, vector<8x8xbf16>,
    return
  }
}

module attributes {stable_mosaic.version = 11 : i64} {
  func.func @_fused_mm_kernel(%arg0: memref<8x288xbf16, #tpu.memory_space<vmem>>, %arg1: memref<288x32xbf16, #tpu.memory_space<vmem>>, %arg2: memref<8x1xf32, #tpu.memory_space<vmem>>, %arg3: memref<8x32xbf16, #tpu.memory_space<vmem>>) attributes {dimension_semantics = [], scalar_prefetch = 0 : i64, scratch_operands = 0 : i64, tpu.core_type = #tpu.core_type<tc>} {
    %c0 = arith.constant 0 : index
    %c0_0 = arith.constant 0 : index
    %0 = vector.load %arg0[%c0, %c0_0] : memref<8x288xbf16, #tpu.memory_space<vmem>>, vector<8x288xbf16>
    %c0_1 = arith.constant 0 : index
    %c0_2 = arith.constant 0 : index
    %1 = vector.load %arg1[%c0_1, %c0_2] : memref<288x32xbf16, #tpu.memory_space<vmem>>, vector<288x32xbf16>
    %cst = arith.constant dense<0.000000e+00> : vector<8x32xf32>
    %2 = tpu.matmul %0, %1, %cst {dimension_numbers = #tpu.dot_dimension_numbers<[1], [0], [0], [1], [0, 0, 1, 1], [], []>} : vector<8x288xbf16>, vector<288x32xbf16>, vector<8x32xf32> -> vector<8x32xf32>
    %c0_3 = arith.constant 0 : index
    %c0_4 = arith.constant 0 : index
    %3 = vector.load %arg2[%c0_3, %c0_4] : memref<8x1xf32, #tpu.memory_space<vmem>>, vector<8x1xf32>
    %4 = vector.broadcast %3 : vector<8x1xf32> to vector<8x32xf32>
    %5 = arith.addf %2, %4 : vector<8x32xf32>
    %6 = arith.truncf %5 : vector<8x32xf32> to vector<8x32xbf16>
    %c0_5 = arith.constant 0 : index
    %c0_6 = arith.constant 0 : index
    %7 = vector.load %arg3[%c0_5, %c0_6] : memref<8x32xbf16, #tpu.memory_space<vmem>>, vector<8x32xbf16>
    tpu.vector_store %arg3[%c0_5, %c0_6], %6 {strides = array<i32>} : memref<8x32xbf16, #tpu.memory_space<vmem>>, vector<8x32xbf16>,
    return
  }
}

module attributes {stable_mosaic.version = 11 : i64} {
  func.func @_fused_mm_kernel(%arg0: memref<8x288xbf16, #tpu.memory_space<vmem>>, %arg1: memref<288x128xbf16, #tpu.memory_space<vmem>>, %arg2: memref<8x1xf32, #tpu.memory_space<vmem>>, %arg3: memref<8x128xbf16, #tpu.memory_space<vmem>>) attributes {dimension_semantics = [], scalar_prefetch = 0 : i64, scratch_operands = 0 : i64, tpu.core_type = #tpu.core_type<tc>} {
    %c0 = arith.constant 0 : index
    %c0_0 = arith.constant 0 : index
    %0 = vector.load %arg0[%c0, %c0_0] : memref<8x288xbf16, #tpu.memory_space<vmem>>, vector<8x288xbf16>
    %c0_1 = arith.constant 0 : index
    %c0_2 = arith.constant 0 : index
    %1 = vector.load %arg1[%c0_1, %c0_2] : memref<288x128xbf16, #tpu.memory_space<vmem>>, vector<288x128xbf16>
    %cst = arith.constant dense<0.000000e+00> : vector<8x128xf32>
    %2 = tpu.matmul %0, %1, %cst {dimension_numbers = #tpu.dot_dimension_numbers<[1], [0], [0], [1], [0, 0, 1, 1], [], []>} : vector<8x288xbf16>, vector<288x128xbf16>, vector<8x128xf32> -> vector<8x128xf32>
    %c0_3 = arith.constant 0 : index
    %c0_4 = arith.constant 0 : index
    %3 = vector.load %arg2[%c0_3, %c0_4] : memref<8x1xf32, #tpu.memory_space<vmem>>, vector<8x1xf32>
    %4 = vector.broadcast %3 : vector<8x1xf32> to vector<8x128xf32>
    %5 = arith.addf %2, %4 : vector<8x128xf32>
    %6 = arith.truncf %5 : vector<8x128xf32> to vector<8x128xbf16>
    %c0_5 = arith.constant 0 : index
    %c0_6 = arith.constant 0 : index
    %7 = vector.load %arg3[%c0_5, %c0_6] : memref<8x128xbf16, #tpu.memory_space<vmem>>, vector<8x128xbf16>
    tpu.vector_store %arg3[%c0_5, %c0_6], %6 {strides = array<i32>} : memref<8x128xbf16, #tpu.memory_space<vmem>>, vector<8x128xbf16>,
    return
  }
}

module attributes {stable_mosaic.version = 11 : i64} {
  func.func @_fused_mm_kernel(%arg0: i32, %arg1: memref<8x288xbf16, #tpu.memory_space<vmem>>, %arg2: memref<288x256xbf16, #tpu.memory_space<vmem>>, %arg3: memref<8x1xf32, #tpu.memory_space<vmem>>, %arg4: memref<8x256xbf16, #tpu.memory_space<vmem>>) attributes {dimension_semantics = [#tpu.dimension_semantics<parallel>], iteration_bounds = array<i64: 2>, scalar_prefetch = 0 : i64, scratch_operands = 0 : i64, tpu.core_type = #tpu.core_type<tc>, window_params = [{pipeline_mode = #tpu.pipeline_mode<synchronous>, transform_indices = @transform_0, window_bounds = array<i64: 8, 288>}, {transform_indices = @transform_1, window_bounds = array<i64: 288, 256>}, {pipeline_mode = #tpu.pipeline_mode<synchronous>, transform_indices = @transform_2, window_bounds = array<i64: 8, 1>}, {transform_indices = @transform_3, window_bounds = array<i64: 8, 256>}]} {
    %c0 = arith.constant 0 : index
    %c0_0 = arith.constant 0 : index
    %0 = vector.load %arg1[%c0, %c0_0] : memref<8x288xbf16, #tpu.memory_space<vmem>>, vector<8x288xbf16>
    %c0_1 = arith.constant 0 : index
    %c0_2 = arith.constant 0 : index
    %1 = vector.load %arg2[%c0_1, %c0_2] : memref<288x256xbf16, #tpu.memory_space<vmem>>, vector<288x256xbf16>
    %cst = arith.constant dense<0.000000e+00> : vector<8x256xf32>
    %2 = tpu.matmul %0, %1, %cst {dimension_numbers = #tpu.dot_dimension_numbers<[1], [0], [0], [1], [0, 0, 1, 1], [], []>} : vector<8x288xbf16>, vector<288x256xbf16>, vector<8x256xf32> -> vector<8x256xf32>
    %c0_3 = arith.constant 0 : index
    %c0_4 = arith.constant 0 : index
    %3 = vector.load %arg3[%c0_3, %c0_4] : memref<8x1xf32, #tpu.memory_space<vmem>>, vector<8x1xf32>
    %4 = vector.broadcast %3 : vector<8x1xf32> to vector<8x256xf32>
    %5 = arith.addf %2, %4 : vector<8x256xf32>
    %6 = arith.truncf %5 : vector<8x256xf32> to vector<8x256xbf16>
    %c0_5 = arith.constant 0 : index
    %c0_6 = arith.constant 0 : index
    %7 = vector.load %arg4[%c0_5, %c0_6] : memref<8x256xbf16, #tpu.memory_space<vmem>>, vector<8x256xbf16>
    tpu.vector_store %arg4[%c0_5, %c0_6], %6 {strides = array<i32>} : memref<8x256xbf16, #tpu.memory_space<vmem>>, vector<8x256xbf16>,
    return
  }
  func.func @transform_0(%arg0: i32) -> (i32, i32) {
    %c0_i32 = arith.constant 0 : i32
    %c0_i32_0 = arith.constant 0 : i32
    %c0_i32_1 = arith.constant 0 : i32
    return %c0_i32, %c0_i32_0 : i32, i32
  }
  func.func @transform_1(%arg0: i32) -> (i32, i32) {
    %c0_i32 = arith.constant 0 : i32
    %c0_i32_0 = arith.constant 0 : i32
    return %c0_i32, %arg0 : i32, i32
  }
  func.func @transform_2(%arg0: i32) -> (i32, i32) {
    %c0_i32 = arith.constant 0 : i32
    %c0_i32_0 = arith.constant 0 : i32
    %c0_i32_1 = arith.constant 0 : i32
    return %c0_i32, %c0_i32_0 : i32, i32
  }
  func.func @transform_3(%arg0: i32) -> (i32, i32) {
    %c0_i32 = arith.constant 0 : i32
    %c0_i32_0 = arith.constant 0 : i32
    return %c0_i32, %arg0 : i32, i32
  }
}

module attributes {stable_mosaic.version = 11 : i64} {
  func.func @_fused_mm_kernel(%arg0: i32, %arg1: memref<8x288xbf16, #tpu.memory_space<vmem>>, %arg2: memref<288x256xbf16, #tpu.memory_space<vmem>>, %arg3: memref<8x1xf32, #tpu.memory_space<vmem>>, %arg4: memref<8x256xbf16, #tpu.memory_space<vmem>>) attributes {dimension_semantics = [#tpu.dimension_semantics<parallel>], iteration_bounds = array<i64: 2>, scalar_prefetch = 0 : i64, scratch_operands = 0 : i64, tpu.core_type = #tpu.core_type<tc>, window_params = [{pipeline_mode = #tpu.pipeline_mode<synchronous>, transform_indices = @transform_0, window_bounds = array<i64: 8, 288>}, {transform_indices = @transform_1, window_bounds = array<i64: 288, 256>}, {pipeline_mode = #tpu.pipeline_mode<synchronous>, transform_indices = @transform_2, window_bounds = array<i64: 8, 1>}, {transform_indices = @transform_3, window_bounds = array<i64: 8, 256>}]} {
    %c0 = arith.constant 0 : index
    %c0_0 = arith.constant 0 : index
    %0 = vector.load %arg1[%c0, %c0_0] : memref<8x288xbf16, #tpu.memory_space<vmem>>, vector<8x288xbf16>
    %c0_1 = arith.constant 0 : index
    %c0_2 = arith.constant 0 : index
    %1 = vector.load %arg2[%c0_1, %c0_2] : memref<288x256xbf16, #tpu.memory_space<vmem>>, vector<288x256xbf16>
    %cst = arith.constant dense<0.000000e+00> : vector<8x256xf32>
    %2 = tpu.matmul %0, %1, %cst {dimension_numbers = #tpu.dot_dimension_numbers<[1], [0], [0], [1], [0, 0, 1, 1], [], []>} : vector<8x288xbf16>, vector<288x256xbf16>, vector<8x256xf32> -> vector<8x256xf32>
    %c0_3 = arith.constant 0 : index
    %c0_4 = arith.constant 0 : index
    %3 = vector.load %arg3[%c0_3, %c0_4] : memref<8x1xf32, #tpu.memory_space<vmem>>, vector<8x1xf32>
    %4 = vector.broadcast %3 : vector<8x1xf32> to vector<8x256xf32>
    %5 = arith.addf %2, %4 : vector<8x256xf32>
    %cst_5 = arith.constant 0.000000e+00 : f32
    %6 = vector.broadcast %cst_5 : f32 to vector<8x256xf32>
    %7 = arith.maximumf %5, %6 : vector<8x256xf32>
    %8 = arith.truncf %7 : vector<8x256xf32> to vector<8x256xbf16>
    %c0_6 = arith.constant 0 : index
    %c0_7 = arith.constant 0 : index
    %9 = vector.load %arg4[%c0_6, %c0_7] : memref<8x256xbf16, #tpu.memory_space<vmem>>, vector<8x256xbf16>
    tpu.vector_store %arg4[%c0_6, %c0_7], %8 {strides = array<i32>} : memref<8x256xbf16, #tpu.memory_space<vmem>>, vector<8x256xbf16>,
    return
  }
  func.func @transform_0(%arg0: i32) -> (i32, i32) {
    %c0_i32 = arith.constant 0 : i32
    %c0_i32_0 = arith.constant 0 : i32
    %c0_i32_1 = arith.constant 0 : i32
    return %c0_i32, %c0_i32_0 : i32, i32
  }
  func.func @transform_1(%arg0: i32) -> (i32, i32) {
    %c0_i32 = arith.constant 0 : i32
    %c0_i32_0 = arith.constant 0 : i32
    return %c0_i32, %arg0 : i32, i32
  }
  func.func @transform_2(%arg0: i32) -> (i32, i32) {
    %c0_i32 = arith.constant 0 : i32
    %c0_i32_0 = arith.constant 0 : i32
    %c0_i32_1 = arith.constant 0 : i32
    return %c0_i32, %c0_i32_0 : i32, i32
  }
  func.func @transform_3(%arg0: i32) -> (i32, i32) {
    %c0_i32 = arith.constant 0 : i32
    %c0_i32_0 = arith.constant 0 : i32
    return %c0_i32, %arg0 : i32, i32
  }
}

module attributes {stable_mosaic.version = 11 : i64} {
  func.func @_fused_mm_kernel(%arg0: i32, %arg1: memref<32x8xbf16, #tpu.memory_space<vmem>>, %arg2: memref<8x256xbf16, #tpu.memory_space<vmem>>, %arg3: memref<32x1xf32, #tpu.memory_space<vmem>>, %arg4: memref<32x256xbf16, #tpu.memory_space<vmem>>) attributes {dimension_semantics = [#tpu.dimension_semantics<parallel>], iteration_bounds = array<i64: 2>, scalar_prefetch = 0 : i64, scratch_operands = 0 : i64, tpu.core_type = #tpu.core_type<tc>, window_params = [{pipeline_mode = #tpu.pipeline_mode<synchronous>, transform_indices = @transform_0, window_bounds = array<i64: 32, 8>}, {transform_indices = @transform_1, window_bounds = array<i64: 8, 256>}, {pipeline_mode = #tpu.pipeline_mode<synchronous>, transform_indices = @transform_2, window_bounds = array<i64: 32, 1>}, {transform_indices = @transform_3, window_bounds = array<i64: 32, 256>}]} {
    %c0 = arith.constant 0 : index
    %c0_0 = arith.constant 0 : index
    %0 = vector.load %arg1[%c0, %c0_0] : memref<32x8xbf16, #tpu.memory_space<vmem>>, vector<32x8xbf16>
    %c0_1 = arith.constant 0 : index
    %c0_2 = arith.constant 0 : index
    %1 = vector.load %arg2[%c0_1, %c0_2] : memref<8x256xbf16, #tpu.memory_space<vmem>>, vector<8x256xbf16>
    %cst = arith.constant dense<0.000000e+00> : vector<32x256xf32>
    %2 = tpu.matmul %0, %1, %cst {dimension_numbers = #tpu.dot_dimension_numbers<[1], [0], [0], [1], [0, 0, 1, 1], [], []>} : vector<32x8xbf16>, vector<8x256xbf16>, vector<32x256xf32> -> vector<32x256xf32>
    %c0_3 = arith.constant 0 : index
    %c0_4 = arith.constant 0 : index
    %3 = vector.load %arg3[%c0_3, %c0_4] : memref<32x1xf32, #tpu.memory_space<vmem>>, vector<32x1xf32>
    %4 = vector.broadcast %3 : vector<32x1xf32> to vector<32x256xf32>
    %5 = arith.addf %2, %4 : vector<32x256xf32>
    %cst_5 = arith.constant 0.000000e+00 : f32
    %6 = vector.broadcast %cst_5 : f32 to vector<32x256xf32>
    %7 = arith.maximumf %5, %6 : vector<32x256xf32>
    %8 = arith.truncf %7 : vector<32x256xf32> to vector<32x256xbf16>
    %c0_6 = arith.constant 0 : index
    %c0_7 = arith.constant 0 : index
    %9 = vector.load %arg4[%c0_6, %c0_7] : memref<32x256xbf16, #tpu.memory_space<vmem>>, vector<32x256xbf16>
    tpu.vector_store %arg4[%c0_6, %c0_7], %8 {strides = array<i32>} : memref<32x256xbf16, #tpu.memory_space<vmem>>, vector<32x256xbf16>,
    return
  }
  func.func @transform_0(%arg0: i32) -> (i32, i32) {
    %c0_i32 = arith.constant 0 : i32
    %c0_i32_0 = arith.constant 0 : i32
    %c0_i32_1 = arith.constant 0 : i32
    return %c0_i32, %c0_i32_0 : i32, i32
  }
  func.func @transform_1(%arg0: i32) -> (i32, i32) {
    %c0_i32 = arith.constant 0 : i32
    %c0_i32_0 = arith.constant 0 : i32
    return %c0_i32, %arg0 : i32, i32
  }
  func.func @transform_2(%arg0: i32) -> (i32, i32) {
    %c0_i32 = arith.constant 0 : i32
    %c0_i32_0 = arith.constant 0 : i32
    %c0_i32_1 = arith.constant 0 : i32
    return %c0_i32, %c0_i32_0 : i32, i32
  }
  func.func @transform_3(%arg0: i32) -> (i32, i32) {
    %c0_i32 = arith.constant 0 : i32
    %c0_i32_0 = arith.constant 0 : i32
    return %c0_i32, %arg0 : i32, i32
  }
}

module attributes {stable_mosaic.version = 11 : i64} {
  func.func @_fused_mm_kernel(%arg0: i32, %arg1: memref<4x8xbf16, #tpu.memory_space<vmem>>, %arg2: memref<8x1024xbf16, #tpu.memory_space<vmem>>, %arg3: memref<4x1xf32, #tpu.memory_space<vmem>>, %arg4: memref<4x1024xf32, #tpu.memory_space<vmem>>) attributes {dimension_semantics = [#tpu.dimension_semantics<parallel>], iteration_bounds = array<i64: 2>, scalar_prefetch = 0 : i64, scratch_operands = 0 : i64, tpu.core_type = #tpu.core_type<tc>, window_params = [{pipeline_mode = #tpu.pipeline_mode<synchronous>, transform_indices = @transform_0, window_bounds = array<i64: 4, 8>}, {transform_indices = @transform_1, window_bounds = array<i64: 8, 1024>}, {pipeline_mode = #tpu.pipeline_mode<synchronous>, transform_indices = @transform_2, window_bounds = array<i64: 4, 1>}, {transform_indices = @transform_3, window_bounds = array<i64: 4, 1024>}]} {
    %c0 = arith.constant 0 : index
    %c0_0 = arith.constant 0 : index
    %0 = vector.load %arg1[%c0, %c0_0] : memref<4x8xbf16, #tpu.memory_space<vmem>>, vector<4x8xbf16>
    %c0_1 = arith.constant 0 : index
    %c0_2 = arith.constant 0 : index
    %1 = vector.load %arg2[%c0_1, %c0_2] : memref<8x1024xbf16, #tpu.memory_space<vmem>>, vector<8x1024xbf16>
    %cst = arith.constant dense<0.000000e+00> : vector<4x1024xf32>
    %2 = tpu.matmul %0, %1, %cst {dimension_numbers = #tpu.dot_dimension_numbers<[1], [0], [0], [1], [0, 0, 1, 1], [], []>} : vector<4x8xbf16>, vector<8x1024xbf16>, vector<4x1024xf32> -> vector<4x1024xf32>
    %c0_3 = arith.constant 0 : index
    %c0_4 = arith.constant 0 : index
    %3 = vector.load %arg3[%c0_3, %c0_4] : memref<4x1xf32, #tpu.memory_space<vmem>>, vector<4x1xf32>
    %4 = vector.broadcast %3 : vector<4x1xf32> to vector<4x1024xf32>
    %5 = arith.addf %2, %4 : vector<4x1024xf32>
    %6 = arith.negf %5 : vector<4x1024xf32>
    %7 = math.exp %6 : vector<4x1024xf32>
    %cst_5 = arith.constant 1.000000e+00 : f32
    %8 = vector.broadcast %cst_5 : f32 to vector<4x1024xf32>
    %9 = arith.addf %8, %7 : vector<4x1024xf32>
    %10 = arith.divf %8, %9 : vector<4x1024xf32>
    %c0_6 = arith.constant 0 : index
    %c0_7 = arith.constant 0 : index
    %11 = vector.load %arg4[%c0_6, %c0_7] : memref<4x1024xf32, #tpu.memory_space<vmem>>, vector<4x1024xf32>
    tpu.vector_store %arg4[%c0_6, %c0_7], %10 {strides = array<i32>} : memref<4x1024xf32, #tpu.memory_space<vmem>>, vector<4x1024xf32>,
    return
  }
  func.func @transform_0(%arg0: i32) -> (i32, i32) {
    %c0_i32 = arith.constant 0 : i32
    %c0_i32_0 = arith.constant 0 : i32
    %c0_i32_1 = arith.constant 0 : i32
    return %c0_i32, %c0_i32_0 : i32, i32
  }
  func.func @transform_1(%arg0: i32) -> (i32, i32) {
    %c0_i32 = arith.constant 0 : i32
    %c0_i32_0 = arith.constant 0 : i32
    return %c0_i32, %arg0 : i32, i32
  }
  func.func @transform_2(%arg0: i32) -> (i32, i32) {
    %c0_i32 = arith.constant 0 : i32
    %c0_i32_0 = arith.constant 0 : i32
    %c0_i32_1 = arith.constant 0 : i32
    return %c0_i32, %c0_i32_0 : i32, i32
  }
  func.func @transform_3(%arg0: i32) -> (i32, i32) {
    %c0_i32 = arith.constant 0 : i32
    %c0_i32_0 = arith.constant 0 : i32
    return %c0_i32, %arg0 : i32, i32
  }
}

</mosaic_0001>

<bundles_post_ra>
// kernel: seg_detector_forward.16
= control target key start
LH: loop header
LB: loop body
LE: loop exit
PB: predicated region body
PF: predicated region fallthrough
CT: control target
= control target key end

     0   :  { %s736_s12 = smov 0   ;;  %s738_s13 = smov 0   ;;  %s839_s0 = inlined_call_operand.vmem [shape: bf16[8,27], index: 0, kind: input, shape index: {}]   ;;  %s840_s1 = inlined_call_operand.vmem [shape: bf16[27,2048], index: 1, kind: input, shape index: {}]   ;;  %s841_s2 = inlined_call_operand.vmem [shape: f32[8,1], index: 2, kind: input, shape index: {}]   ;;  %s842_s3 = inlined_call_operand.vmem [shape: bf16[8,2048], index: 3, kind: output, shape index: {}]  }
   0x1   :  { %s740_s14 = smov 0  }
   0x2 LB: > { %s621_s15 = sadd.s32 4294967295, %s712_s14   ;;  %s753_s16 = sadd.s32 1, %s712_s14   ;;  %s712_s14 = sphi %s740_s14, %s845_s14   ;;  %s708_s13 = sphi %s738_s13, %s844_s13   ;;  %s704_s12 = sphi %s736_s12, %s843_s12  }
   0x3   : > { %s38_s17 = ssub.s32 %s712_s14, %s753_s16  ;;  %s41_s18 = sadd.s32 1, %s708_s13 }
   0x4   : > { %p39_p0 = scmp.eq.s32.totalorder %s38_s17, 0  ;;  %p48_p1 = scmp.ne.s32.totalorder %s708_s13, %s704_s12 }
   0x5   : > { %p49_p2 = scmp.eq.s32.totalorder %s712_s14, 0  ;;  %p624_p4 = scmp.ge.s32.totalorder %s712_s14, 2 }
   0x6   : > { %s762_s19 = scalar_select %p39_p0, %s708_s13, %s41_s18  }
   0x7   : > { %p50_p3 = por %p49_p2, %p48_p1  ;;  %127 = sbr.rel (%p624_p4) target bundleno = 24 (0x18), region = 24 }
   0xc   : > { %130 = sbr.rel (!%p50_p3) target bundleno = 24 (0x18), region = 28  ;;  %s132_s20 = sand.u32 (%p50_p3), 1, %s708_s13  }
   0xd   : > { %s658_s21 = sshll.u32 (%p50_p3), %s712_s14, 5  ;;  %s625_s22 = sshll.u32 (%p50_p3), %s132_s20, 7 }
   0xe   : > { %s770_s25 = scalar_lea.vmem (%p50_p3), %s840_s1, %s658_s21  ;;  %s134_s26 = scalar_lea.vmem (%p50_p3), [#allocation2], %s625_s22 }
   0xf   : > { %v150_v0 = vld [vmem:[%s770_s25] sm:$0xff] (%p50_p3)  ;;  %v152_v1 = vld [vmem:[%s770_s25 + $0x8] sm:$0xff] (%p50_p3)  ;;  %v154_v2 = vld [vmem:[%s770_s25 + $0x10] sm:$0xff] (%p50_p3) }
  0x10   : > { %151 = vst [vmem:[%s134_s26] sm:$0xff] (%p50_p3), %v150_v0  ;;  %153 = vst [vmem:[%s134_s26 + $0x8] sm:$0xff] (%p50_p3), %v152_v1  ;;  %v156_v3 = vld [vmem:[%s770_s25 + $0x18] sm:$0xff] (%p50_p3)  ;;  %v158_v4 = vld [vmem:[%s770_s25 + $0x40] sm:$0xff] (%p50_p3) }
  0x11   : > { %155 = vst [vmem:[%s134_s26 + $0x10] sm:$0xff] %v154_v2  ;;  %v160_v5 = vld [vmem:[%s770_s25 + $0x48] sm:$0xff]  ;;  %157 = vst [vmem:[%s134_s26 + $0x18] sm:$0xff] %v156_v3  ;;  %v162_v6 = vld [vmem:[%s770_s25 + $0x50] sm:$0xff] }
  0x12   : > { %159 = vst [vmem:[%s134_s26 + $0x20] sm:$0xff] %v158_v4  ;;  %161 = vst [vmem:[%s134_s26 + $0x28] sm:$0xff] %v160_v5  ;;  %v164_v7 = vld [vmem:[%s770_s25 + $0x58] sm:$0xff]  ;;  %v166_v8 = vld [vmem:[%s770_s25 + $0x80] sm:$0xff] }
  0x13   : > { %163 = vst [vmem:[%s134_s26 + $0x30] sm:$0xff] %v162_v6  ;;  %165 = vst [vmem:[%s134_s26 + $0x38] sm:$0xff] %v164_v7  ;;  %v168_v9 = vld [vmem:[%s770_s25 + $0x88] sm:$0xff]  ;;  %v170_v10 = vld [vmem:[%s770_s25 + $0x90] sm:$0xff] }
  0x14   : > { %167 = vst [vmem:[%s134_s26 + $0x40] sm:$0xff] %v166_v8  ;;  %v172_v11 = vld [vmem:[%s770_s25 + $0x98] sm:$0xff]  ;;  %169 = vst [vmem:[%s134_s26 + $0x48] sm:$0xff] %v168_v9  ;;  %v174_v12 = vld [vmem:[%s770_s25 + $0xc0] sm:$0xff] }
  0x15   : > { %171 = vst [vmem:[%s134_s26 + $0x50] sm:$0xff] %v170_v10  ;;  %173 = vst [vmem:[%s134_s26 + $0x58] sm:$0xff] %v172_v11  ;;  %v176_v13 = vld [vmem:[%s770_s25 + $0xc8] sm:$0xff]  ;;  %v178_v14 = vld [vmem:[%s770_s25 + $0xd0] sm:$0xff] }
  0x16   : > { %175 = vst [vmem:[%s134_s26 + $0x60] sm:$0xff] %v174_v12  ;;  %177 = vst [vmem:[%s134_s26 + $0x68] sm:$0xff] %v176_v13  ;;  %v180_v15 = vld [vmem:[%s770_s25 + $0xd8] sm:$0xff] }
  0x17   : > { %179 = vst [vmem:[%s134_s26 + $0x70] sm:$0xff] %v178_v14  ;;  %181 = vst [vmem:[%s134_s26 + $0x78] sm:$0xff] %v180_v15 }
  0x18 PF: > { %p628_p5 = scmp.ge.s32.totalorder %s712_s14, 1  ;;  %p186_p6 = scmp.lt.s32.totalorder %s712_s14, 3 }
  0x1a   : > { %p187_p7 = pnand %p628_p5, %p186_p6 }
  0x1b   : > { %s193_s27 = sand.u32 (!%p187_p7), 1, %s704_s12   ;;  %s630_s7 = sshll.u32 (!%p187_p7), %s621_s15, 3 }
  0x1c   : > { %190 = sbr.rel (%p187_p7) target bundleno = 258 (0x102), region = 51  ;;  %s629_s30 = sshll.u32 (!%p187_p7), %s193_s27, 7 }
  0x1d   : > { %s797_s4 = scalar_lea.vmem (!%p187_p7), [#allocation2], %s629_s30  ;;  %p218_p8 = scmp.lt.s32.totalorder (!%p187_p7), %s630_s7, 15 }
  0x21   : > { %vm323_vm0 = vcmask 1044480   ;;  %vm324_vm1 = vcmask 1045504   ;;  %v241_v16 = vld [vmem:[%s841_s2] sm:$0xff]  ;;  %v714_v17 = vmov 65535   ;;  %v715_v19 = vmov 0   ;;  %v234_v23 = vld [vmem:[%s797_s4 + $0x48] sm:$0xff] }
  0x22   : > { %v325_v18 = vsel %vm323_vm0, 4294967295, %v714_v17  ;;  %383 = vmatprep.mubr.bf16.mxu0 %v715_v19  ;;  %424 = vmatprep.mubr.bf16.mxu1 %v715_v19  ;;  %v233_v20 = vld [vmem:[%s797_s4 + $0x40] sm:$0xff]  ;;  %v238_v25 = vld [vmem:[%s797_s4 + $0x68] sm:$0x33]  ;;  %v235_v33 = vld [vmem:[%s797_s4 + $0x50] sm:$0xff]  ;;  %vm319_vm2 = vcmask 220160  }
  0x23   : > { %689 = vset.pattern.permute.xlu0 %v715_v19  ;;  %v237_v21 = vld [vmem:[%s797_s4 + $0x60] sm:$0x33]  ;;  %v326_v22 = vsel %vm324_vm1, %v325_v18, 0  ;;  %v643_v29 = vcombine.high %v234_v23, %v238_v25  ;;  %v642_v30 = vcombine.low %v234_v23, %v238_v25  ;;  %v226_v31 = vld [vmem:[%s797_s4 + $0x8] sm:$0xff]  ;;  %v239_v37 = vld [vmem:[%s797_s4 + $0x70] sm:$0x33] }
  0x24   : > { %244 = vperm.xlu0 %689, %v241_v16   ;;  %v641_v24 = vcombine.high %v233_v20, %v237_v21  ;;  %v640_v26 = vcombine.low %v233_v20, %v237_v21  ;;  %v225_v27 = vld [vmem:[%s797_s4] sm:$0xff]  ;;  %v230_v32 = vld [vmem:[%s797_s4 + $0x28] sm:$0xff]  ;;  %v236_v38 = vld [vmem:[%s797_s4 + $0x58] sm:$0xff]  ;;  %v645_v43 = vcombine.high %v235_v33, %v239_v37  ;;  %v644_v46 = vcombine.low %v235_v33, %v239_v37  ;;  %s847_s7 = smov (!%p218_p8, %s630_s7), 15 }
  0x25   : > { %v229_v28 = vld [vmem:[%s797_s4 + $0x20] sm:$0xff]  ;;  %v240_v39 = vld [vmem:[%s797_s4 + $0x78] sm:$0x33]  ;;  %v337_v40 = vand.u32 %v643_v29, %v326_v22  ;;  %v334_v41 = vand.u32 %v642_v30, %v326_v22  ;;  %v635_v42 = vcombine.high %v226_v31, %v230_v32  ;;  %v634_v47 = vcombine.low %v226_v31, %v230_v32  ;;  %v227_v51 = vld [vmem:[%s797_s4 + $0x10] sm:$0xff]  ;;  %s631_s8 = sshll.u32 %s847_s7, 2 }
  0x26   : > { %v331_v34 = vand.u32 %v641_v24, %v326_v22  ;;  %v328_v35 = vand.u32 %v640_v26, %v326_v22  ;;  %v633_v36 = vcombine.high %v225_v27, %v229_v28  ;;  %v647_v44 = vcombine.high %v236_v38, %v240_v39  ;;  %v231_v52 = vld [vmem:[%s797_s4 + $0x30] sm:$0xff]  ;;  %v228_v53 = vld [vmem:[%s797_s4 + $0x18] sm:$0xff]  ;;  %v224_v55 = vld [vmem:[%s839_s0] sm:$0xf]  ;;  %s221_s11 = scalar_lea.vmem %s842_s3, %s631_s8 }
  0x27   : > { %404 = vmatprep.subr.bf16.mxu1 %v337_v40  ;;  %v632_v45 = vcombine.low %v225_v27, %v229_v28  ;;  %v343_v48 = vand.u32 %v645_v43, %v326_v22  ;;  %v646_v49 = vcombine.low %v236_v38, %v240_v39  ;;  %v232_v54 = vld [vmem:[%s797_s4 + $0x38] sm:$0xff]  ;;  %v340_v56 = vand.u32 %v644_v46, %v326_v22 }
  0x28   : > { %363 = vmatprep.subr.bf16.mxu0 %v331_v34  ;;  %405 = vmatpush1.bf16.msra.mxu1 %v334_v41  ;;  %v349_v50 = vand.u32 %v647_v44, %v326_v22  ;;  %v637_v58 = vcombine.high %v227_v51, %v231_v52  ;;  %v639_v59 = vcombine.high %v228_v53, %v232_v54 }
  0x29   : > { %364 = vmatpush1.bf16.msra.mxu0 %v328_v35  ;;  %406 = vmatprep.subr.bf16.mxu1 %v635_v42  ;;  %v346_v57 = vand.u32 %v646_v49, %v326_v22  ;;  %v636_v60 = vcombine.low %v227_v51, %v231_v52  ;;  %v638_v61 = vcombine.low %v228_v53, %v232_v54 }
  0x2a   : > { %365 = vmatprep.subr.bf16.mxu0 %v633_v36 }
  0x2c   : > { %407 = vmatpush1.bf16.msra.mxu1 %v634_v47 }
  0x2d   : > { %366 = vmatpush1.bf16.msra.mxu0 %v632_v45  ;;  %486 = vmatprep.subr.bf16.mxu1 %v349_v50 }
  0x2e   : > { %445 = vmatprep.subr.bf16.mxu0 %v343_v48 }
  0x2f   : > { %649 = vmatmul.mubr.msk.bf16.vlgmr.msra.gmra.mxu1 %vm319_vm2, %v224_v55 }
  0x30   : > { %648 = vmatmul.mubr.msk.bf16.vlgmr.msra.gmra.mxu0 %vm319_vm2, %v224_v55  ;;  %487 = vmatpush1.bf16.msra.mxu1 %v346_v57 }
  0x31   : > { %446 = vmatpush1.bf16.msra.mxu0 %v340_v56  ;;  %488 = vmatprep.subr.bf16.mxu1 %v639_v59 }
  0x32   : > { %447 = vmatprep.subr.bf16.mxu0 %v637_v58  ;;  %465 = vmatprep.mubr.bf16.mxu0 %v715_v19 }
  0x33   : > { %506 = vmatprep.mubr.bf16.mxu1 %v715_v19 }
  0x34   : > { %489 = vmatpush1.bf16.msra.mxu1 %v638_v61 }
  0x35   : > { %448 = vmatpush1.bf16.msra.mxu0 %v636_v60 }
  0x37   : > { %651 = vmatmul.mubr.msk.bf16.vlgmr.msra.gmra.mxu1 %vm319_vm2, %v224_v55 }
  0x38   : > { %650 = vmatmul.mubr.msk.bf16.vlgmr.msra.gmra.mxu0 %vm319_vm2, %v224_v55 }
  0x9f   : > { %v245_v62 = vpop.permute.xlu0 %244 }
  0xef   : > { %v426_v0 = vpop.f32.mrf.mxu1 }
  0xf0   : > { %v385_v63 = vpop.f32.mrf.mxu0  ;;  %v427_v3 = vadd.f32 %v426_v0, %v245_v62 }
  0xf1   : > { %v386_v1 = vadd.f32 %v385_v63, %v245_v62  ;;  %v428_v5 = vpop.f32.mrf.mxu1 }
  0xf2   : > { %v387_v2 = vpop.f32.mrf.mxu0  ;;  %v429_v6 = vadd.f32 %v428_v5, %v245_v62  ;;  %v517_v11 = vmax.f32 %v427_v3, 0.0 }
  0xf3   : > { %v388_v4 = vadd.f32 %v387_v2, %v245_v62  ;;  %v515_v8 = vmax.f32 %v386_v1, 0.0  ;;  %v430_v10 = vpop.f32.mrf.mxu1 }
  0xf4   : > { %v389_v7 = vpop.f32.mrf.mxu0  ;;  %v518_v12 = vmax.f32 %v429_v6, 0.0 }
  0xf5   : > { %v516_v9 = vmax.f32 %v388_v4, 0.0  ;;  %v431_v15 = vpop.f32.mrf.mxu1 }
  0xf6   : > { %v390_v13 = vpop.f32.mrf.mxu0  ;;  %v660_v16 = vpack.c.bf16 %v518_v12, %v517_v11 }
  0xf7   : > { %v659_v14 = vpack.c.bf16 %v516_v9, %v515_v8  ;;  %v508_v19 = vpop.f32.mrf.mxu1 }
  0xf8   : > { %v467_v17 = vpop.f32.mrf.mxu0  ;;  %556 = vst [vmem:[%s221_s11 + $0x8] sm:$0xff] %v660_v16  ;;  %v509_v20 = vadd.f32 %v508_v19, %v245_v62 }
  0xf9   : > { %555 = vst [vmem:[%s221_s11] sm:$0xff] %v659_v14  ;;  %v468_v18 = vadd.f32 %v467_v17, %v245_v62  ;;  %v510_v23 = vpop.f32.mrf.mxu1 }
  0xfa   : > { %v469_v21 = vpop.f32.mrf.mxu0  ;;  %v511_v24 = vadd.f32 %v510_v23, %v245_v62  ;;  %v521_v29 = vmax.f32 %v509_v20, 0.0 }
  0xfb   : > { %v470_v22 = vadd.f32 %v469_v21, %v245_v62  ;;  %v519_v26 = vmax.f32 %v468_v18, 0.0  ;;  %v512_v28 = vpop.f32.mrf.mxu1 }
  0xfc   : > { %v471_v25 = vpop.f32.mrf.mxu0  ;;  %v522_v30 = vmax.f32 %v511_v24, 0.0 }
  0xfd   : > { %v520_v27 = vmax.f32 %v470_v22, 0.0  ;;  %v513_v33 = vpop.f32.mrf.mxu1 }
  0xfe   : > { %v472_v31 = vpop.f32.mrf.mxu0  ;;  %v662_v34 = vpack.c.bf16 %v522_v30, %v521_v29 }
  0xff   : > { %v661_v32 = vpack.c.bf16 %v520_v27, %v519_v26 }
 0x100   : > { %558 = vst [vmem:[%s221_s11 + $0x18] sm:$0xff] %v662_v34 }
 0x101   : > { %557 = vst [vmem:[%s221_s11 + $0x10] sm:$0xff] %v661_v32 }
 0x102 PF: > { %p10_p9 = scmp.ge.s32.totalorder %s753_s16, 4   ;;  %s843_s12 = smov %s708_s13 }
 0x103   : > { %s844_s13 = smov %s762_s19  ;;  %s845_s14 = smov %s753_s16 }
 0x104   :  { %12 = sbr.rel (!%p10_p9) target bundleno = 2 (0x2), region = 90 }

// kernel: seg_detector_forward.17
= control target key start
LH: loop header
LB: loop body
LE: loop exit
PB: predicated region body
PF: predicated region fallthrough
CT: control target
= control target key end

     0   :  { %s604_s12 = smov 0   ;;  %s606_s13 = smov 0   ;;  %s677_s0 = inlined_call_operand.vmem [shape: bf16[16,72], index: 0, kind: input, shape index: {}]   ;;  %s678_s1 = inlined_call_operand.vmem [shape: bf16[72,512], index: 1, kind: input, shape index: {}]   ;;  %s679_s2 = inlined_call_operand.vmem [shape: f32[16,1], index: 2, kind: input, shape index: {}]   ;;  %s680_s3 = inlined_call_operand.vmem [shape: bf16[16,512], index: 3, kind: output, shape index: {}]  }
   0x1   :  { %s608_s14 = smov 0  }
   0x2 LB: > { %s484_s15 = sadd.s32 4294967295, %s581_s14   ;;  %s621_s16 = sadd.s32 1, %s581_s14   ;;  %s581_s14 = sphi %s608_s14, %s684_s14   ;;  %s577_s13 = sphi %s606_s13, %s683_s13   ;;  %s573_s12 = sphi %s604_s12, %s682_s12  }
   0x3   : > { %s38_s17 = ssub.s32 %s581_s14, %s621_s16  ;;  %s41_s18 = sadd.s32 1, %s577_s13 }
   0x4   : > { %p39_p0 = scmp.eq.s32.totalorder %s38_s17, 0  ;;  %p48_p1 = scmp.ne.s32.totalorder %s577_s13, %s573_s12 }
   0x5   : > { %p49_p2 = scmp.eq.s32.totalorder %s581_s14, 0  ;;  %p99_p3 = scmp.eq.s32.totalorder %s484_s15, 1 }
   0x6   : > { %s632_s19 = scalar_select %p39_p0, %s577_s13, %s41_s18  }
   0x7   : > { %p50_p4 = por %p49_p2, %p48_p1  ;;  %p634_p5 = por %p99_p3, %p48_p1 }
   0x8   : > { %p487_p6 = scmp.ge.s32.totalorder %s581_s14, 2 }
   0xa   : > { %127 = sbr.rel (%p487_p6) target bundleno = 24 (0x18), region = 24 }
   0xf   : > { %130 = sbr.rel (!%p50_p4) target bundleno = 24 (0x18), region = 28  ;;  %s132_s21 = sand.u32 (%p50_p4), 1, %s577_s13  }
  0x10   : > { %s512_s22 = sshll.u32 (%p50_p4), %s581_s14, 3  ;;  %s516_s23 = smul.u32 (%p50_p4), 72, %s132_s21 }
  0x11   : > { %s137_s26 = scalar_lea.vmem (%p50_p4), %s678_s1, %s512_s22 }
  0x12   : > { %v182_v0 = vld [vmem:[%s137_s26] sm:$0xff] (%p50_p4)  ;;  %v184_v1 = vld [vmem:[%s137_s26 + $0x10] sm:$0xff] (%p50_p4)  ;;  %s134_s27 = scalar_lea.vmem (%p50_p4), [#allocation2], %s516_s23 }
  0x13   : > { %v186_v2 = vld [vmem:[%s137_s26 + $0x20] sm:$0xff] (%p50_p4)  ;;  %v188_v3 = vld [vmem:[%s137_s26 + $0x30] sm:$0xff] (%p50_p4)  ;;  %183 = vst [vmem:[%s134_s27] sm:$0xff] (%p50_p4), %v182_v0  ;;  %185 = vst [vmem:[%s134_s27 + $0x8] sm:$0xff] (%p50_p4), %v184_v1 }
  0x14   : > { %v190_v4 = vld [vmem:[%s137_s26 + $0x40] sm:$0xff]  ;;  %v192_v5 = vld [vmem:[%s137_s26 + $0x50] sm:$0xff]  ;;  %187 = vst [vmem:[%s134_s27 + $0x10] sm:$0xff] %v186_v2  ;;  %189 = vst [vmem:[%s134_s27 + $0x18] sm:$0xff] %v188_v3 }
  0x15   : > { %191 = vst [vmem:[%s134_s27 + $0x20] sm:$0xff] %v190_v4  ;;  %193 = vst [vmem:[%s134_s27 + $0x28] sm:$0xff] %v192_v5  ;;  %v194_v6 = vld [vmem:[%s137_s26 + $0x60] sm:$0xff]  ;;  %v196_v7 = vld [vmem:[%s137_s26 + $0x70] sm:$0xff] }
  0x16   : > { %v198_v8 = vld [vmem:[%s137_s26 + $0x80] sm:$0xff]  ;;  %195 = vst [vmem:[%s134_s27 + $0x30] sm:$0xff] %v194_v6  ;;  %197 = vst [vmem:[%s134_s27 + $0x38] sm:$0xff] %v196_v7 }
  0x17   : > { %199 = vst [vmem:[%s134_s27 + $0x40] sm:$0xff] %v198_v8 }
  0x18 PF: > { %p490_p7 = scmp.ge.s32.totalorder %s581_s14, 1  ;;  %p204_p8 = scmp.lt.s32.totalorder %s581_s14, 3 }
  0x1a   : > { %p205_p9 = pnand %p490_p7, %p204_p8 }
  0x1b   : > { %s211_s28 = sand.u32 (!%p205_p9), 1, %s573_s12  }
  0x1c   : > { %208 = sbr.rel (%p205_p9) target bundleno = 271 (0x10f), region = 66  ;;  %s491_s10 = sshll.u32 (!%p205_p9), %s211_s28, 4 }
  0x1d   : > { %s517_s29 = smul.u32 (!%p205_p9), 72, %s211_s28  ;;  %s232_s11 = scalar_lea.vmem (!%p205_p9), [#allocation3], %s491_s10 }
  0x1f   : > { %s213_s7 = scalar_lea.vmem (!%p205_p9), [#allocation2], %s517_s29 }
  0x21   : > { %v583_v9 = vmov 0   ;;  %v247_v10 = vld [vmem:[%s679_s2] sm:$0xff]  ;;  %v248_v11 = vld [vmem:[%s679_s2 + $0x8] sm:$0xff]  ;;  %vm313_vm0 = vcmask 1043456   ;;  %vm309_vm1 = vcmask 588800   ;;  %s515_s12 = sshll.u32 (%p634_p5), %s484_s15, 3 }
  0x22   : > { %352 = vmatprep.mubr.bf16.mxu0 %v583_v9  ;;  %543 = vset.pattern.permute.xlu0 %v583_v9  ;;  %v246_v12 = vld [vmem:[%s213_s7 + $0x40] sm:$0xff]  ;;  %v546_v15 = vld [vmem:[%s213_s7 + $0x34] ss:$8 sps:$4 sm:$0xff]   ;;  %v548_v17 = vld [vmem:[%s213_s7 + $0x30] ss:$8 sps:$4 sm:$0xff]   ;;  %s390_s21 = scalar_lea.vmem (%p634_p5), %s680_s3, %s515_s12 }
  0x23   : > { %251 = vperm.xlu0 %543, %v247_v10   ;;  %v502_v13 = vcombine.high %v246_v12, %v246_v12  ;;  %v501_v14 = vcombine.low %v246_v12, %v246_v12  ;;  %v549_v18 = vld [vmem:[%s213_s7 + $0x24] ss:$8 sps:$4 sm:$0xff]   ;;  %v551_v19 = vld [vmem:[%s213_s7 + $0x20] ss:$8 sps:$4 sm:$0xff]   ;;  %v552_v20 = vld [vmem:[%s213_s7 + $0x14] ss:$8 sps:$4 sm:$0xff]  }
  0x24   : > { %v554_v21 = vld [vmem:[%s213_s7 + $0x10] ss:$8 sps:$4 sm:$0xff]   ;;  %v555_v22 = vld [vmem:[%s213_s7 + $0x4] ss:$8 sps:$4 sm:$0xff]   ;;  %v557_v23 = vld [vmem:[%s213_s7] ss:$8 sps:$4 sm:$0xff]  }
  0x25   : > { %503 = vmatprep.subr.msk.bf16.mxu0 %vm313_vm0, %v502_v13  ;;  %v315_v16 = vsel %vm313_vm0, %v501_v14, 0  ;;  %v558_v24 = vld [vmem:[%s677_s0] sm:$0xff]  }
  0x26   : > { %327 = vmatpush1.bf16.msra.mxu0 %v315_v16 }
  0x27   : > { %256 = vperm.xlu0 %543, %v248_v11   ;;  %328 = vmatprep.subr.bf16.mxu0 %v546_v15 }
  0x2a   : > { %329 = vmatpush1.bf16.msra.mxu0 %v548_v17 }
  0x2b   : > { %330 = vmatprep.subr.bf16.mxu0 %v549_v18 }
  0x2e   : > { %331 = vmatpush1.bf16.msra.mxu0 %v551_v19 }
  0x2f   : > { %332 = vmatprep.subr.bf16.mxu0 %v552_v20 }
  0x32   : > { %333 = vmatpush1.bf16.msra.mxu0 %v554_v21 }
  0x33   : > { %334 = vmatprep.subr.bf16.mxu0 %v555_v22 }
  0x36   : > { %335 = vmatpush1.bf16.msra.mxu0 %v557_v23 }
  0x39   : > { %504 = vmatmul.mubr.msk.bf16.vlgmr.msra.gmra.mxu0 %vm309_vm1, %v558_v24 }
  0x9e   : > { %v252_v25 = vpop.permute.xlu0 %251 }
  0xa2   : > { %v257_v30 = vpop.permute.xlu0 %256 }
  0xf9   : > { %v354_v26 = vpop.f32.mrf.mxu0 }
  0xfa   : > { %v355_v27 = vadd.f32 %v354_v26, %v252_v25 }
  0xfb   : > { %v356_v28 = vpop.f32.mrf.mxu0 }
  0xfc   : > { %v357_v29 = vadd.f32 %v356_v28, %v252_v25  ;;  %v363_v32 = vmax.f32 %v355_v27, 0.0 }
  0xfd   : > { %v358_v31 = vpop.f32.mrf.mxu0 }
  0xfe   : > { %v364_v33 = vmax.f32 %v357_v29, 0.0  ;;  %v359_v34 = vadd.f32 %v358_v31, %v257_v30 }
  0xff   : > { %v360_v35 = vpop.f32.mrf.mxu0 }
 0x100   : > { %v513_v36 = vpack.c.bf16 %v364_v33, %v363_v32  ;;  %v361_v37 = vadd.f32 %v360_v35, %v257_v30  ;;  %v365_v38 = vmax.f32 %v359_v34, 0.0 }
 0x102   : > { %379 = vst [vmem:[%s232_s11] sm:$0xff] %v513_v36  ;;  %v366_v39 = vmax.f32 %v361_v37, 0.0  ;;  %387 = sbr.rel (!%p634_p5) target bundleno = 271 (0x10f), region = 74 }
 0x104   : > { %v514_v40 = vpack.c.bf16 %v366_v39, %v365_v38 }
 0x106   : > { %380 = vst [vmem:[%s232_s11 + $0x8] sm:$0xff] %v514_v40 }
 0x109   : > { %v421_v41 = vld [vmem:[%s232_s11] sm:$0xff] }
 0x10a   : > { %422 = vst [vmem:[%s390_s21] sm:$0xff] %v421_v41 }
 0x10d   : > { %v423_v42 = vld [vmem:[%s232_s11 + $0x8] sm:$0xff] }
 0x10e   : > { %424 = vst [vmem:[%s390_s21 + $0x10] sm:$0xff] %v423_v42 }
 0x10f PF: > { %p10_p10 = scmp.ge.s32.totalorder %s621_s16, 4   ;;  %s682_s12 = smov %s577_s13 }
 0x110   : > { %s683_s13 = smov %s632_s19  ;;  %s684_s14 = smov %s621_s16 }
 0x111   :  { %12 = sbr.rel (!%p10_p10) target bundleno = 2 (0x2), region = 143 }

// kernel: seg_detector_forward.24
= control target key start
LH: loop header
LB: loop body
LE: loop exit
PB: predicated region body
PF: predicated region fallthrough
CT: control target
= control target key end

     0   :  { %s567_s12 = smov 0   ;;  %s569_s13 = smov 0   ;;  %s649_s0 = inlined_call_operand.vmem [shape: bf16[32,16], index: 0, kind: input, shape index: {}]   ;;  %s650_s1 = inlined_call_operand.vmem [shape: bf16[16,512], index: 1, kind: input, shape index: {}]   ;;  %s651_s2 = inlined_call_operand.vmem [shape: f32[32,1], index: 2, kind: input, shape index: {}]   ;;  %s652_s3 = inlined_call_operand.vmem [shape: bf16[32,512], index: 3, kind: output, shape index: {}]  }
   0x1   :  { %s571_s14 = smov 0  }
   0x2 LB: > { %s457_s15 = sadd.s32 4294967295, %s544_s14   ;;  %s584_s16 = sadd.s32 1, %s544_s14   ;;  %s544_s14 = sphi %s571_s14, %s656_s14   ;;  %s540_s13 = sphi %s569_s13, %s655_s13   ;;  %s536_s12 = sphi %s567_s12, %s654_s12  }
   0x3   : > { %s38_s17 = ssub.s32 %s544_s14, %s584_s16  ;;  %s41_s18 = sadd.s32 1, %s540_s13 }
   0x4   : > { %p39_p0 = scmp.eq.s32.totalorder %s38_s17, 0  ;;  %p48_p1 = scmp.ne.s32.totalorder %s540_s13, %s536_s12 }
   0x5   : > { %p49_p2 = scmp.eq.s32.totalorder %s544_s14, 0  ;;  %p99_p3 = scmp.eq.s32.totalorder %s457_s15, 1 }
   0x6   : > { %s595_s19 = scalar_select %p39_p0, %s540_s13, %s41_s18  }
   0x7   : > { %p50_p4 = por %p49_p2, %p48_p1  ;;  %p597_p5 = por %p99_p3, %p48_p1 }
   0x8   : > { %p460_p6 = scmp.ge.s32.totalorder %s544_s14, 2 }
   0xa   : > { %127 = sbr.rel (%p460_p6) target bundleno = 20 (0x14), region = 24 }
   0xf   : > { %130 = sbr.rel (!%p50_p4) target bundleno = 20 (0x14), region = 28  ;;  %s132_s21 = sand.u32 (%p50_p4), 1, %s540_s13  }
  0x10   : > { %s482_s22 = sshll.u32 (%p50_p4), %s544_s14, 3  ;;  %s461_s23 = sshll.u32 (%p50_p4), %s132_s21, 4 }
  0x11   : > { %s137_s26 = scalar_lea.vmem (%p50_p4), %s650_s1, %s482_s22  ;;  %s134_s27 = scalar_lea.vmem (%p50_p4), [#allocation2], %s461_s23 }
  0x12   : > { %v168_v0 = vld [vmem:[%s137_s26] sm:$0xff] (%p50_p4)  ;;  %v170_v1 = vld [vmem:[%s137_s26 + $0x10] sm:$0xff] (%p50_p4) }
  0x13   : > { %169 = vst [vmem:[%s134_s27] sm:$0xff] (%p50_p4), %v168_v0  ;;  %171 = vst [vmem:[%s134_s27 + $0x8] sm:$0xff] (%p50_p4), %v170_v1 }
  0x14 PF: > { %p464_p7 = scmp.ge.s32.totalorder %s544_s14, 1  ;;  %p176_p8 = scmp.lt.s32.totalorder %s544_s14, 3 }
  0x16   : > { %p177_p9 = pnand %p464_p7, %p176_p8 }
  0x17   : > { %s183_s28 = sand.u32 (!%p177_p9), 1, %s536_s12  }
  0x18   : > { %180 = sbr.rel (%p177_p9) target bundleno = 249 (0xf9), region = 66  ;;  %s465_s29 = sshll.u32 (!%p177_p9), %s183_s28, 4 }
  0x19   : > { %s185_s5 = scalar_lea.vmem (!%p177_p9), [#allocation2], %s465_s29  ;;  %s466_s23 = sshll.u32 (!%p177_p9), %s183_s28, 5 }
  0x1a   : > { %s204_s24 = scalar_lea.vmem (!%p177_p9), [#allocation3], %s466_s23 }
  0x1d   : > { %v546_v2 = vmov 0   ;;  %v216_v3 = vld [vmem:[%s651_s2 + $0x10] sm:$0xff]  ;;  %v214_v6 = vld [vmem:[%s651_s2] sm:$0xff]  ;;  %v217_v7 = vld [vmem:[%s651_s2 + $0x18] sm:$0xff]  ;;  %vm258_vm0 = vcmask 130048   ;;  %s487_s12 = sshll.u32 (%p597_p5), %s457_s15, 3 }
  0x1e   : > { %297 = vmatprep.mubr.bf16.mxu0 %v546_v2  ;;  %307 = vmatprep.mubr.bf16.mxu1 %v546_v2  ;;  %v517_v4 = vld [vmem:[%s185_s5 + $0x4] ss:$8 sps:$4 sm:$0xff]   ;;  %v519_v5 = vld [vmem:[%s185_s5] ss:$8 sps:$4 sm:$0xff]   ;;  %s355_s27 = scalar_lea.vmem (%p597_p5), %s652_s3, %s487_s12 }
  0x1f   : > { %516 = vset.pattern.permute.xlu1 %v546_v2  ;;  %515 = vset.pattern.permute.xlu0 %v546_v2  ;;  %v520_v8 = vld [vmem:[%s649_s0] sm:$0xff]   ;;  %v521_v9 = vld [vmem:[%s649_s0 + $0x8] sm:$0xff]  }
  0x20   : > { %230 = vperm.xlu1 %516, %v216_v3   ;;  %279 = vmatprep.subr.bf16.mxu0 %v517_v4  ;;  %v215_v10 = vld [vmem:[%s651_s2 + $0x8] sm:$0xff] }
  0x21   : > { %488 = vmatprep.subr.bf16.mxu1 %v517_v4  ;;  %280 = vmatpush1.bf16.msra.mxu0 %v519_v5 }
  0x22   : > { %489 = vmatpush1.bf16.msra.mxu1 %v519_v5  ;;  %220 = vperm.xlu0 %515, %v214_v6  }
  0x24   : > { %235 = vperm.xlu1 %516, %v217_v7   ;;  %471 = vmatmul.mubr.msk.bf16.vlgmr.msra.gmra.mxu0 %vm258_vm0, %v520_v8 }
  0x25   : > { %472 = vmatmul.mubr.msk.bf16.vlgmr.msra.gmra.mxu1 %vm258_vm0, %v521_v9 }
  0x26   : > { %225 = vperm.xlu0 %515, %v215_v10  }
  0x9b   : > { %v231_v11 = vpop.permute.xlu1 %230 }
  0x9d   : > { %v221_v12 = vpop.permute.xlu0 %220 }
  0x9f   : > { %v236_v23 = vpop.permute.xlu1 %235 }
  0xa1   : > { %v226_v24 = vpop.permute.xlu0 %225 }
  0xe4   : > { %v299_v13 = vpop.f32.mrf.mxu0 }
  0xe5   : > { %v309_v14 = vpop.f32.mrf.mxu1  ;;  %v300_v17 = vadd.f32 %v299_v13, %v221_v12 }
  0xe6   : > { %v301_v15 = vpop.f32.mrf.mxu0  ;;  %v310_v18 = vadd.f32 %v309_v14, %v231_v11 }
  0xe7   : > { %v311_v16 = vpop.f32.mrf.mxu1  ;;  %v302_v19 = vadd.f32 %v301_v15, %v221_v12 }
  0xe8   : > { %v312_v20 = vadd.f32 %v311_v16, %v231_v11  ;;  %v303_v21 = vpop.f32.mrf.mxu0 }
  0xe9   : > { %v313_v22 = vpop.f32.mrf.mxu1  ;;  %v483_v25 = vpack.c.bf16 %v302_v19, %v300_v17  ;;  %v304_v29 = vadd.f32 %v303_v21, %v226_v24 }
  0xea   : > { %v485_v26 = vpack.c.bf16 %v312_v20, %v310_v18  ;;  %v305_v27 = vpop.f32.mrf.mxu0  ;;  %v314_v30 = vadd.f32 %v313_v22, %v236_v23 }
  0xeb   : > { %v315_v28 = vpop.f32.mrf.mxu1  ;;  %342 = vst [vmem:[%s204_s24] sm:$0xff] %v483_v25  ;;  %v306_v31 = vadd.f32 %v305_v27, %v226_v24 }
  0xec   : > { %344 = vst [vmem:[%s204_s24 + $0x10] sm:$0xff] %v485_v26  ;;  %v316_v32 = vadd.f32 %v315_v28, %v236_v23  ;;  %352 = sbr.rel (!%p597_p5) target bundleno = 249 (0xf9), region = 74 }
  0xed   : > { %v484_v33 = vpack.c.bf16 %v306_v31, %v304_v29 }
  0xee   : > { %v486_v34 = vpack.c.bf16 %v316_v32, %v314_v30 }
  0xef   : > { %343 = vst [vmem:[%s204_s24 + $0x8] sm:$0xff] %v484_v33 }
  0xf0   : > { %345 = vst [vmem:[%s204_s24 + $0x18] sm:$0xff] %v486_v34 }
  0xf2   : > { %v390_v35 = vld [vmem:[%s204_s24] sm:$0xff] }
  0xf3   : > { %v394_v37 = vld [vmem:[%s204_s24 + $0x10] sm:$0xff]  ;;  %391 = vst [vmem:[%s355_s27] sm:$0xff] %v390_v35 }
  0xf4   : > { %395 = vst [vmem:[%s355_s27 + $0x20] sm:$0xff] %v394_v37 }
  0xf6   : > { %v392_v36 = vld [vmem:[%s204_s24 + $0x8] sm:$0xff] }
  0xf7   : > { %v396_v38 = vld [vmem:[%s204_s24 + $0x18] sm:$0xff]  ;;  %393 = vst [vmem:[%s355_s27 + $0x10] sm:$0xff] %v392_v36 }
  0xf8   : > { %397 = vst [vmem:[%s355_s27 + $0x30] sm:$0xff] %v396_v38 }
  0xf9 PF: > { %p10_p10 = scmp.ge.s32.totalorder %s584_s16, 4   ;;  %s654_s12 = smov %s540_s13 }
  0xfa   : > { %s655_s13 = smov %s595_s19  ;;  %s656_s14 = smov %s584_s16 }
  0xfb   :  { %12 = sbr.rel (!%p10_p10) target bundleno = 2 (0x2), region = 143 }

// kernel: seg_detector_forward.18
= control target key start
LH: loop header
LB: loop body
LE: loop exit
PB: predicated region body
PF: predicated region fallthrough
CT: control target
= control target key end

     0   :  { %v287_v0 = vmov 0   ;;  %vm133_vm0 = vcmask 130048   ;;  %s365_s1 = inlined_call_operand.vmem [shape: bf16[144,128], index: 1, kind: input, shape index: {}]   ;;  %s366_s0 = inlined_call_operand.vmem [shape: bf16[32,144], index: 0, kind: input, shape index: {}]   ;;  %s367_s2 = inlined_call_operand.vmem [shape: f32[32,1], index: 2, kind: input, shape index: {}]   ;;  %s368_s3 = inlined_call_operand.vmem [shape: bf16[32,128], index: 3, kind: output, shape index: {}]  }
   0x1   :  { %140 = vmatprep.subr.bf16.mxu0 %v287_v0  ;;  %251 = vmatprep.subr.bf16.mxu1 %v287_v0  ;;  %v272_v1 = vld [vmem:[%s365_s1 + $0x38] sm:$0xff]   ;;  %v273_v2 = vld [vmem:[%s365_s1 + $0x30] sm:$0xff]   ;;  %v274_v3 = vld [vmem:[%s365_s1 + $0x28] sm:$0xff]  }
   0x2   :  { %271 = vset.pattern.permute.xlu1 %v287_v0  ;;  %270 = vset.pattern.permute.xlu0 %v287_v0  ;;  %v275_v4 = vld [vmem:[%s365_s1 + $0x20] sm:$0xff]   ;;  %v286_v6 = vld [vmem:[%s366_s0 + $0x14] ss:$8 sps:$4 sm:$0xff]   ;;  %v38_v11 = vld [vmem:[%s367_s2 + $0x8] sm:$0xff] }
   0x3   :  { %141 = vmatpush1.bf16.msra.mxu0 %v272_v1  ;;  %260 = vmatpush1.bf16.msra.mxu1 %v272_v1  ;;  %v283_v5 = vld [vmem:[%s366_s0 + $0x4] ss:$8 sps:$4 sm:$0xff]   ;;  %v39_v7 = vld [vmem:[%s367_s2 + $0x10] sm:$0xff]  ;;  %v40_v9 = vld [vmem:[%s367_s2 + $0x18] sm:$0xff] }
   0x4   :  { %142 = vmatprep.subr.bf16.mxu0 %v287_v0  ;;  %252 = vmatprep.subr.bf16.mxu1 %v287_v0  ;;  %v37_v8 = vld [vmem:[%s367_s2] sm:$0xff]  ;;  %v276_v10 = vld [vmem:[%s365_s1 + $0x18] sm:$0xff]   ;;  %v277_v12 = vld [vmem:[%s365_s1 + $0x10] sm:$0xff]  }
   0x5   :  { %230 = vmatprep.mubr.msk.bf16.mxu0 %vm133_vm0, %v283_v5  ;;  %53 = vperm.xlu1 %271, %v39_v7   ;;  %v278_v13 = vld [vmem:[%s365_s1 + $0x8] sm:$0xff]   ;;  %v279_v14 = vld [vmem:[%s365_s1] sm:$0xff]   ;;  %v284_v17 = vld [vmem:[%s366_s0 + $0x10] ss:$8 sps:$4 sm:$0xff]  }
   0x6   :  { %231 = vmatprep.mubr.msk.bf16.mxu1 %vm133_vm0, %v286_v6  ;;  %43 = vperm.xlu0 %270, %v37_v8   ;;  %v280_v15 = vld [vmem:[%s365_s1 + $0x40] sm:$0xff]  }
   0x7   :  { %143 = vmatpush1.bf16.msra.mxu0 %v273_v2  ;;  %261 = vmatpush1.bf16.msra.mxu1 %v273_v2  ;;  %v281_v16 = vld [vmem:[%s366_s0] ss:$8 sps:$4 sm:$0xff]  }
   0x8   :  { %144 = vmatprep.subr.bf16.mxu0 %v287_v0  ;;  %253 = vmatprep.subr.bf16.mxu1 %v287_v0 }
   0x9   :  { %58 = vperm.xlu1 %271, %v40_v9  }
   0xa   :  { %48 = vperm.xlu0 %270, %v38_v11  }
   0xb   :  { %145 = vmatpush1.bf16.msra.mxu0 %v274_v3  ;;  %262 = vmatpush1.bf16.msra.mxu1 %v274_v3 }
   0xc   :  { %146 = vmatprep.subr.bf16.mxu0 %v287_v0  ;;  %254 = vmatprep.subr.bf16.mxu1 %v287_v0 }
   0xf   :  { %147 = vmatpush1.bf16.msra.mxu0 %v275_v4  ;;  %263 = vmatpush1.bf16.msra.mxu1 %v275_v4 }
  0x10   :  { %148 = vmatprep.subr.bf16.mxu0 %v287_v0  ;;  %255 = vmatprep.subr.bf16.mxu1 %v287_v0 }
  0x13   :  { %149 = vmatpush1.bf16.msra.mxu0 %v276_v10  ;;  %264 = vmatpush1.bf16.msra.mxu1 %v276_v10 }
  0x14   :  { %150 = vmatprep.subr.bf16.mxu0 %v287_v0  ;;  %256 = vmatprep.subr.bf16.mxu1 %v287_v0 }
  0x17   :  { %151 = vmatpush1.bf16.msra.mxu0 %v277_v12  ;;  %265 = vmatpush1.bf16.msra.mxu1 %v277_v12 }
  0x18   :  { %152 = vmatprep.subr.bf16.mxu0 %v287_v0  ;;  %257 = vmatprep.subr.bf16.mxu1 %v287_v0 }
  0x1b   :  { %153 = vmatpush1.bf16.msra.mxu0 %v278_v13  ;;  %266 = vmatpush1.bf16.msra.mxu1 %v278_v13 }
  0x1c   :  { %154 = vmatprep.subr.bf16.mxu0 %v287_v0  ;;  %258 = vmatprep.subr.bf16.mxu1 %v287_v0 }
  0x1f   :  { %155 = vmatpush1.bf16.msra.mxu0 %v279_v14  ;;  %267 = vmatpush1.bf16.msra.mxu1 %v279_v14 }
  0x20   :  { %170 = vmatprep.subr.bf16.mxu0 %v287_v0  ;;  %259 = vmatprep.subr.bf16.mxu1 %v287_v0 }
  0x23   :  { %171 = vmatpush2.bf16.msra.mxu0 %v280_v15  ;;  %268 = vmatpush2.bf16.msra.mxu1 %v280_v15 }
  0x26   :  { %173 = vmatmul.mubr.bf16.vlgmr.msra.gmra.mxu0 %v281_v16  ;;  %181 = vmatmul.mubr.bf16.vlgmr.msra.gmra.mxu1 %v284_v17 }
  0x80   :  { %v54_v18 = vpop.permute.xlu1 %53 }
  0x81   :  { %v44_v19 = vpop.permute.xlu0 %43 }
  0x84   :  { %v59_v24 = vpop.permute.xlu1 %58 }
  0x85   :  { %v49_v25 = vpop.permute.xlu0 %48 }
  0xe6   :  { %v174_v20 = vpop.f32.mrf.mxu0  ;;  %v182_v21 = vpop.f32.mrf.mxu1 }
  0xe7   :  { %v175_v26 = vadd.f32 %v174_v20, %v44_v19  ;;  %v183_v27 = vadd.f32 %v182_v21, %v54_v18 }
  0xe8   :  { %v176_v22 = vpop.f32.mrf.mxu0  ;;  %v184_v23 = vpop.f32.mrf.mxu1 }
  0xe9   :  { %v189_v34 = vmax.f32 %v175_v26, 0.0  ;;  %v191_v35 = vmax.f32 %v183_v27, 0.0 }
  0xea   :  { %v177_v28 = vpop.f32.mrf.mxu0  ;;  %v185_v29 = vpop.f32.mrf.mxu1 }
  0xeb   :  { %v178_v30 = vadd.f32 %v177_v28, %v49_v25  ;;  %v186_v31 = vadd.f32 %v185_v29, %v59_v24 }
  0xec   :  { %v179_v32 = vpop.f32.mrf.mxu0  ;;  %v187_v33 = vpop.f32.mrf.mxu1 }
  0xed   :  { %v190_v36 = vmax.f32 %v178_v30, 0.0  ;;  %v192_v37 = vmax.f32 %v186_v31, 0.0 }
  0xef   :  { %v243_v38 = vpack.c.bf16 %v190_v36, %v189_v34  ;;  %v248_v39 = vpack.c.bf16 %v192_v37, %v191_v35 }
  0xf1   :  { %244 = vst [vmem:[%s368_s3] sm:$0xff] %v243_v38   ;;  %250 = vst [vmem:[%s368_s3 + $0x8] sm:$0xff] %v248_v39  }

// kernel: seg_detector_forward.23
= control target key start
LH: loop header
LB: loop body
LE: loop exit
PB: predicated region body
PF: predicated region fallthrough
CT: control target
= control target key end

     0   :  { %v193_v1 = vmov 0   ;;  %vm69_vm0 = vcmask 261120   ;;  %s246_s1 = inlined_call_operand.vmem [shape: bf16[32,128], index: 1, kind: input, shape index: {}]   ;;  %s247_s0 = inlined_call_operand.vmem [shape: bf16[32,32], index: 0, kind: input, shape index: {}]   ;;  %s248_s2 = inlined_call_operand.vmem [shape: f32[32,1], index: 2, kind: input, shape index: {}]   ;;  %s249_s3 = inlined_call_operand.vmem [shape: bf16[32,128], index: 3, kind: output, shape index: {}]  }
   0x1   :  { %v189_v0 = vld [vmem:[%s246_s1 + $0x8] sm:$0xff]   ;;  %188 = vset.pattern.permute.xlu1 %v193_v1  ;;  %187 = vset.pattern.permute.xlu0 %v193_v1  ;;  %v190_v2 = vld [vmem:[%s246_s1] sm:$0xff]   ;;  %v25_v4 = vld [vmem:[%s248_s2 + $0x10] sm:$0xff] }
   0x2   :  { %178 = vmatprep.subr.bf16.mxu0 %v189_v0  ;;  %v191_v3 = vld [vmem:[%s247_s0] sm:$0xff]   ;;  %39 = vperm.xlu1 %188, %v25_v4   ;;  %v192_v6 = vld [vmem:[%s247_s0 + $0x8] sm:$0xff]   ;;  %v26_v7 = vld [vmem:[%s248_s2 + $0x18] sm:$0xff] }
   0x3   :  { %179 = vmatpush3.bf16.msra.mxu0 %v189_v0  ;;  %182 = vmatprep.mubr.msk.bf16.mxu0 %vm69_vm0, %v191_v3  ;;  %v23_v5 = vld [vmem:[%s248_s2] sm:$0xff]  ;;  %v24_v8 = vld [vmem:[%s248_s2 + $0x8] sm:$0xff] }
   0x4   :  { %180 = vmatprep.subr.bf16.mxu0 %v190_v2  ;;  %29 = vperm.xlu0 %187, %v23_v5  }
   0x6   :  { %44 = vperm.xlu1 %188, %v26_v7  }
   0x7   :  { %181 = vmatpush3.bf16.msra.mxu0 %v190_v2 }
   0x8   :  { %34 = vperm.xlu0 %187, %v24_v8  }
   0xa   :  { %183 = vmatmul.mubr.msk.bf16.vlgmr.msra.gmra.mxu0 %vm69_vm0, %v192_v6 }
  0x7d   :  { %v40_v9 = vpop.permute.xlu1 %39 }
  0x7f   :  { %v30_v10 = vpop.permute.xlu0 %29 }
  0x81   :  { %v45_v13 = vpop.permute.xlu1 %44 }
  0x83   :  { %v35_v17 = vpop.permute.xlu0 %34 }
  0xca   :  { %v184_v11 = vpop.f32.mrf.mxu0 }
  0xcb   :  { %v119_v15 = vadd.f32 %v184_v11, %v40_v9 }
  0xcc   :  { %v110_v12 = vpop.f32.mrf.mxu0 }
  0xcd   :  { %v111_v19 = vadd.f32 %v110_v12, %v30_v10 }
  0xce   :  { %v185_v14 = vpop.f32.mrf.mxu0 }
  0xcf   :  { %v122_v16 = vadd.f32 %v185_v14, %v45_v13 }
  0xd0   :  { %v113_v18 = vpop.f32.mrf.mxu0 }
  0xd1   :  { %v171_v20 = vpack.c.bf16 %v122_v16, %v119_v15  ;;  %v114_v21 = vadd.f32 %v113_v18, %v35_v17 }
  0xd3   :  { %173 = vst [vmem:[%s249_s3 + $0x8] sm:$0xff] %v171_v20   ;;  %v166_v22 = vpack.c.bf16 %v114_v21, %v111_v19 }
  0xd5   :  { %167 = vst [vmem:[%s249_s3] sm:$0xff] %v166_v22  }

// kernel: seg_detector_forward.22
= control target key start
LH: loop header
LB: loop body
LE: loop exit
PB: predicated region body
PF: predicated region fallthrough
CT: control target
= control target key end

     0   :  { %v209_v1 = vmov 0   ;;  %vm85_vm0 = vcmask 523264   ;;  %vm157_vm1 = vcmask 257024   ;;  %s278_s1 = inlined_call_operand.vmem [shape: bf16[64,32], index: 1, kind: input, shape index: {}]   ;;  %s279_s0 = inlined_call_operand.vmem [shape: bf16[32,64], index: 0, kind: input, shape index: {}]   ;;  %s280_s2 = inlined_call_operand.vmem [shape: f32[32,1], index: 2, kind: input, shape index: {}]   ;;  %s281_s3 = inlined_call_operand.vmem [shape: bf16[32,32], index: 3, kind: output, shape index: {}]  }
   0x1   :  { %v203_v0 = vld [vmem:[%s278_s1 + $0x18] sm:$0xff]   ;;  %202 = vset.pattern.permute.xlu1 %v209_v1  ;;  %201 = vset.pattern.permute.xlu0 %v209_v1  ;;  %v204_v2 = vld [vmem:[%s278_s1 + $0x10] sm:$0xff]   ;;  %v205_v3 = vld [vmem:[%s278_s1 + $0x8] sm:$0xff]  }
   0x2   :  { %188 = vmatprep.subr.bf16.mxu0 %v203_v0  ;;  %v207_v4 = vld [vmem:[%s279_s0] sm:$0xff]   ;;  %v29_v5 = vld [vmem:[%s280_s2 + $0x10] sm:$0xff]  ;;  %v30_v8 = vld [vmem:[%s280_s2 + $0x18] sm:$0xff] }
   0x3   :  { %189 = vmatpush3.bf16.msra.mxu0 %v203_v0  ;;  %196 = vmatprep.mubr.msk.bf16.mxu0 %vm85_vm0, %v207_v4  ;;  %v27_v6 = vld [vmem:[%s280_s2] sm:$0xff]  ;;  %v28_v9 = vld [vmem:[%s280_s2 + $0x8] sm:$0xff] }
   0x4   :  { %190 = vmatprep.subr.bf16.mxu0 %v204_v2  ;;  %43 = vperm.xlu1 %202, %v29_v5   ;;  %v206_v7 = vld [vmem:[%s278_s1] sm:$0xff]   ;;  %v208_v10 = vld [vmem:[%s279_s0 + $0x8] sm:$0xff]  }
   0x5   :  { %33 = vperm.xlu0 %201, %v27_v6  }
   0x7   :  { %191 = vmatpush3.bf16.msra.mxu0 %v204_v2 }
   0x8   :  { %192 = vmatprep.subr.bf16.mxu0 %v205_v3  ;;  %48 = vperm.xlu1 %202, %v30_v8  }
   0x9   :  { %38 = vperm.xlu0 %201, %v28_v9  }
   0xb   :  { %193 = vmatpush3.bf16.msra.mxu0 %v205_v3 }
   0xc   :  { %194 = vmatprep.subr.bf16.mxu0 %v206_v7 }
   0xf   :  { %195 = vmatpush3.bf16.msra.mxu0 %v206_v7 }
  0x12   :  { %197 = vmatmul.mubr.msk.bf16.vlgmr.msra.gmra.mxu0 %vm85_vm0, %v208_v10 }
  0x7f   :  { %v44_v11 = vpop.permute.xlu1 %43 }
  0x80   :  { %v34_v12 = vpop.permute.xlu0 %33 }
  0x83   :  { %v49_v18 = vpop.permute.xlu1 %48 }
  0x84   :  { %v39_v22 = vpop.permute.xlu0 %38 }
  0xd2   :  { %v198_v13 = vpop.f32.mrf.mxu0 }
  0xd3   :  { %v135_v14 = vadd.f32 %v198_v13, %v44_v11 }
  0xd4   :  { %v126_v15 = vpop.f32.mrf.mxu0 }
  0xd5   :  { %v180_v16 = vpack.c.bf16 %v135_v14, %v135_v14  ;;  %v127_v17 = vadd.f32 %v126_v15, %v34_v12 }
  0xd6   :  { %v199_v19 = vpop.f32.mrf.mxu0 }
  0xd7   :  { %160 = vst.msk [vmem:[%s281_s3 + $0x8] sm:$0xf] %vm157_vm1, %v180_v16  ;;  %v178_v20 = vpack.c.bf16 %v127_v17, %v127_v17  ;;  %v138_v21 = vadd.f32 %v199_v19, %v49_v18 }
  0xd8   :  { %v129_v23 = vpop.f32.mrf.mxu0 }
  0xd9   :  { %158 = vst.msk [vmem:[%s281_s3] sm:$0xf] %vm157_vm1, %v178_v20  ;;  %v181_v24 = vpack.c.bf16 %v138_v21, %v138_v21  ;;  %v130_v25 = vadd.f32 %v129_v23, %v39_v22 }
  0xdb   :  { %161 = vst.msk [vmem:[%s281_s3 + $0xc] sm:$0xf] %vm157_vm1, %v181_v24  ;;  %v179_v26 = vpack.c.bf16 %v130_v25, %v130_v25 }
  0xdd   :  { %159 = vst.msk [vmem:[%s281_s3 + $0x4] sm:$0xf] %vm157_vm1, %v179_v26 }

// kernel: seg_detector_forward.19
= control target key start
LH: loop header
LB: loop body
LE: loop exit
PB: predicated region body
PF: predicated region fallthrough
CT: control target
= control target key end

     0   :  { %v640_v1 = vmov 0   ;;  %vm283_vm0 = vcmask 261120   ;;  %vm466_vm1 = vcmask 257024   ;;  %s811_s1 = inlined_call_operand.vmem [shape: bf16[288,32], index: 1, kind: input, shape index: {}]   ;;  %s812_s0 = inlined_call_operand.vmem [shape: bf16[64,288], index: 0, kind: input, shape index: {}]   ;;  %s813_s2 = inlined_call_operand.vmem [shape: f32[64,1], index: 2, kind: input, shape index: {}]   ;;  %s814_s3 = inlined_call_operand.vmem [shape: bf16[64,32], index: 3, kind: output, shape index: {}]  }
   0x1   :  { %v606_v0 = vld [vmem:[%s811_s1 + $0x78] sm:$0xff]   ;;  %604 = vset.pattern.permute.xlu0 %v640_v1  ;;  %605 = vset.pattern.permute.xlu1 %v640_v1  ;;  %v608_v3 = vld [vmem:[%s811_s1 + $0x70] sm:$0xff]   ;;  %v610_v5 = vld [vmem:[%s811_s1 + $0x68] sm:$0xff]  }
   0x2   :  { %v607_v2 = vld [vmem:[%s811_s1 + $0x38] sm:$0xff]   ;;  %529 = vmatprep.subr.bf16.mxu0 %v606_v0  ;;  %587 = vmatprep.subr.bf16.mxu1 %v606_v0  ;;  %v609_v4 = vld [vmem:[%s811_s1 + $0x30] sm:$0xff]   ;;  %v611_v6 = vld [vmem:[%s811_s1 + $0x28] sm:$0xff]  }
   0x3   :  { %530 = vmatpush3.bf16.msra.mxu0 %v607_v2  ;;  %595 = vmatpush3.bf16.msra.mxu1 %v607_v2  ;;  %v612_v7 = vld [vmem:[%s811_s1 + $0x60] sm:$0xff]   ;;  %v614_v9 = vld [vmem:[%s811_s1 + $0x58] sm:$0xff]   ;;  %v616_v11 = vld [vmem:[%s811_s1 + $0x50] sm:$0xff]  }
   0x4   :  { %531 = vmatprep.subr.bf16.mxu0 %v608_v3  ;;  %588 = vmatprep.subr.bf16.mxu1 %v608_v3  ;;  %v613_v8 = vld [vmem:[%s811_s1 + $0x20] sm:$0xff]   ;;  %v615_v10 = vld [vmem:[%s811_s1 + $0x18] sm:$0xff]   ;;  %v617_v14 = vld [vmem:[%s811_s1 + $0x10] sm:$0xff]  }
   0x5   :  { %v624_v12 = vld [vmem:[%s812_s0 + $0x4] ss:$12 sps:$4 sm:$0xff]   ;;  %v627_v13 = vld [vmem:[%s812_s0 + $0x4c] ss:$12 sps:$4 sm:$0xff]   ;;  %v625_v23 = vld [vmem:[%s812_s0 + $0x48] ss:$12 sps:$4 sm:$0xff]  }
   0x6   :  { %v618_v15 = vld [vmem:[%s811_s1 + $0x48] sm:$0xff]   ;;  %328 = vmatprep.mubr.bf16.mxu0 %v624_v12  ;;  %352 = vmatprep.mubr.bf16.mxu1 %v627_v13  ;;  %v620_v17 = vld [vmem:[%s811_s1 + $0x40] sm:$0xff]   ;;  %v69_v20 = vld [vmem:[%s813_s2 + $0x10] sm:$0xff] }
   0x7   :  { %532 = vmatpush3.bf16.msra.mxu0 %v609_v4  ;;  %596 = vmatpush3.bf16.msra.mxu1 %v609_v4  ;;  %v619_v16 = vld [vmem:[%s811_s1 + $0x8] sm:$0xff]   ;;  %v621_v18 = vld [vmem:[%s811_s1] sm:$0xff]   ;;  %v70_v25 = vld [vmem:[%s813_s2 + $0x18] sm:$0xff] }
   0x8   :  { %533 = vmatprep.subr.bf16.mxu0 %v610_v5  ;;  %589 = vmatprep.subr.bf16.mxu1 %v610_v5  ;;  %v67_v19 = vld [vmem:[%s813_s2] sm:$0xff]  ;;  %v628_v21 = vld [vmem:[%s811_s1 + $0x88] sm:$0xff]   ;;  %v73_v33 = vld [vmem:[%s813_s2 + $0x30] sm:$0xff] }
   0x9   :  { %v622_v22 = vld [vmem:[%s812_s0] ss:$12 sps:$4 sm:$0xff]   ;;  %77 = vperm.xlu0 %604, %v67_v19   ;;  %87 = vperm.xlu1 %605, %v69_v20   ;;  %v630_v26 = vld [vmem:[%s812_s0 + $0x1c] ss:$12 sps:$4 sm:$0xff]   ;;  %v633_v31 = vld [vmem:[%s812_s0 + $0x18] ss:$12 sps:$4 sm:$0xff]  }
   0xa   :  { %v68_v24 = vld [vmem:[%s813_s2 + $0x8] sm:$0xff]  ;;  %v629_v27 = vld [vmem:[%s811_s1 + $0x80] sm:$0xff]   ;;  %v74_v34 = vld [vmem:[%s813_s2 + $0x38] sm:$0xff] }
   0xb   :  { %534 = vmatpush3.bf16.msra.mxu0 %v611_v6  ;;  %597 = vmatpush3.bf16.msra.mxu1 %v611_v6  ;;  %v632_v28 = vld [vmem:[%s812_s0 + $0x8] ss:$12 sps:$4 sm:$0xff]   ;;  %v71_v29 = vld [vmem:[%s813_s2 + $0x20] sm:$0xff]  ;;  %v638_v37 = vld [vmem:[%s812_s0 + $0x30] ss:$12 sps:$4 sm:$0xff]  }
   0xc   :  { %535 = vmatprep.subr.bf16.mxu0 %v612_v7  ;;  %590 = vmatprep.subr.bf16.mxu1 %v612_v7  ;;  %v72_v30 = vld [vmem:[%s813_s2 + $0x28] sm:$0xff]  ;;  %v635_v35 = vld [vmem:[%s812_s0 + $0x34] ss:$12 sps:$4 sm:$0xff]   ;;  %v637_v36 = vld [vmem:[%s812_s0 + $0x38] ss:$12 sps:$4 sm:$0xff]  }
   0xd   :  { %82 = vperm.xlu0 %604, %v68_v24   ;;  %92 = vperm.xlu1 %605, %v70_v25   ;;  %v634_v32 = vld [vmem:[%s812_s0 + $0x20] ss:$12 sps:$4 sm:$0xff]   ;;  %v639_v38 = vld [vmem:[%s812_s0 + $0x50] ss:$12 sps:$4 sm:$0xff]  }
   0xf   :  { %536 = vmatpush3.bf16.msra.mxu0 %v613_v8  ;;  %598 = vmatpush3.bf16.msra.mxu1 %v613_v8 }
  0x10   :  { %537 = vmatprep.subr.bf16.mxu0 %v614_v9  ;;  %591 = vmatprep.subr.bf16.mxu1 %v614_v9 }
  0x11   :  { %97 = vperm.xlu0 %604, %v71_v29   ;;  %102 = vperm.xlu1 %605, %v72_v30  }
  0x13   :  { %538 = vmatpush3.bf16.msra.mxu0 %v615_v10  ;;  %599 = vmatpush3.bf16.msra.mxu1 %v615_v10 }
  0x14   :  { %539 = vmatprep.subr.bf16.mxu0 %v616_v11  ;;  %592 = vmatprep.subr.bf16.mxu1 %v616_v11 }
  0x15   :  { %107 = vperm.xlu0 %604, %v73_v33   ;;  %112 = vperm.xlu1 %605, %v74_v34  }
  0x17   :  { %540 = vmatpush3.bf16.msra.mxu0 %v617_v14  ;;  %600 = vmatpush3.bf16.msra.mxu1 %v617_v14 }
  0x18   :  { %541 = vmatprep.subr.bf16.mxu0 %v618_v15  ;;  %593 = vmatprep.subr.bf16.mxu1 %v618_v15 }
  0x1b   :  { %542 = vmatpush3.bf16.msra.mxu0 %v619_v16  ;;  %601 = vmatpush3.bf16.msra.mxu1 %v619_v16 }
  0x1c   :  { %543 = vmatprep.subr.bf16.mxu0 %v620_v17  ;;  %594 = vmatprep.subr.bf16.mxu1 %v620_v17 }
  0x1f   :  { %544 = vmatpush3.bf16.msra.mxu0 %v621_v18  ;;  %602 = vmatpush3.bf16.msra.mxu1 %v621_v18 }
  0x20   :  { %575 = vmatprep.subr.bf16.mxu1 %v628_v21 }
  0x22   :  { %329 = vmatmul.mubr.bf16.vlgmr.msra.gmra.mxu0 %v622_v22  ;;  %353 = vmatmul.mubr.bf16.vlgmr.msra.gmra.mxu1 %v625_v23 }
  0x23   :  { %576 = vmatpush3.bf16.msra.mxu1 %v628_v21  ;;  %336 = vmatprep.mubr.bf16.mxu0 %v630_v26 }
  0x24   :  { %577 = vmatprep.subr.bf16.mxu1 %v629_v27  ;;  %579 = vmatprep.mubr.msk.bf16.mxu1 %vm283_vm0, %v632_v28 }
  0x27   :  { %578 = vmatpush3.bf16.msra.mxu1 %v629_v27 }
  0x2a   :  { %337 = vmatmul.mubr.bf16.gmra.mxu0 %v633_v31  ;;  %580 = vmatmul.mubr.msk.bf16.vlgmr.msra.gmra.mxu1 %vm283_vm0, %v634_v32 }
  0x2b   :  { %344 = vmatprep.mubr.bf16.mxu0 %v635_v35  ;;  %583 = vmatprep.mubr.msk.bf16.mxu1 %vm283_vm0, %v637_v36 }
  0x32   :  { %345 = vmatmul.mubr.bf16.gmra.mxu0 %v638_v37  ;;  %584 = vmatmul.mubr.msk.bf16.gmra.mxu1 %vm283_vm0, %v639_v38 }
  0x84   :  { %v78_v39 = vpop.permute.xlu0 %77  ;;  %v88_v40 = vpop.permute.xlu1 %87 }
  0x88   :  { %v83_v41 = vpop.permute.xlu0 %82  ;;  %v93_v46 = vpop.permute.xlu1 %92 }
  0x8c   :  { %v98_v49 = vpop.permute.xlu0 %97  ;;  %v103_v55 = vpop.permute.xlu1 %102 }
  0x90   :  { %v108_v61 = vpop.permute.xlu0 %107  ;;  %v113_v9 = vpop.permute.xlu1 %112 }
  0xe2   :  { %v545_v42 = vpop.f32.mrf.mxu0  ;;  %v563_v43 = vpop.f32.mrf.mxu1 }
  0xe4   :  { %v546_v44 = vpop.f32.mrf.mxu0  ;;  %v564_v45 = vpop.f32.mrf.mxu1 }
  0xe5   :  { %v547_v50 = vadd.f32 %v546_v44, %v545_v42  ;;  %v565_v58 = vadd.f32 %v564_v45, %v563_v43 }
  0xe6   :  { %v548_v47 = vpop.f32.mrf.mxu0  ;;  %v566_v48 = vpop.f32.mrf.mxu1 }
  0xe7   :  { %v331_v57 = vadd.f32 %v547_v50, %v78_v39  ;;  %v355_v5 = vadd.f32 %v565_v58, %v108_v61 }
  0xe8   :  { %v549_v51 = vpop.f32.mrf.mxu0  ;;  %v567_v52 = vpop.f32.mrf.mxu1 }
  0xe9   :  { %v550_v56 = vadd.f32 %v549_v51, %v548_v47  ;;  %v568_v6 = vadd.f32 %v567_v52, %v566_v48 }
  0xea   :  { %v551_v53 = vpop.f32.mrf.mxu0  ;;  %v581_v54 = vpop.f32.mrf.mxu1 }
  0xeb   :  { %v334_v4 = vadd.f32 %v550_v56, %v83_v41  ;;  %v358_v20 = vadd.f32 %v568_v6, %v113_v9 }
  0xec   :  { %v552_v59 = vpop.f32.mrf.mxu0  ;;  %v395_v60 = vpop.f32.mrf.mxu1 }
  0xed   :  { %v553_v62 = vadd.f32 %v552_v59, %v551_v53  ;;  %v396_v63 = vadd.f32 %v395_v60, %v331_v57 }
  0xee   :  { %v554_v0 = vpop.f32.mrf.mxu0  ;;  %v582_v1 = vpop.f32.mrf.mxu1 }
  0xef   :  { %v339_v2 = vadd.f32 %v553_v62, %v88_v40  ;;  %v426_v3 = vmax.f32 %v396_v63, 0.0 }
  0xf0   :  { %v555_v7 = vpop.f32.mrf.mxu0  ;;  %v398_v8 = vpop.f32.mrf.mxu1 }
  0xf1   :  { %v404_v10 = vadd.f32 %v581_v54, %v339_v2  ;;  %v521_v11 = vpack.c.bf16 %v426_v3, %v426_v3  ;;  %v556_v12 = vadd.f32 %v555_v7, %v554_v0  ;;  %v399_v13 = vadd.f32 %v398_v8, %v334_v4 }
  0xf2   :  { %v557_v14 = vpop.f32.mrf.mxu0  ;;  %v585_v15 = vpop.f32.mrf.mxu1 }
  0xf3   :  { %v428_v16 = vmax.f32 %v404_v10, 0.0  ;;  %467 = vst.msk [vmem:[%s814_s3] sm:$0xf] %vm466_vm1, %v521_v11  ;;  %v342_v17 = vadd.f32 %v556_v12, %v93_v46  ;;  %v427_v18 = vmax.f32 %v399_v13, 0.0  ;;  %v420_v19 = vadd.f32 %v585_v15, %v355_v5 }
  0xf4   :  { %v558_v21 = vpop.f32.mrf.mxu0  ;;  %v411_v22 = vpop.f32.mrf.mxu1 }
  0xf5   :  { %v523_v23 = vpack.c.bf16 %v428_v16, %v428_v16  ;;  %v407_v24 = vadd.f32 %v582_v1, %v342_v17  ;;  %v522_v25 = vpack.c.bf16 %v427_v18, %v427_v18  ;;  %v432_v26 = vmax.f32 %v420_v19, 0.0 }
  0xf6   :  { %v559_v27 = vadd.f32 %v558_v21, %v557_v14  ;;  %v560_v28 = vpop.f32.mrf.mxu0  ;;  %v586_v29 = vpop.f32.mrf.mxu1 }
  0xf7   :  { %469 = vst.msk [vmem:[%s814_s3 + $0x8] sm:$0xf] %vm466_vm1, %v523_v23  ;;  %v429_v30 = vmax.f32 %v407_v24, 0.0  ;;  %468 = vst.msk [vmem:[%s814_s3 + $0x4] sm:$0xf] %vm466_vm1, %v522_v25  ;;  %v527_v31 = vpack.c.bf16 %v432_v26, %v432_v26  ;;  %v423_v32 = vadd.f32 %v586_v29, %v358_v20 }
  0xf8   :  { %v347_v33 = vadd.f32 %v559_v27, %v98_v49  ;;  %v561_v34 = vpop.f32.mrf.mxu0  ;;  %v414_v42 = vpop.f32.mrf.mxu1 }
  0xf9   :  { %v524_v35 = vpack.c.bf16 %v429_v30, %v429_v30  ;;  %473 = vst.msk [vmem:[%s814_s3 + $0x18] sm:$0xf] %vm466_vm1, %v527_v31  ;;  %v433_v36 = vmax.f32 %v423_v32, 0.0  ;;  %v562_v37 = vadd.f32 %v561_v34, %v560_v28 }
  0xfa   :  { %v412_v38 = vadd.f32 %v411_v22, %v347_v33 }
  0xfb   :  { %470 = vst.msk [vmem:[%s814_s3 + $0xc] sm:$0xf] %vm466_vm1, %v524_v35  ;;  %v528_v39 = vpack.c.bf16 %v433_v36, %v433_v36  ;;  %v350_v40 = vadd.f32 %v562_v37, %v103_v55 }
  0xfc   :  { %v430_v41 = vmax.f32 %v412_v38, 0.0 }
  0xfd   :  { %474 = vst.msk [vmem:[%s814_s3 + $0x1c] sm:$0xf] %vm466_vm1, %v528_v39  ;;  %v415_v43 = vadd.f32 %v414_v42, %v350_v40 }
  0xfe   :  { %v525_v44 = vpack.c.bf16 %v430_v41, %v430_v41 }
  0xff   :  { %v431_v45 = vmax.f32 %v415_v43, 0.0 }
 0x100   :  { %471 = vst.msk [vmem:[%s814_s3 + $0x10] sm:$0xf] %vm466_vm1, %v525_v44 }
 0x101   :  { %v526_v46 = vpack.c.bf16 %v431_v45, %v431_v45 }
 0x103   :  { %472 = vst.msk [vmem:[%s814_s3 + $0x14] sm:$0xf] %vm466_vm1, %v526_v46 }

// kernel: seg_detector_forward.21
= control target key start
LH: loop header
LB: loop body
LE: loop exit
PB: predicated region body
PF: predicated region fallthrough
CT: control target
= control target key end

     0   :  { %v209_v1 = vmov 0   ;;  %vm85_vm0 = vcmask 523264   ;;  %vm157_vm1 = vcmask 60416   ;;  %s278_s1 = inlined_call_operand.vmem [shape: bf16[64,8], index: 1, kind: input, shape index: {}]   ;;  %s279_s0 = inlined_call_operand.vmem [shape: bf16[32,64], index: 0, kind: input, shape index: {}]   ;;  %s280_s2 = inlined_call_operand.vmem [shape: f32[32,1], index: 2, kind: input, shape index: {}]   ;;  %s281_s3 = inlined_call_operand.vmem [shape: bf16[32,8], index: 3, kind: output, shape index: {}]  }
   0x1   :  { %v203_v0 = vld [vmem:[%s278_s1 + $0x18] sm:$0xff]   ;;  %202 = vset.pattern.permute.xlu1 %v209_v1  ;;  %201 = vset.pattern.permute.xlu0 %v209_v1  ;;  %v204_v2 = vld [vmem:[%s278_s1 + $0x10] sm:$0xff]   ;;  %v205_v3 = vld [vmem:[%s278_s1 + $0x8] sm:$0xff]  }
   0x2   :  { %188 = vmatprep.subr.bf16.mxu0 %v203_v0  ;;  %v207_v4 = vld [vmem:[%s279_s0] sm:$0xff]   ;;  %v29_v5 = vld [vmem:[%s280_s2 + $0x10] sm:$0xff]  ;;  %v30_v8 = vld [vmem:[%s280_s2 + $0x18] sm:$0xff] }
   0x3   :  { %189 = vmatpush3.bf16.msra.mxu0 %v203_v0  ;;  %196 = vmatprep.mubr.msk.bf16.mxu0 %vm85_vm0, %v207_v4  ;;  %v27_v6 = vld [vmem:[%s280_s2] sm:$0xff]  ;;  %v28_v9 = vld [vmem:[%s280_s2 + $0x8] sm:$0xff] }
   0x4   :  { %190 = vmatprep.subr.bf16.mxu0 %v204_v2  ;;  %43 = vperm.xlu1 %202, %v29_v5   ;;  %v206_v7 = vld [vmem:[%s278_s1] sm:$0xff]   ;;  %v208_v10 = vld [vmem:[%s279_s0 + $0x8] sm:$0xff]  }
   0x5   :  { %33 = vperm.xlu0 %201, %v27_v6  }
   0x7   :  { %191 = vmatpush3.bf16.msra.mxu0 %v204_v2 }
   0x8   :  { %192 = vmatprep.subr.bf16.mxu0 %v205_v3  ;;  %48 = vperm.xlu1 %202, %v30_v8  }
   0x9   :  { %38 = vperm.xlu0 %201, %v28_v9  }
   0xb   :  { %193 = vmatpush3.bf16.msra.mxu0 %v205_v3 }
   0xc   :  { %194 = vmatprep.subr.bf16.mxu0 %v206_v7 }
   0xf   :  { %195 = vmatpush3.bf16.msra.mxu0 %v206_v7 }
  0x12   :  { %197 = vmatmul.mubr.msk.bf16.vlgmr.msra.gmra.mxu0 %vm85_vm0, %v208_v10 }
  0x7f   :  { %v44_v11 = vpop.permute.xlu1 %43 }
  0x80   :  { %v34_v12 = vpop.permute.xlu0 %33 }
  0x83   :  { %v49_v18 = vpop.permute.xlu1 %48 }
  0x84   :  { %v39_v22 = vpop.permute.xlu0 %38 }
  0xd2   :  { %v198_v13 = vpop.f32.mrf.mxu0 }
  0xd3   :  { %v135_v14 = vadd.f32 %v198_v13, %v44_v11 }
  0xd4   :  { %v126_v15 = vpop.f32.mrf.mxu0 }
  0xd5   :  { %v180_v16 = vpack.c.bf16 %v135_v14, %v135_v14  ;;  %v127_v17 = vadd.f32 %v126_v15, %v34_v12 }
  0xd6   :  { %v199_v19 = vpop.f32.mrf.mxu0 }
  0xd7   :  { %160 = vst.msk [vmem:[%s281_s3 + $0x8] sm:$0xf] %vm157_vm1, %v180_v16  ;;  %v178_v20 = vpack.c.bf16 %v127_v17, %v127_v17  ;;  %v138_v21 = vadd.f32 %v199_v19, %v49_v18 }
  0xd8   :  { %v129_v23 = vpop.f32.mrf.mxu0 }
  0xd9   :  { %158 = vst.msk [vmem:[%s281_s3] sm:$0xf] %vm157_vm1, %v178_v20  ;;  %v181_v24 = vpack.c.bf16 %v138_v21, %v138_v21  ;;  %v130_v25 = vadd.f32 %v129_v23, %v39_v22 }
  0xdb   :  { %161 = vst.msk [vmem:[%s281_s3 + $0xc] sm:$0xf] %vm157_vm1, %v181_v24  ;;  %v179_v26 = vpack.c.bf16 %v130_v25, %v130_v25 }
  0xdd   :  { %159 = vst.msk [vmem:[%s281_s3 + $0x4] sm:$0xf] %vm157_vm1, %v179_v26 }

// kernel: seg_detector_forward.20
= control target key start
LH: loop header
LB: loop body
LE: loop exit
PB: predicated region body
PF: predicated region fallthrough
CT: control target
= control target key end

     0   :  { %v991_v1 = vmov 0   ;;  %vm475_vm0 = vcmask 523264   ;;  %vm723_vm1 = vcmask 60416   ;;  %s1240_s1 = inlined_call_operand.vmem [shape: bf16[576,8], index: 1, kind: input, shape index: {}]   ;;  %s1241_s0 = inlined_call_operand.vmem [shape: bf16[64,576], index: 0, kind: input, shape index: {}]   ;;  %s1242_s2 = inlined_call_operand.vmem [shape: f32[64,1], index: 2, kind: input, shape index: {}]   ;;  %s1243_s3 = inlined_call_operand.vmem [shape: bf16[64,8], index: 3, kind: output, shape index: {}]  }
   0x1   :  { %v927_v0 = vld [vmem:[%s1240_s1 + $0x78] sm:$0xff]   ;;  %925 = vset.pattern.permute.xlu0 %v991_v1  ;;  %926 = vset.pattern.permute.xlu1 %v991_v1  ;;  %v931_v5 = vld [vmem:[%s1240_s1 + $0x70] sm:$0xff]   ;;  %v935_v9 = vld [vmem:[%s1240_s1 + $0x68] sm:$0xff]  }
   0x2   :  { %v928_v2 = vld [vmem:[%s1240_s1 + $0xf8] sm:$0xff]   ;;  %812 = vmatprep.subr.bf16.mxu0 %v927_v0  ;;  %v932_v6 = vld [vmem:[%s1240_s1 + $0xf0] sm:$0xff]   ;;  %v936_v10 = vld [vmem:[%s1240_s1 + $0xe8] sm:$0xff]  }
   0x3   :  { %v929_v3 = vld [vmem:[%s1240_s1 + $0x38] sm:$0xff]   ;;  %852 = vmatprep.subr.bf16.mxu1 %v928_v2  ;;  %v933_v7 = vld [vmem:[%s1240_s1 + $0x30] sm:$0xff]   ;;  %v937_v11 = vld [vmem:[%s1240_s1 + $0x28] sm:$0xff]  }
   0x4   :  { %v930_v4 = vld [vmem:[%s1240_s1 + $0xb8] sm:$0xff]   ;;  %813 = vmatpush3.bf16.msra.mxu0 %v929_v3  ;;  %v934_v8 = vld [vmem:[%s1240_s1 + $0xb0] sm:$0xff]   ;;  %v938_v12 = vld [vmem:[%s1240_s1 + $0xa8] sm:$0xff]  }
   0x5   :  { %853 = vmatpush3.bf16.msra.mxu1 %v930_v4  ;;  %814 = vmatprep.subr.bf16.mxu0 %v931_v5  ;;  %v939_v13 = vld [vmem:[%s1240_s1 + $0x60] sm:$0xff]   ;;  %v943_v17 = vld [vmem:[%s1240_s1 + $0x58] sm:$0xff]   ;;  %v947_v21 = vld [vmem:[%s1240_s1 + $0x50] sm:$0xff]  }
   0x6   :  { %854 = vmatprep.subr.bf16.mxu1 %v932_v6  ;;  %v940_v14 = vld [vmem:[%s1240_s1 + $0xe0] sm:$0xff]   ;;  %v944_v18 = vld [vmem:[%s1240_s1 + $0xd8] sm:$0xff]   ;;  %v948_v22 = vld [vmem:[%s1240_s1 + $0xd0] sm:$0xff]  }
   0x7   :  { %v941_v15 = vld [vmem:[%s1240_s1 + $0x20] sm:$0xff]   ;;  %v945_v19 = vld [vmem:[%s1240_s1 + $0x18] sm:$0xff]   ;;  %v949_v23 = vld [vmem:[%s1240_s1 + $0x10] sm:$0xff]  }
   0x8   :  { %815 = vmatpush3.bf16.msra.mxu0 %v933_v7  ;;  %v942_v16 = vld [vmem:[%s1240_s1 + $0xa0] sm:$0xff]   ;;  %v946_v20 = vld [vmem:[%s1240_s1 + $0x98] sm:$0xff]   ;;  %v950_v24 = vld [vmem:[%s1240_s1 + $0x90] sm:$0xff]  }
   0x9   :  { %855 = vmatpush3.bf16.msra.mxu1 %v934_v8  ;;  %816 = vmatprep.subr.bf16.mxu0 %v935_v9  ;;  %v951_v25 = vld [vmem:[%s1240_s1 + $0x48] sm:$0xff]   ;;  %v955_v29 = vld [vmem:[%s1240_s1 + $0x40] sm:$0xff]   ;;  %v965_v37 = vld [vmem:[%s1240_s1 + $0x118] sm:$0xff]  }
   0xa   :  { %856 = vmatprep.subr.bf16.mxu1 %v936_v10  ;;  %v952_v26 = vld [vmem:[%s1240_s1 + $0xc8] sm:$0xff]   ;;  %v956_v30 = vld [vmem:[%s1240_s1 + $0xc0] sm:$0xff]   ;;  %v972_v40 = vld [vmem:[%s1240_s1 + $0x110] sm:$0xff]  }
   0xb   :  { %v953_v27 = vld [vmem:[%s1240_s1 + $0x8] sm:$0xff]   ;;  %v957_v31 = vld [vmem:[%s1240_s1] sm:$0xff]   ;;  %v975_v44 = vld [vmem:[%s1241_s0 + $0x5c] ss:$20 sps:$4 sm:$0xff]  }
   0xc   :  { %817 = vmatpush3.bf16.msra.mxu0 %v937_v11  ;;  %v954_v28 = vld [vmem:[%s1240_s1 + $0x88] sm:$0xff]   ;;  %v958_v32 = vld [vmem:[%s1240_s1 + $0x80] sm:$0xff]   ;;  %v980_v49 = vld [vmem:[%s1241_s0 + $0x7c] ss:$20 sps:$4 sm:$0xff]  }
   0xd   :  { %857 = vmatpush3.bf16.msra.mxu1 %v938_v12  ;;  %818 = vmatprep.subr.bf16.mxu0 %v939_v13  ;;  %v959_v33 = vld [vmem:[%s1241_s0] ss:$20 sps:$4 sm:$0xff]   ;;  %v961_v34 = vld [vmem:[%s1241_s0 + $0x4] ss:$20 sps:$4 sm:$0xff]   ;;  %v962_v35 = vld [vmem:[%s1241_s0 + $0x8] ss:$20 sps:$4 sm:$0xff]  }
   0xe   :  { %858 = vmatprep.subr.bf16.mxu1 %v940_v14  ;;  %v964_v36 = vld [vmem:[%s1241_s0 + $0xc] ss:$20 sps:$4 sm:$0xff]   ;;  %520 = vmatprep.mubr.bf16.mxu0 %v961_v34  ;;  %v968_v39 = vld [vmem:[%s1241_s0 + $0x34] ss:$20 sps:$4 sm:$0xff]   ;;  %v971_v42 = vld [vmem:[%s1241_s0 + $0x30] ss:$20 sps:$4 sm:$0xff]  }
   0xf   :  { %585 = vmatprep.mubr.bf16.mxu1 %v964_v36  ;;  %v966_v38 = vld [vmem:[%s1241_s0 + $0x2c] ss:$20 sps:$4 sm:$0xff]   ;;  %v970_v41 = vld [vmem:[%s1241_s0 + $0x28] ss:$20 sps:$4 sm:$0xff]   ;;  %v977_v47 = vld [vmem:[%s1241_s0 + $0x50] ss:$20 sps:$4 sm:$0xff]  }
  0x10   :  { %819 = vmatpush3.bf16.msra.mxu0 %v941_v15  ;;  %v973_v43 = vld [vmem:[%s1241_s0 + $0x54] ss:$20 sps:$4 sm:$0xff]   ;;  %v986_v46 = vld [vmem:[%s1240_s1 + $0x100] sm:$0xff]   ;;  %v978_v48 = vld [vmem:[%s1241_s0 + $0x58] ss:$20 sps:$4 sm:$0xff]  }
  0x11   :  { %859 = vmatpush3.bf16.msra.mxu1 %v942_v16  ;;  %820 = vmatprep.subr.bf16.mxu0 %v943_v17  ;;  %v979_v45 = vld [vmem:[%s1240_s1 + $0x108] sm:$0xff]   ;;  %v982_v50 = vld [vmem:[%s1241_s0 + $0x84] ss:$20 sps:$4 sm:$0xff]   ;;  %v113_v52 = vld [vmem:[%s1242_s2 + $0x10] sm:$0xff] }
  0x12   :  { %860 = vmatprep.subr.bf16.mxu1 %v944_v18  ;;  %v111_v51 = vld [vmem:[%s1242_s2] sm:$0xff]  ;;  %v112_v53 = vld [vmem:[%s1242_s2 + $0x8] sm:$0xff]  ;;  %131 = vperm.xlu1 %926, %v113_v52   ;;  %v114_v54 = vld [vmem:[%s1242_s2 + $0x18] sm:$0xff] }
  0x13   :  { %121 = vperm.xlu0 %925, %v111_v51   ;;  %v984_v55 = vld [vmem:[%s1241_s0 + $0x78] ss:$20 sps:$4 sm:$0xff]   ;;  %v985_v56 = vld [vmem:[%s1241_s0 + $0x80] ss:$20 sps:$4 sm:$0xff]   ;;  %v987_v57 = vld [vmem:[%s1241_s0 + $0x10] ss:$20 sps:$4 sm:$0xff]  }
  0x14   :  { %821 = vmatpush3.bf16.msra.mxu0 %v945_v19  ;;  %v115_v58 = vld [vmem:[%s1242_s2 + $0x20] sm:$0xff]  ;;  %v116_v60 = vld [vmem:[%s1242_s2 + $0x28] sm:$0xff]  ;;  %v117_v61 = vld [vmem:[%s1242_s2 + $0x30] sm:$0xff] }
  0x15   :  { %861 = vmatpush3.bf16.msra.mxu1 %v946_v20  ;;  %822 = vmatprep.subr.bf16.mxu0 %v947_v21  ;;  %v988_v59 = vld [vmem:[%s1241_s0 + $0x60] ss:$20 sps:$4 sm:$0xff]   ;;  %v118_v62 = vld [vmem:[%s1242_s2 + $0x38] sm:$0xff] }
  0x16   :  { %862 = vmatprep.subr.bf16.mxu1 %v948_v22  ;;  %136 = vperm.xlu1 %926, %v114_v54   ;;  %v989_v63 = vld [vmem:[%s1241_s0 + $0x38] ss:$20 sps:$4 sm:$0xff]   ;;  %v990_v0 = vld [vmem:[%s1241_s0 + $0x88] ss:$20 sps:$4 sm:$0xff]  }
  0x17   :  { %126 = vperm.xlu0 %925, %v112_v53  }
  0x18   :  { %823 = vmatpush3.bf16.msra.mxu0 %v949_v23 }
  0x19   :  { %863 = vmatpush3.bf16.msra.mxu1 %v950_v24  ;;  %824 = vmatprep.subr.bf16.mxu0 %v951_v25 }
  0x1a   :  { %864 = vmatprep.subr.bf16.mxu1 %v952_v26  ;;  %146 = vperm.xlu1 %926, %v116_v60  }
  0x1b   :  { %141 = vperm.xlu0 %925, %v115_v58  }
  0x1c   :  { %825 = vmatpush3.bf16.msra.mxu0 %v953_v27 }
  0x1d   :  { %865 = vmatpush3.bf16.msra.mxu1 %v954_v28  ;;  %826 = vmatprep.subr.bf16.mxu0 %v955_v29 }
  0x1e   :  { %866 = vmatprep.subr.bf16.mxu1 %v956_v30  ;;  %156 = vperm.xlu1 %926, %v118_v62  }
  0x1f   :  { %151 = vperm.xlu0 %925, %v117_v61  }
  0x20   :  { %827 = vmatpush3.bf16.msra.mxu0 %v957_v31 }
  0x21   :  { %867 = vmatpush3.bf16.msra.mxu1 %v958_v32  ;;  %900 = vmatprep.subr.bf16.mxu0 %v965_v37 }
  0x22   :  { %916 = vmatprep.subr.bf16.mxu1 %v965_v37 }
  0x23   :  { %521 = vmatmul.mubr.bf16.vlgmr.msra.gmra.mxu0 %v959_v33 }
  0x24   :  { %586 = vmatmul.mubr.bf16.vlgmr.msra.gmra.mxu1 %v962_v35  ;;  %901 = vmatpush3.bf16.msra.mxu0 %v965_v37 }
  0x25   :  { %920 = vmatpush3.bf16.msra.mxu1 %v965_v37  ;;  %528 = vmatprep.mubr.bf16.mxu0 %v966_v38 }
  0x26   :  { %593 = vmatprep.mubr.bf16.mxu1 %v968_v39  ;;  %902 = vmatprep.subr.bf16.mxu0 %v972_v40 }
  0x27   :  { %917 = vmatprep.subr.bf16.mxu1 %v972_v40 }
  0x28   :  { %903 = vmatpush3.bf16.msra.mxu0 %v972_v40 }
  0x29   :  { %921 = vmatpush3.bf16.msra.mxu1 %v972_v40  ;;  %904 = vmatprep.subr.bf16.mxu0 %v979_v45 }
  0x2a   :  { %918 = vmatprep.subr.bf16.mxu1 %v979_v45 }
  0x2b   :  { %529 = vmatmul.mubr.bf16.gmra.mxu0 %v970_v41 }
  0x2c   :  { %594 = vmatmul.mubr.bf16.gmra.mxu1 %v971_v42  ;;  %536 = vmatprep.mubr.bf16.mxu0 %v973_v43 }
  0x2d   :  { %601 = vmatprep.mubr.bf16.mxu1 %v975_v44  ;;  %905 = vmatpush3.bf16.msra.mxu0 %v979_v45 }
  0x2e   :  { %922 = vmatpush3.bf16.msra.mxu1 %v979_v45  ;;  %906 = vmatprep.subr.bf16.mxu0 %v986_v46 }
  0x2f   :  { %919 = vmatprep.subr.bf16.mxu1 %v986_v46 }
  0x31   :  { %907 = vmatpush3.bf16.msra.mxu0 %v986_v46 }
  0x32   :  { %923 = vmatpush3.bf16.msra.mxu1 %v986_v46 }
  0x33   :  { %537 = vmatmul.mubr.bf16.gmra.mxu0 %v977_v47 }
  0x34   :  { %602 = vmatmul.mubr.bf16.gmra.mxu1 %v978_v48  ;;  %544 = vmatprep.mubr.bf16.mxu0 %v980_v49 }
  0x35   :  { %609 = vmatprep.mubr.bf16.mxu1 %v982_v50 }
  0x3b   :  { %545 = vmatmul.mubr.bf16.gmra.mxu0 %v984_v55 }
  0x3c   :  { %610 = vmatmul.mubr.bf16.gmra.mxu1 %v985_v56  ;;  %908 = vmatprep.mubr.msk.bf16.mxu0 %vm475_vm0, %v987_v57 }
  0x3d   :  { %912 = vmatprep.mubr.msk.bf16.mxu1 %vm475_vm0, %v988_v59 }
  0x43   :  { %909 = vmatmul.mubr.msk.bf16.vlgmr.msra.gmra.mxu0 %vm475_vm0, %v989_v63 }
  0x44   :  { %913 = vmatmul.mubr.msk.bf16.vlgmr.msra.gmra.mxu1 %vm475_vm0, %v990_v0 }
  0x8d   :  { %v132_v16 = vpop.permute.xlu1 %131 }
  0x8e   :  { %v122_v13 = vpop.permute.xlu0 %121 }
  0x91   :  { %v137_v24 = vpop.permute.xlu1 %136 }
  0x92   :  { %v127_v21 = vpop.permute.xlu0 %126 }
  0x95   :  { %v147_v35 = vpop.permute.xlu1 %146 }
  0x96   :  { %v142_v27 = vpop.permute.xlu0 %141 }
  0x99   :  { %v157_v60 = vpop.permute.xlu1 %156 }
  0x9a   :  { %v152_v43 = vpop.permute.xlu0 %151 }
  0xe3   :  { %v828_v1 = vpop.f32.mrf.mxu0 }
  0xe4   :  { %v868_v2 = vpop.f32.mrf.mxu1 }
  0xe5   :  { %v829_v3 = vpop.f32.mrf.mxu0 }
  0xe6   :  { %v869_v4 = vpop.f32.mrf.mxu1  ;;  %v830_v31 = vadd.f32 %v829_v3, %v828_v1 }
  0xe7   :  { %v831_v5 = vpop.f32.mrf.mxu0  ;;  %v870_v49 = vadd.f32 %v869_v4, %v868_v2 }
  0xe8   :  { %v871_v6 = vpop.f32.mrf.mxu1  ;;  %v523_v41 = vadd.f32 %v830_v31, %v122_v13 }
  0xe9   :  { %v832_v7 = vpop.f32.mrf.mxu0 }
  0xea   :  { %v872_v8 = vpop.f32.mrf.mxu1  ;;  %v833_v42 = vadd.f32 %v832_v7, %v831_v5  ;;  %v588_v62 = vadd.f32 %v870_v49, %v523_v41 }
  0xeb   :  { %v834_v9 = vpop.f32.mrf.mxu0  ;;  %v873_v7 = vadd.f32 %v872_v8, %v871_v6 }
  0xec   :  { %v874_v10 = vpop.f32.mrf.mxu1  ;;  %v526_v58 = vadd.f32 %v833_v42, %v127_v21 }
  0xed   :  { %v835_v11 = vpop.f32.mrf.mxu0 }
  0xee   :  { %v875_v12 = vpop.f32.mrf.mxu1  ;;  %v836_v29 = vadd.f32 %v835_v11, %v834_v9 }
  0xef   :  { %v837_v14 = vpop.f32.mrf.mxu0  ;;  %v876_v45 = vadd.f32 %v875_v12, %v874_v10 }
  0xf0   :  { %v877_v15 = vpop.f32.mrf.mxu1  ;;  %v531_v37 = vadd.f32 %v836_v29, %v132_v16 }
  0xf1   :  { %v838_v17 = vpop.f32.mrf.mxu0 }
  0xf2   :  { %v878_v18 = vpop.f32.mrf.mxu1  ;;  %v839_v38 = vadd.f32 %v838_v17, %v837_v14  ;;  %v596_v56 = vadd.f32 %v876_v45, %v531_v37 }
  0xf3   :  { %v840_v19 = vpop.f32.mrf.mxu0  ;;  %v879_v63 = vadd.f32 %v878_v18, %v877_v15 }
  0xf4   :  { %v880_v20 = vpop.f32.mrf.mxu1  ;;  %v534_v53 = vadd.f32 %v839_v38, %v137_v24  ;;  %v591_v24 = vadd.f32 %v873_v7, %v526_v58 }
  0xf5   :  { %v841_v22 = vpop.f32.mrf.mxu0 }
  0xf6   :  { %v881_v23 = vpop.f32.mrf.mxu1  ;;  %v842_v34 = vadd.f32 %v841_v22, %v840_v19  ;;  %v599_v14 = vadd.f32 %v879_v63, %v534_v53 }
  0xf7   :  { %v843_v25 = vpop.f32.mrf.mxu0  ;;  %v882_v59 = vadd.f32 %v881_v23, %v880_v20 }
  0xf8   :  { %v883_v26 = vpop.f32.mrf.mxu1  ;;  %v539_v50 = vadd.f32 %v842_v34, %v142_v27 }
  0xf9   :  { %v844_v28 = vpop.f32.mrf.mxu0 }
  0xfa   :  { %v884_v30 = vpop.f32.mrf.mxu1  ;;  %v845_v51 = vadd.f32 %v844_v28, %v843_v25  ;;  %v604_v10 = vadd.f32 %v882_v59, %v539_v50 }
  0xfb   :  { %v846_v32 = vpop.f32.mrf.mxu0  ;;  %v885_v17 = vadd.f32 %v884_v30, %v883_v26 }
  0xfc   :  { %v886_v33 = vpop.f32.mrf.mxu1  ;;  %v542_v2 = vadd.f32 %v845_v51, %v147_v35 }
  0xfd   :  { %v847_v36 = vpop.f32.mrf.mxu0 }
  0xfe   :  { %v848_v39 = vadd.f32 %v847_v36, %v846_v32  ;;  %v887_v40 = vpop.f32.mrf.mxu1  ;;  %v607_v28 = vadd.f32 %v885_v17, %v542_v2 }
  0xff   :  { %v849_v44 = vpop.f32.mrf.mxu0  ;;  %v888_v47 = vadd.f32 %v887_v40, %v886_v33 }
 0x100   :  { %v547_v46 = vadd.f32 %v848_v39, %v152_v43  ;;  %v889_v48 = vpop.f32.mrf.mxu1 }
 0x101   :  { %v850_v52 = vpop.f32.mrf.mxu0 }
 0x102   :  { %v851_v54 = vadd.f32 %v850_v52, %v849_v44  ;;  %v890_v55 = vpop.f32.mrf.mxu1  ;;  %v612_v57 = vadd.f32 %v888_v47, %v547_v46 }
 0x103   :  { %v910_v61 = vpop.f32.mrf.mxu0  ;;  %v891_v1 = vadd.f32 %v890_v55, %v889_v48 }
 0x104   :  { %v550_v0 = vadd.f32 %v851_v54, %v157_v60  ;;  %v661_v3 = vadd.f32 %v910_v61, %v596_v56  ;;  %v914_v5 = vpop.f32.mrf.mxu1 }
 0x105   :  { %v677_v4 = vadd.f32 %v914_v5, %v612_v57  ;;  %v652_v9 = vpop.f32.mrf.mxu0 }
 0x106   :  { %v685_v11 = vmax.f32 %v661_v3, 0.0  ;;  %v653_v12 = vadd.f32 %v652_v9, %v588_v62  ;;  %v668_v13 = vpop.f32.mrf.mxu1  ;;  %v615_v16 = vadd.f32 %v891_v1, %v550_v0 }
 0x107   :  { %v689_v19 = vmax.f32 %v677_v4, 0.0  ;;  %v669_v20 = vadd.f32 %v668_v13, %v604_v10  ;;  %v911_v21 = vpop.f32.mrf.mxu0 }
 0x108   :  { %v806_v15 = vpack.c.bf16 %v685_v11, %v685_v11  ;;  %v683_v18 = vmax.f32 %v653_v12, 0.0  ;;  %v664_v22 = vadd.f32 %v911_v21, %v599_v14  ;;  %v915_v23 = vpop.f32.mrf.mxu1 }
 0x109   :  { %v810_v6 = vpack.c.bf16 %v689_v19, %v689_v19  ;;  %v687_v8 = vmax.f32 %v669_v20, 0.0  ;;  %v680_v25 = vadd.f32 %v915_v23, %v615_v16  ;;  %v655_v27 = vpop.f32.mrf.mxu0 }
 0x10a   :  { %726 = vst.msk [vmem:[%s1243_s3 + $0x8] sm:$0xf] %vm723_vm1, %v806_v15  ;;  %v804_v26 = vpack.c.bf16 %v683_v18, %v683_v18  ;;  %v686_v29 = vmax.f32 %v664_v22, 0.0  ;;  %v656_v30 = vadd.f32 %v655_v27, %v591_v24  ;;  %v671_v31 = vpop.f32.mrf.mxu1 }
 0x10b   :  { %730 = vst.msk [vmem:[%s1243_s3 + $0x18] sm:$0xf] %vm723_vm1, %v810_v6  ;;  %v808_v32 = vpack.c.bf16 %v687_v8, %v687_v8  ;;  %v690_v33 = vmax.f32 %v680_v25, 0.0  ;;  %v672_v34 = vadd.f32 %v671_v31, %v607_v28 }
 0x10c   :  { %724 = vst.msk [vmem:[%s1243_s3] sm:$0xf] %vm723_vm1, %v804_v26  ;;  %v807_v35 = vpack.c.bf16 %v686_v29, %v686_v29  ;;  %v684_v36 = vmax.f32 %v656_v30, 0.0 }
 0x10d   :  { %728 = vst.msk [vmem:[%s1243_s3 + $0x10] sm:$0xf] %vm723_vm1, %v808_v32  ;;  %v811_v37 = vpack.c.bf16 %v690_v33, %v690_v33  ;;  %v688_v38 = vmax.f32 %v672_v34, 0.0 }
 0x10e   :  { %727 = vst.msk [vmem:[%s1243_s3 + $0xc] sm:$0xf] %vm723_vm1, %v807_v35  ;;  %v805_v39 = vpack.c.bf16 %v684_v36, %v684_v36 }
 0x10f   :  { %731 = vst.msk [vmem:[%s1243_s3 + $0x1c] sm:$0xf] %vm723_vm1, %v811_v37  ;;  %v809_v40 = vpack.c.bf16 %v688_v38, %v688_v38 }
 0x110   :  { %725 = vst.msk [vmem:[%s1243_s3 + $0x4] sm:$0xf] %vm723_vm1, %v805_v39 }
 0x111   :  { %729 = vst.msk [vmem:[%s1243_s3 + $0x14] sm:$0xf] %vm723_vm1, %v809_v40 }

// kernel: seg_detector_forward.25
= control target key start
LH: loop header
LB: loop body
LE: loop exit
PB: predicated region body
PF: predicated region fallthrough
CT: control target
= control target key end

     0   :  { %v348_v1 = vmov 0.0   ;;  %vm349_vm0 = vmmov 0   ;;  %v350_v3 = vmov 0   ;;  %vm177_vm1 = vcmask 261120   ;;  %s437_s1 = inlined_call_operand.vmem [shape: bf16[288,8], index: 1, kind: input, shape index: {}]   ;;  %s438_s0 = inlined_call_operand.vmem [shape: bf16[8,288], index: 0, kind: input, shape index: {}]   ;;  %s439_s2 = inlined_call_operand.vmem [shape: f32[8,1], index: 2, kind: input, shape index: {}]   ;;  %s440_s3 = inlined_call_operand.vmem [shape: bf16[8,8], index: 3, kind: output, shape index: {}]  }
   0x1   :  { %v327_v0 = vld [vmem:[%s437_s1 + $0x78] sm:$0xff]   ;;  %315 = vmatprep.subr.bf16.mxu1 %v348_v1  ;;  %319 = vmatprep.mubr.msk.bf16.mxu1 %vm349_vm0, %v348_v1  ;;  %v329_v4 = vld [vmem:[%s437_s1 + $0x70] sm:$0xff]   ;;  %v331_v6 = vld [vmem:[%s437_s1 + $0x68] sm:$0xff]   ;;  %vm262_vm2 = vcmask 60416  }
   0x2   :  { %v328_v2 = vld [vmem:[%s437_s1 + $0x38] sm:$0xff]   ;;  %326 = vset.pattern.permute.xlu0 %v350_v3  ;;  %290 = vmatprep.subr.bf16.mxu0 %v327_v0  ;;  %v330_v5 = vld [vmem:[%s437_s1 + $0x30] sm:$0xff]   ;;  %v332_v7 = vld [vmem:[%s437_s1 + $0x28] sm:$0xff]  }
   0x3   :  { %291 = vmatpush3.bf16.msra.mxu0 %v328_v2  ;;  %v333_v8 = vld [vmem:[%s437_s1 + $0x60] sm:$0xff]   ;;  %v335_v10 = vld [vmem:[%s437_s1 + $0x58] sm:$0xff]   ;;  %v340_v11 = vld [vmem:[%s437_s1 + $0x88] sm:$0xff]  }
   0x4   :  { %292 = vmatprep.subr.bf16.mxu0 %v329_v4  ;;  %v334_v9 = vld [vmem:[%s437_s1 + $0x20] sm:$0xff]   ;;  %v336_v12 = vld [vmem:[%s437_s1 + $0x18] sm:$0xff]   ;;  %v337_v13 = vld [vmem:[%s437_s1 + $0x50] sm:$0xff]   ;;  %316 = vmatpush3.bf16.msra.mxu1 %v340_v11 }
   0x5   :  { %317 = vmatprep.subr.bf16.mxu1 %v348_v1  ;;  %v343_v14 = vld [vmem:[%s437_s1 + $0x80] sm:$0xff]   ;;  %v347_v16 = vld [vmem:[%s438_s0 + $0x8] ss:$0 sps:$4 sm:$0xff]   ;;  %v338_v17 = vld [vmem:[%s437_s1 + $0x10] sm:$0xff]  }
   0x6   :  { %v15_v15 = vld [vmem:[%s438_s0] sm:$0xff]  ;;  %v339_v20 = vld [vmem:[%s437_s1 + $0x48] sm:$0xff]  }
   0x7   :  { %293 = vmatpush3.bf16.msra.mxu0 %v330_v5  ;;  %v269_v18 = vcombine.high %v15_v15, %v15_v15  ;;  %v53_v19 = vld [vmem:[%s439_s2] sm:$0xff]  ;;  %v341_v21 = vld [vmem:[%s437_s1 + $0x8] sm:$0xff]   ;;  %v268_v24 = vcombine.low %v15_v15, %v15_v15 }
   0x8   :  { %294 = vmatprep.subr.bf16.mxu0 %v331_v6  ;;  %318 = vmatpush3.bf16.msra.mxu1 %v343_v14  ;;  %v342_v22 = vld [vmem:[%s437_s1 + $0x40] sm:$0xff]  }
   0x9   :  { %56 = vperm.xlu0 %326, %v53_v19   ;;  %213 = vmatprep.mubr.bf16.mxu0 %v269_v18  ;;  %v344_v23 = vld [vmem:[%s437_s1] sm:$0xff]  }
   0xb   :  { %295 = vmatpush3.bf16.msra.mxu0 %v332_v7  ;;  %320 = vmatmul.mubr.msk.bf16.vlgmr.msra.gmra.mxu1 %vm177_vm1, %v347_v16 }
   0xc   :  { %296 = vmatprep.subr.bf16.mxu0 %v333_v8 }
   0xf   :  { %297 = vmatpush3.bf16.msra.mxu0 %v334_v9 }
  0x10   :  { %298 = vmatprep.subr.bf16.mxu0 %v335_v10 }
  0x13   :  { %299 = vmatpush3.bf16.msra.mxu0 %v336_v12 }
  0x14   :  { %300 = vmatprep.subr.bf16.mxu0 %v337_v13 }
  0x17   :  { %301 = vmatpush3.bf16.msra.mxu0 %v338_v17 }
  0x18   :  { %302 = vmatprep.subr.bf16.mxu0 %v339_v20 }
  0x1b   :  { %303 = vmatpush3.bf16.msra.mxu0 %v341_v21 }
  0x1c   :  { %304 = vmatprep.subr.bf16.mxu0 %v342_v22 }
  0x1f   :  { %305 = vmatpush3.bf16.msra.mxu0 %v344_v23 }
  0x22   :  { %214 = vmatmul.mubr.bf16.vlgmr.msra.gmra.mxu0 %v268_v24 }
  0x84   :  { %v57_v31 = vpop.permute.xlu0 %56 }
  0xcb   :  { %v255_v25 = vpop.f32.mrf.mxu1 }
  0xcd   :  { %v321_v26 = vpop.f32.mrf.mxu1 }
  0xcf   :  { %v258_v27 = vpop.f32.mrf.mxu1 }
  0xd1   :  { %v322_v28 = vpop.f32.mrf.mxu1 }
  0xe2   :  { %v306_v29 = vpop.f32.mrf.mxu0 }
  0xe4   :  { %v307_v30 = vpop.f32.mrf.mxu0 }
  0xe5   :  { %v308_v32 = vadd.f32 %v307_v30, %v306_v29 }
  0xe6   :  { %v309_v33 = vpop.f32.mrf.mxu0 }
  0xe7   :  { %v216_v34 = vadd.f32 %v308_v32, %v57_v31 }
  0xe8   :  { %v310_v35 = vpop.f32.mrf.mxu0 }
  0xe9   :  { %v256_v36 = vadd.f32 %v255_v25, %v216_v34 }
  0xeb   :  { %v261_v37 = vpack.c.bf16 %v256_v36, %v256_v36 }
  0xed   :  { %263 = vst.msk [vmem:[%s440_s3] sm:$0xf] %vm262_vm2, %v261_v37 }

// kernel: seg_detector_forward.26
= control target key start
LH: loop header
LB: loop body
LE: loop exit
PB: predicated region body
PF: predicated region fallthrough
CT: control target
= control target key end

     0   :  { %v348_v1 = vmov 0.0   ;;  %vm349_vm0 = vmmov 0   ;;  %v350_v3 = vmov 0   ;;  %vm177_vm1 = vcmask 261120   ;;  %s437_s1 = inlined_call_operand.vmem [shape: bf16[288,32], index: 1, kind: input, shape index: {}]   ;;  %s438_s0 = inlined_call_operand.vmem [shape: bf16[8,288], index: 0, kind: input, shape index: {}]   ;;  %s439_s2 = inlined_call_operand.vmem [shape: f32[8,1], index: 2, kind: input, shape index: {}]   ;;  %s440_s3 = inlined_call_operand.vmem [shape: bf16[8,32], index: 3, kind: output, shape index: {}]  }
   0x1   :  { %v327_v0 = vld [vmem:[%s437_s1 + $0x78] sm:$0xff]   ;;  %315 = vmatprep.subr.bf16.mxu1 %v348_v1  ;;  %319 = vmatprep.mubr.msk.bf16.mxu1 %vm349_vm0, %v348_v1  ;;  %v329_v4 = vld [vmem:[%s437_s1 + $0x70] sm:$0xff]   ;;  %v331_v6 = vld [vmem:[%s437_s1 + $0x68] sm:$0xff]   ;;  %vm262_vm2 = vcmask 257024  }
   0x2   :  { %v328_v2 = vld [vmem:[%s437_s1 + $0x38] sm:$0xff]   ;;  %326 = vset.pattern.permute.xlu0 %v350_v3  ;;  %290 = vmatprep.subr.bf16.mxu0 %v327_v0  ;;  %v330_v5 = vld [vmem:[%s437_s1 + $0x30] sm:$0xff]   ;;  %v332_v7 = vld [vmem:[%s437_s1 + $0x28] sm:$0xff]  }
   0x3   :  { %291 = vmatpush3.bf16.msra.mxu0 %v328_v2  ;;  %v333_v8 = vld [vmem:[%s437_s1 + $0x60] sm:$0xff]   ;;  %v335_v10 = vld [vmem:[%s437_s1 + $0x58] sm:$0xff]   ;;  %v340_v11 = vld [vmem:[%s437_s1 + $0x88] sm:$0xff]  }
   0x4   :  { %292 = vmatprep.subr.bf16.mxu0 %v329_v4  ;;  %v334_v9 = vld [vmem:[%s437_s1 + $0x20] sm:$0xff]   ;;  %v336_v12 = vld [vmem:[%s437_s1 + $0x18] sm:$0xff]   ;;  %v337_v13 = vld [vmem:[%s437_s1 + $0x50] sm:$0xff]   ;;  %316 = vmatpush3.bf16.msra.mxu1 %v340_v11 }
   0x5   :  { %317 = vmatprep.subr.bf16.mxu1 %v348_v1  ;;  %v343_v14 = vld [vmem:[%s437_s1 + $0x80] sm:$0xff]   ;;  %v347_v16 = vld [vmem:[%s438_s0 + $0x8] ss:$0 sps:$4 sm:$0xff]   ;;  %v338_v17 = vld [vmem:[%s437_s1 + $0x10] sm:$0xff]  }
   0x6   :  { %v15_v15 = vld [vmem:[%s438_s0] sm:$0xff]  ;;  %v339_v20 = vld [vmem:[%s437_s1 + $0x48] sm:$0xff]  }
   0x7   :  { %293 = vmatpush3.bf16.msra.mxu0 %v330_v5  ;;  %v269_v18 = vcombine.high %v15_v15, %v15_v15  ;;  %v53_v19 = vld [vmem:[%s439_s2] sm:$0xff]  ;;  %v341_v21 = vld [vmem:[%s437_s1 + $0x8] sm:$0xff]   ;;  %v268_v24 = vcombine.low %v15_v15, %v15_v15 }
   0x8   :  { %294 = vmatprep.subr.bf16.mxu0 %v331_v6  ;;  %318 = vmatpush3.bf16.msra.mxu1 %v343_v14  ;;  %v342_v22 = vld [vmem:[%s437_s1 + $0x40] sm:$0xff]  }
   0x9   :  { %56 = vperm.xlu0 %326, %v53_v19   ;;  %213 = vmatprep.mubr.bf16.mxu0 %v269_v18  ;;  %v344_v23 = vld [vmem:[%s437_s1] sm:$0xff]  }
   0xb   :  { %295 = vmatpush3.bf16.msra.mxu0 %v332_v7  ;;  %320 = vmatmul.mubr.msk.bf16.vlgmr.msra.gmra.mxu1 %vm177_vm1, %v347_v16 }
   0xc   :  { %296 = vmatprep.subr.bf16.mxu0 %v333_v8 }
   0xf   :  { %297 = vmatpush3.bf16.msra.mxu0 %v334_v9 }
  0x10   :  { %298 = vmatprep.subr.bf16.mxu0 %v335_v10 }
  0x13   :  { %299 = vmatpush3.bf16.msra.mxu0 %v336_v12 }
  0x14   :  { %300 = vmatprep.subr.bf16.mxu0 %v337_v13 }
  0x17   :  { %301 = vmatpush3.bf16.msra.mxu0 %v338_v17 }
  0x18   :  { %302 = vmatprep.subr.bf16.mxu0 %v339_v20 }
  0x1b   :  { %303 = vmatpush3.bf16.msra.mxu0 %v341_v21 }
  0x1c   :  { %304 = vmatprep.subr.bf16.mxu0 %v342_v22 }
  0x1f   :  { %305 = vmatpush3.bf16.msra.mxu0 %v344_v23 }
  0x22   :  { %214 = vmatmul.mubr.bf16.vlgmr.msra.gmra.mxu0 %v268_v24 }
  0x84   :  { %v57_v31 = vpop.permute.xlu0 %56 }
  0xcb   :  { %v255_v25 = vpop.f32.mrf.mxu1 }
  0xcd   :  { %v321_v26 = vpop.f32.mrf.mxu1 }
  0xcf   :  { %v258_v27 = vpop.f32.mrf.mxu1 }
  0xd1   :  { %v322_v28 = vpop.f32.mrf.mxu1 }
  0xe2   :  { %v306_v29 = vpop.f32.mrf.mxu0 }
  0xe4   :  { %v307_v30 = vpop.f32.mrf.mxu0 }
  0xe5   :  { %v308_v32 = vadd.f32 %v307_v30, %v306_v29 }
  0xe6   :  { %v309_v33 = vpop.f32.mrf.mxu0 }
  0xe7   :  { %v216_v34 = vadd.f32 %v308_v32, %v57_v31 }
  0xe8   :  { %v310_v35 = vpop.f32.mrf.mxu0 }
  0xe9   :  { %v256_v36 = vadd.f32 %v255_v25, %v216_v34 }
  0xeb   :  { %v261_v37 = vpack.c.bf16 %v256_v36, %v256_v36 }
  0xed   :  { %263 = vst.msk [vmem:[%s440_s3] sm:$0xf] %vm262_vm2, %v261_v37 }

// kernel: seg_detector_forward.27
= control target key start
LH: loop header
LB: loop body
LE: loop exit
PB: predicated region body
PF: predicated region fallthrough
CT: control target
= control target key end

     0   :  { %v347_v1 = vmov 0.0   ;;  %vm348_vm0 = vmmov 0   ;;  %v349_v3 = vmov 0   ;;  %vm177_vm1 = vcmask 261120   ;;  %s436_s1 = inlined_call_operand.vmem [shape: bf16[288,128], index: 1, kind: input, shape index: {}]   ;;  %s437_s0 = inlined_call_operand.vmem [shape: bf16[8,288], index: 0, kind: input, shape index: {}]   ;;  %s438_s2 = inlined_call_operand.vmem [shape: f32[8,1], index: 2, kind: input, shape index: {}]   ;;  %s439_s3 = inlined_call_operand.vmem [shape: bf16[8,128], index: 3, kind: output, shape index: {}]  }
   0x1   :  { %v326_v0 = vld [vmem:[%s436_s1 + $0x78] sm:$0xff]   ;;  %314 = vmatprep.subr.bf16.mxu1 %v347_v1  ;;  %318 = vmatprep.mubr.msk.bf16.mxu1 %vm348_vm0, %v347_v1  ;;  %v328_v4 = vld [vmem:[%s436_s1 + $0x70] sm:$0xff]   ;;  %v330_v6 = vld [vmem:[%s436_s1 + $0x68] sm:$0xff]  }
   0x2   :  { %v327_v2 = vld [vmem:[%s436_s1 + $0x38] sm:$0xff]   ;;  %325 = vset.pattern.permute.xlu0 %v349_v3  ;;  %289 = vmatprep.subr.bf16.mxu0 %v326_v0  ;;  %v329_v5 = vld [vmem:[%s436_s1 + $0x30] sm:$0xff]   ;;  %v331_v7 = vld [vmem:[%s436_s1 + $0x28] sm:$0xff]  }
   0x3   :  { %290 = vmatpush3.bf16.msra.mxu0 %v327_v2  ;;  %v332_v8 = vld [vmem:[%s436_s1 + $0x60] sm:$0xff]   ;;  %v334_v10 = vld [vmem:[%s436_s1 + $0x58] sm:$0xff]   ;;  %v339_v11 = vld [vmem:[%s436_s1 + $0x88] sm:$0xff]  }
   0x4   :  { %291 = vmatprep.subr.bf16.mxu0 %v328_v4  ;;  %v333_v9 = vld [vmem:[%s436_s1 + $0x20] sm:$0xff]   ;;  %v335_v12 = vld [vmem:[%s436_s1 + $0x18] sm:$0xff]   ;;  %v336_v13 = vld [vmem:[%s436_s1 + $0x50] sm:$0xff]   ;;  %315 = vmatpush3.bf16.msra.mxu1 %v339_v11 }
   0x5   :  { %316 = vmatprep.subr.bf16.mxu1 %v347_v1  ;;  %v342_v14 = vld [vmem:[%s436_s1 + $0x80] sm:$0xff]   ;;  %v346_v16 = vld [vmem:[%s437_s0 + $0x8] ss:$0 sps:$4 sm:$0xff]   ;;  %v337_v17 = vld [vmem:[%s436_s1 + $0x10] sm:$0xff]  }
   0x6   :  { %v15_v15 = vld [vmem:[%s437_s0] sm:$0xff]  ;;  %v338_v20 = vld [vmem:[%s436_s1 + $0x48] sm:$0xff]  }
   0x7   :  { %292 = vmatpush3.bf16.msra.mxu0 %v329_v5  ;;  %v268_v18 = vcombine.high %v15_v15, %v15_v15  ;;  %v53_v19 = vld [vmem:[%s438_s2] sm:$0xff]  ;;  %v340_v21 = vld [vmem:[%s436_s1 + $0x8] sm:$0xff]   ;;  %v267_v24 = vcombine.low %v15_v15, %v15_v15 }
   0x8   :  { %293 = vmatprep.subr.bf16.mxu0 %v330_v6  ;;  %317 = vmatpush3.bf16.msra.mxu1 %v342_v14  ;;  %v341_v22 = vld [vmem:[%s436_s1 + $0x40] sm:$0xff]  }
   0x9   :  { %56 = vperm.xlu0 %325, %v53_v19   ;;  %213 = vmatprep.mubr.bf16.mxu0 %v268_v18  ;;  %v343_v23 = vld [vmem:[%s436_s1] sm:$0xff]  }
   0xb   :  { %294 = vmatpush3.bf16.msra.mxu0 %v331_v7  ;;  %319 = vmatmul.mubr.msk.bf16.vlgmr.msra.gmra.mxu1 %vm177_vm1, %v346_v16 }
   0xc   :  { %295 = vmatprep.subr.bf16.mxu0 %v332_v8 }
   0xf   :  { %296 = vmatpush3.bf16.msra.mxu0 %v333_v9 }
  0x10   :  { %297 = vmatprep.subr.bf16.mxu0 %v334_v10 }
  0x13   :  { %298 = vmatpush3.bf16.msra.mxu0 %v335_v12 }
  0x14   :  { %299 = vmatprep.subr.bf16.mxu0 %v336_v13 }
  0x17   :  { %300 = vmatpush3.bf16.msra.mxu0 %v337_v17 }
  0x18   :  { %301 = vmatprep.subr.bf16.mxu0 %v338_v20 }
  0x1b   :  { %302 = vmatpush3.bf16.msra.mxu0 %v340_v21 }
  0x1c   :  { %303 = vmatprep.subr.bf16.mxu0 %v341_v22 }
  0x1f   :  { %304 = vmatpush3.bf16.msra.mxu0 %v343_v23 }
  0x22   :  { %214 = vmatmul.mubr.bf16.vlgmr.msra.gmra.mxu0 %v267_v24 }
  0x84   :  { %v57_v31 = vpop.permute.xlu0 %56 }
  0xcb   :  { %v255_v25 = vpop.f32.mrf.mxu1 }
  0xcd   :  { %v320_v26 = vpop.f32.mrf.mxu1 }
  0xcf   :  { %v258_v27 = vpop.f32.mrf.mxu1 }
  0xd1   :  { %v321_v28 = vpop.f32.mrf.mxu1 }
  0xe2   :  { %v305_v29 = vpop.f32.mrf.mxu0 }
  0xe4   :  { %v306_v30 = vpop.f32.mrf.mxu0 }
  0xe5   :  { %v307_v32 = vadd.f32 %v306_v30, %v305_v29 }
  0xe6   :  { %v308_v33 = vpop.f32.mrf.mxu0 }
  0xe7   :  { %v216_v34 = vadd.f32 %v307_v32, %v57_v31 }
  0xe8   :  { %v309_v35 = vpop.f32.mrf.mxu0 }
  0xe9   :  { %v256_v36 = vadd.f32 %v255_v25, %v216_v34 }
  0xeb   :  { %v261_v37 = vpack.c.bf16 %v256_v36, %v256_v36 }
  0xed   :  { %262 = vst [vmem:[%s439_s3] sm:$0xf] %v261_v37 }

// kernel: seg_detector_forward.28
= control target key start
LH: loop header
LB: loop body
LE: loop exit
PB: predicated region body
PF: predicated region fallthrough
CT: control target
= control target key end

     0   :  { %s925_s12 = smov 0   ;;  %s927_s13 = smov 0   ;;  %s1106_s0 = inlined_call_operand.vmem [shape: bf16[8,288], index: 0, kind: input, shape index: {}]   ;;  %s1107_s1 = inlined_call_operand.vmem [shape: bf16[288,512], index: 1, kind: input, shape index: {}]   ;;  %s1108_s2 = inlined_call_operand.vmem [shape: f32[8,1], index: 2, kind: input, shape index: {}]   ;;  %s1109_s3 = inlined_call_operand.vmem [shape: bf16[8,512], index: 3, kind: output, shape index: {}]  }
   0x1   :  { %s929_s14 = smov 0  }
   0x2 LB: > { %s741_s15 = sadd.s32 4294967295, %s902_s14   ;;  %s942_s16 = sadd.s32 1, %s902_s14   ;;  %s902_s14 = sphi %s929_s14, %s1112_s14   ;;  %s898_s13 = sphi %s927_s13, %s1111_s13   ;;  %s894_s12 = sphi %s925_s12, %s1110_s12  }
   0x3   : > { %s38_s17 = ssub.s32 %s902_s14, %s942_s16  ;;  %s41_s18 = sadd.s32 1, %s898_s13 }
   0x4   : > { %p39_p0 = scmp.eq.s32.totalorder %s38_s17, 0  ;;  %p48_p1 = scmp.ne.s32.totalorder %s898_s13, %s894_s12 }
   0x5   : > { %p49_p2 = scmp.eq.s32.totalorder %s902_s14, 0  ;;  %p744_p4 = scmp.ge.s32.totalorder %s902_s14, 2 }
   0x6   : > { %s951_s19 = scalar_select %p39_p0, %s898_s13, %s41_s18  }
   0x7   : > { %p50_p3 = por %p49_p2, %p48_p1  ;;  %127 = sbr.rel (%p744_p4) target bundleno = 34 (0x22), region = 24 }
   0xc   : > { %130 = sbr.rel (!%p50_p3) target bundleno = 34 (0x22), region = 28  ;;  %s132_s20 = sand.u32 (%p50_p3), 1, %s898_s13  }
   0xd   : > { %s793_s21 = sshll.u32 (%p50_p3), %s902_s14, 3  ;;  %s795_s22 = smul.u32 (%p50_p3), 288, %s132_s20 }
   0xe   : > { %s959_s25 = scalar_lea.vmem (%p50_p3), %s1107_s1, %s793_s21 }
   0xf   : > { %v236_v0 = vld [vmem:[%s959_s25] sm:$0xff] (%p50_p3)  ;;  %v238_v1 = vld [vmem:[%s959_s25 + $0x10] sm:$0xff] (%p50_p3)  ;;  %s967_s26 = scalar_lea.vmem (%p50_p3), [#allocation2], %s795_s22 }
  0x10   : > { %v240_v2 = vld [vmem:[%s959_s25 + $0x20] sm:$0xff] (%p50_p3)  ;;  %v242_v3 = vld [vmem:[%s959_s25 + $0x30] sm:$0xff] (%p50_p3)  ;;  %237 = vst [vmem:[%s967_s26] sm:$0xff] (%p50_p3), %v236_v0  ;;  %239 = vst [vmem:[%s967_s26 + $0x8] sm:$0xff] (%p50_p3), %v238_v1 }
  0x11   : > { %v244_v4 = vld [vmem:[%s959_s25 + $0x40] sm:$0xff]  ;;  %v246_v5 = vld [vmem:[%s959_s25 + $0x50] sm:$0xff]  ;;  %241 = vst [vmem:[%s967_s26 + $0x10] sm:$0xff] %v240_v2  ;;  %243 = vst [vmem:[%s967_s26 + $0x18] sm:$0xff] %v242_v3 }
  0x12   : > { %245 = vst [vmem:[%s967_s26 + $0x20] sm:$0xff] %v244_v4  ;;  %247 = vst [vmem:[%s967_s26 + $0x28] sm:$0xff] %v246_v5  ;;  %v248_v6 = vld [vmem:[%s959_s25 + $0x60] sm:$0xff]  ;;  %v250_v7 = vld [vmem:[%s959_s25 + $0x70] sm:$0xff] }
  0x13   : > { %v252_v8 = vld [vmem:[%s959_s25 + $0x80] sm:$0xff]  ;;  %249 = vst [vmem:[%s967_s26 + $0x30] sm:$0xff] %v248_v6  ;;  %251 = vst [vmem:[%s967_s26 + $0x38] sm:$0xff] %v250_v7  ;;  %v254_v9 = vld [vmem:[%s959_s25 + $0x90] sm:$0xff] }
  0x14   : > { %253 = vst [vmem:[%s967_s26 + $0x40] sm:$0xff] %v252_v8  ;;  %v256_v10 = vld [vmem:[%s959_s25 + $0xa0] sm:$0xff]  ;;  %v258_v11 = vld [vmem:[%s959_s25 + $0xb0] sm:$0xff]  ;;  %255 = vst [vmem:[%s967_s26 + $0x48] sm:$0xff] %v254_v9 }
  0x15   : > { %257 = vst [vmem:[%s967_s26 + $0x50] sm:$0xff] %v256_v10  ;;  %259 = vst [vmem:[%s967_s26 + $0x58] sm:$0xff] %v258_v11  ;;  %v260_v12 = vld [vmem:[%s959_s25 + $0xc0] sm:$0xff]  ;;  %v262_v13 = vld [vmem:[%s959_s25 + $0xd0] sm:$0xff] }
  0x16   : > { %v264_v14 = vld [vmem:[%s959_s25 + $0xe0] sm:$0xff]  ;;  %261 = vst [vmem:[%s967_s26 + $0x60] sm:$0xff] %v260_v12  ;;  %263 = vst [vmem:[%s967_s26 + $0x68] sm:$0xff] %v262_v13  ;;  %v266_v15 = vld [vmem:[%s959_s25 + $0xf0] sm:$0xff] }
  0x17   : > { %265 = vst [vmem:[%s967_s26 + $0x70] sm:$0xff] %v264_v14  ;;  %v268_v16 = vld [vmem:[%s959_s25 + $0x100] sm:$0xff]  ;;  %v270_v17 = vld [vmem:[%s959_s25 + $0x110] sm:$0xff]  ;;  %267 = vst [vmem:[%s967_s26 + $0x78] sm:$0xff] %v266_v15 }
  0x18   : > { %269 = vst [vmem:[%s967_s26 + $0x80] sm:$0xff] %v268_v16  ;;  %271 = vst [vmem:[%s967_s26 + $0x88] sm:$0xff] %v270_v17  ;;  %v272_v18 = vld [vmem:[%s959_s25 + $0x120] sm:$0xff]  ;;  %v274_v19 = vld [vmem:[%s959_s25 + $0x130] sm:$0xff] }
  0x19   : > { %v276_v20 = vld [vmem:[%s959_s25 + $0x140] sm:$0xff]  ;;  %273 = vst [vmem:[%s967_s26 + $0x90] sm:$0xff] %v272_v18  ;;  %275 = vst [vmem:[%s967_s26 + $0x98] sm:$0xff] %v274_v19  ;;  %v278_v21 = vld [vmem:[%s959_s25 + $0x150] sm:$0xff] }
  0x1a   : > { %277 = vst [vmem:[%s967_s26 + $0xa0] sm:$0xff] %v276_v20  ;;  %v280_v22 = vld [vmem:[%s959_s25 + $0x160] sm:$0xff]  ;;  %v282_v23 = vld [vmem:[%s959_s25 + $0x170] sm:$0xff]  ;;  %279 = vst [vmem:[%s967_s26 + $0xa8] sm:$0xff] %v278_v21 }
  0x1b   : > { %281 = vst [vmem:[%s967_s26 + $0xb0] sm:$0xff] %v280_v22  ;;  %283 = vst [vmem:[%s967_s26 + $0xb8] sm:$0xff] %v282_v23  ;;  %v284_v24 = vld [vmem:[%s959_s25 + $0x180] sm:$0xff]  ;;  %v286_v25 = vld [vmem:[%s959_s25 + $0x190] sm:$0xff] }
  0x1c   : > { %v288_v26 = vld [vmem:[%s959_s25 + $0x1a0] sm:$0xff]  ;;  %285 = vst [vmem:[%s967_s26 + $0xc0] sm:$0xff] %v284_v24  ;;  %287 = vst [vmem:[%s967_s26 + $0xc8] sm:$0xff] %v286_v25  ;;  %v290_v27 = vld [vmem:[%s959_s25 + $0x1b0] sm:$0xff] }
  0x1d   : > { %289 = vst [vmem:[%s967_s26 + $0xd0] sm:$0xff] %v288_v26  ;;  %v292_v28 = vld [vmem:[%s959_s25 + $0x1c0] sm:$0xff]  ;;  %v294_v29 = vld [vmem:[%s959_s25 + $0x1d0] sm:$0xff]  ;;  %291 = vst [vmem:[%s967_s26 + $0xd8] sm:$0xff] %v290_v27 }
  0x1e   : > { %293 = vst [vmem:[%s967_s26 + $0xe0] sm:$0xff] %v292_v28  ;;  %295 = vst [vmem:[%s967_s26 + $0xe8] sm:$0xff] %v294_v29  ;;  %v296_v30 = vld [vmem:[%s959_s25 + $0x1e0] sm:$0xff]  ;;  %v298_v31 = vld [vmem:[%s959_s25 + $0x1f0] sm:$0xff] }
  0x1f   : > { %v300_v32 = vld [vmem:[%s959_s25 + $0x200] sm:$0xff]  ;;  %297 = vst [vmem:[%s967_s26 + $0xf0] sm:$0xff] %v296_v30  ;;  %299 = vst [vmem:[%s967_s26 + $0xf8] sm:$0xff] %v298_v31  ;;  %v302_v33 = vld [vmem:[%s959_s25 + $0x210] sm:$0xff] }
  0x20   : > { %301 = vst [vmem:[%s967_s26 + $0x100] sm:$0xff] %v300_v32  ;;  %v304_v34 = vld [vmem:[%s959_s25 + $0x220] sm:$0xff]  ;;  %v306_v35 = vld [vmem:[%s959_s25 + $0x230] sm:$0xff]  ;;  %303 = vst [vmem:[%s967_s26 + $0x108] sm:$0xff] %v302_v33 }
  0x21   : > { %305 = vst [vmem:[%s967_s26 + $0x110] sm:$0xff] %v304_v34  ;;  %307 = vst [vmem:[%s967_s26 + $0x118] sm:$0xff] %v306_v35 }
  0x22 PF: > { %p747_p5 = scmp.ge.s32.totalorder %s902_s14, 1  ;;  %p312_p6 = scmp.lt.s32.totalorder %s902_s14, 3 }
  0x24   : > { %p313_p7 = pnand %p747_p5, %p312_p6 }
  0x25   : > { %s319_s27 = sand.u32 (!%p313_p7), 1, %s894_s12   ;;  %s748_s9 = sshll.u32 (!%p313_p7), %s741_s15, 1 }
  0x26   : > { %316 = sbr.rel (%p313_p7) target bundleno = 311 (0x137), region = 66  ;;  %p344_p8 = scmp.lt.s32.totalorder (!%p313_p7), %s748_s9, 3 }
  0x27   : > { %s796_s28 = smul.u32 (!%p313_p7), 288, %s319_s27 }
  0x29   : > { %s1048_s6 = scalar_lea.vmem (!%p313_p7), [#allocation2], %s796_s28 }
  0x2b   : > { %v904_v36 = vmov 0   ;;  %v1041_v37 = vld [vmem:[%s1106_s0] sm:$0xff]  ;;  %v823_v40 = vld [vmem:[%s1048_s6 + $0x74] ss:$8 sps:$4 sm:$0xff]   ;;  %v825_v41 = vld [vmem:[%s1048_s6 + $0x70] ss:$8 sps:$4 sm:$0xff]  }
  0x2c   : > { %661 = vmatprep.mubr.bf16.mxu1 %v904_v36  ;;  %822 = vset.pattern.permute.xlu0 %v904_v36  ;;  %v388_v38 = vld [vmem:[%s1108_s2] sm:$0xff]  ;;  %v751_v39 = vcombine.high %v1041_v37, %v1041_v37  ;;  %v829_v44 = vld [vmem:[%s1048_s6 + $0x54] ss:$8 sps:$4 sm:$0xff]   ;;  %v831_v45 = vld [vmem:[%s1048_s6 + $0x50] ss:$8 sps:$4 sm:$0xff]   ;;  %vm584_vm0 = vcmask 261120   ;;  %v750_v13 = vcombine.low %v1041_v37, %v1041_v37 }
  0x2d   : > { %391 = vperm.xlu0 %822, %v388_v38   ;;  %588 = vmatprep.subr.bf16.mxu0 %v823_v40  ;;  %v826_v42 = vld [vmem:[%s1048_s6 + $0x64] ss:$8 sps:$4 sm:$0xff]   ;;  %v828_v43 = vld [vmem:[%s1048_s6 + $0x60] ss:$8 sps:$4 sm:$0xff]   ;;  %v835_v48 = vld [vmem:[%s1048_s6 + $0x34] ss:$8 sps:$4 sm:$0xff]  }
  0x2e   : > { %620 = vmatprep.mubr.bf16.mxu0 %v751_v39  ;;  %589 = vmatpush1.bf16.msra.mxu0 %v825_v41  ;;  %v832_v46 = vld [vmem:[%s1048_s6 + $0x44] ss:$8 sps:$4 sm:$0xff]   ;;  %v834_v47 = vld [vmem:[%s1048_s6 + $0x40] ss:$8 sps:$4 sm:$0xff]   ;;  %v837_v49 = vld [vmem:[%s1048_s6 + $0x30] ss:$8 sps:$4 sm:$0xff]  }
  0x2f   : > { %590 = vmatprep.subr.bf16.mxu0 %v826_v42  ;;  %v838_v50 = vld [vmem:[%s1048_s6 + $0x24] ss:$8 sps:$4 sm:$0xff]   ;;  %v840_v51 = vld [vmem:[%s1048_s6 + $0x20] ss:$8 sps:$4 sm:$0xff]   ;;  %v864_v52 = vld [vmem:[%s1048_s6 + $0x114] ss:$8 sps:$4 sm:$0xff]  }
  0x30   : > { %v867_v53 = vld [vmem:[%s1048_s6 + $0x110] ss:$8 sps:$4 sm:$0xff]   ;;  %v841_v54 = vld [vmem:[%s1048_s6 + $0x14] ss:$8 sps:$4 sm:$0xff]   ;;  %641 = vmatprep.subr.bf16.mxu1 %v864_v52  ;;  %v870_v55 = vld [vmem:[%s1048_s6 + $0x104] ss:$8 sps:$4 sm:$0xff]  }
  0x31   : > { %642 = vmatpush1.bf16.msra.mxu1 %v867_v53  ;;  %v873_v56 = vld [vmem:[%s1048_s6 + $0x100] ss:$8 sps:$4 sm:$0xff]   ;;  %v843_v57 = vld [vmem:[%s1048_s6 + $0x10] ss:$8 sps:$4 sm:$0xff]   ;;  %v844_v58 = vld [vmem:[%s1048_s6 + $0x4] ss:$8 sps:$4 sm:$0xff]  }
  0x32   : > { %591 = vmatpush1.bf16.msra.mxu0 %v828_v43  ;;  %643 = vmatprep.subr.bf16.mxu1 %v870_v55  ;;  %v876_v59 = vld [vmem:[%s1106_s0 + $0x8] ss:$0 sps:$4 sm:$0xff]   ;;  %v847_v61 = vld [vmem:[%s1048_s6 + $0xf4] ss:$8 sps:$4 sm:$0xff]   ;;  %v849_v62 = vld [vmem:[%s1048_s6 + $0xf0] ss:$8 sps:$4 sm:$0xff]  }
  0x33   : > { %592 = vmatprep.subr.bf16.mxu0 %v829_v44  ;;  %v846_v60 = vld [vmem:[%s1048_s6] ss:$8 sps:$4 sm:$0xff]   ;;  %v850_v63 = vld [vmem:[%s1048_s6 + $0xe4] ss:$8 sps:$4 sm:$0xff]   ;;  %v853_v1 = vld [vmem:[%s1048_s6 + $0xd4] ss:$8 sps:$4 sm:$0xff]  }
  0x34   : > { %v852_v0 = vld [vmem:[%s1048_s6 + $0xe0] ss:$8 sps:$4 sm:$0xff]   ;;  %v855_v2 = vld [vmem:[%s1048_s6 + $0xd0] ss:$8 sps:$4 sm:$0xff]   ;;  %v856_v3 = vld [vmem:[%s1048_s6 + $0xc4] ss:$8 sps:$4 sm:$0xff]  }
  0x35   : > { %644 = vmatpush1.bf16.msra.mxu1 %v873_v56  ;;  %v858_v4 = vld [vmem:[%s1048_s6 + $0xc0] ss:$8 sps:$4 sm:$0xff]   ;;  %v859_v5 = vld [vmem:[%s1048_s6 + $0xb4] ss:$8 sps:$4 sm:$0xff]   ;;  %v861_v6 = vld [vmem:[%s1048_s6 + $0xb0] ss:$8 sps:$4 sm:$0xff]  }
  0x36   : > { %593 = vmatpush1.bf16.msra.mxu0 %v831_v45  ;;  %v862_v7 = vld [vmem:[%s1048_s6 + $0xa4] ss:$8 sps:$4 sm:$0xff]   ;;  %v866_v8 = vld [vmem:[%s1048_s6 + $0xa0] ss:$8 sps:$4 sm:$0xff]   ;;  %v868_v9 = vld [vmem:[%s1048_s6 + $0x94] ss:$8 sps:$4 sm:$0xff]  }
  0x37   : > { %594 = vmatprep.subr.bf16.mxu0 %v832_v46  ;;  %v872_v10 = vld [vmem:[%s1048_s6 + $0x90] ss:$8 sps:$4 sm:$0xff]   ;;  %v874_v11 = vld [vmem:[%s1048_s6 + $0x84] ss:$8 sps:$4 sm:$0xff]   ;;  %v877_v12 = vld [vmem:[%s1048_s6 + $0x80] ss:$8 sps:$4 sm:$0xff]  }
  0x38   : > { %789 = vmatmul.mubr.msk.bf16.vlgmr.msra.gmra.mxu1 %vm584_vm0, %v876_v59  ;;  %s1114_s9 = smov (!%p344_p8, %s748_s9), 3 }
  0x39   : > { %s749_s10 = sshll.u32 %s1114_s9, 2 }
  0x3a   : > { %595 = vmatpush1.bf16.msra.mxu0 %v834_v47  ;;  %s347_s17 = scalar_lea.vmem %s1109_s3, %s749_s10 }
  0x3b   : > { %596 = vmatprep.subr.bf16.mxu0 %v835_v48 }
  0x3e   : > { %597 = vmatpush1.bf16.msra.mxu0 %v837_v49 }
  0x3f   : > { %598 = vmatprep.subr.bf16.mxu0 %v838_v50 }
  0x42   : > { %599 = vmatpush1.bf16.msra.mxu0 %v840_v51 }
  0x43   : > { %600 = vmatprep.subr.bf16.mxu0 %v841_v54 }
  0x46   : > { %601 = vmatpush1.bf16.msra.mxu0 %v843_v57 }
  0x47   : > { %602 = vmatprep.subr.bf16.mxu0 %v844_v58 }
  0x4a   : > { %603 = vmatpush1.bf16.msra.mxu0 %v846_v60 }
  0x4b   : > { %604 = vmatprep.subr.bf16.mxu0 %v847_v61 }
  0x4e   : > { %605 = vmatpush2.bf16.msra.mxu0 %v849_v62 }
  0x4f   : > { %606 = vmatprep.subr.bf16.mxu0 %v850_v63 }
  0x52   : > { %607 = vmatpush2.bf16.msra.mxu0 %v852_v0 }
  0x53   : > { %608 = vmatprep.subr.bf16.mxu0 %v853_v1 }
  0x56   : > { %609 = vmatpush2.bf16.msra.mxu0 %v855_v2 }
  0x57   : > { %610 = vmatprep.subr.bf16.mxu0 %v856_v3 }
  0x5a   : > { %611 = vmatpush2.bf16.msra.mxu0 %v858_v4 }
  0x5b   : > { %612 = vmatprep.subr.bf16.mxu0 %v859_v5 }
  0x5e   : > { %613 = vmatpush2.bf16.msra.mxu0 %v861_v6 }
  0x5f   : > { %614 = vmatprep.subr.bf16.mxu0 %v862_v7 }
  0x62   : > { %615 = vmatpush2.bf16.msra.mxu0 %v866_v8 }
  0x63   : > { %616 = vmatprep.subr.bf16.mxu0 %v868_v9 }
  0x66   : > { %617 = vmatpush2.bf16.msra.mxu0 %v872_v10 }
  0x67   : > { %618 = vmatprep.subr.bf16.mxu0 %v874_v11 }
  0x6a   : > { %619 = vmatpush2.bf16.msra.mxu0 %v877_v12 }
  0x6d   : > { %621 = vmatmul.mubr.bf16.vlgmr.msra.gmra.mxu0 %v750_v13 }
  0xa8   : > { %v392_v18 = vpop.permute.xlu0 %391 }
  0xf8   : > { %v663_v14 = vpop.f32.mrf.mxu1 }
  0xfa   : > { %v665_v15 = vpop.f32.mrf.mxu1 }
  0xfc   : > { %v667_v16 = vpop.f32.mrf.mxu1 }
  0xfe   : > { %v668_v17 = vpop.f32.mrf.mxu1 }
 0x12d   : > { %v622_v19 = vpop.f32.mrf.mxu0 }
 0x12e   : > { %v623_v20 = vadd.f32 %v622_v19, %v392_v18 }
 0x12f   : > { %v624_v21 = vpop.f32.mrf.mxu0 }
 0x130   : > { %v625_v22 = vadd.f32 %v624_v21, %v392_v18  ;;  %v664_v24 = vadd.f32 %v663_v14, %v623_v20 }
 0x131   : > { %v626_v23 = vpop.f32.mrf.mxu0 }
 0x132   : > { %v666_v25 = vadd.f32 %v665_v15, %v625_v22 }
 0x133   : > { %v627_v26 = vpop.f32.mrf.mxu0 }
 0x134   : > { %v794_v27 = vpack.c.bf16 %v666_v25, %v664_v24 }
 0x136   : > { %678 = vst [vmem:[%s347_s17] sm:$0xff] %v794_v27 }
 0x137 PF: > { %p10_p9 = scmp.ge.s32.totalorder %s942_s16, 4   ;;  %s1110_s12 = smov %s898_s13 }
 0x138   : > { %s1111_s13 = smov %s951_s19  ;;  %s1112_s14 = smov %s942_s16 }
 0x139   :  { %12 = sbr.rel (!%p10_p9) target bundleno = 2 (0x2), region = 105 }

// kernel: seg_detector_forward.29
= control target key start
LH: loop header
LB: loop body
LE: loop exit
PB: predicated region body
PF: predicated region fallthrough
CT: control target
= control target key end

     0   :  { %s927_s12 = smov 0   ;;  %s929_s13 = smov 0   ;;  %s1108_s0 = inlined_call_operand.vmem [shape: bf16[8,288], index: 0, kind: input, shape index: {}]   ;;  %s1109_s1 = inlined_call_operand.vmem [shape: bf16[288,512], index: 1, kind: input, shape index: {}]   ;;  %s1110_s2 = inlined_call_operand.vmem [shape: f32[8,1], index: 2, kind: input, shape index: {}]   ;;  %s1111_s3 = inlined_call_operand.vmem [shape: bf16[8,512], index: 3, kind: output, shape index: {}]  }
   0x1   :  { %s931_s14 = smov 0  }
   0x2 LB: > { %s743_s15 = sadd.s32 4294967295, %s904_s14   ;;  %s944_s16 = sadd.s32 1, %s904_s14   ;;  %s904_s14 = sphi %s931_s14, %s1114_s14   ;;  %s900_s13 = sphi %s929_s13, %s1113_s13   ;;  %s896_s12 = sphi %s927_s12, %s1112_s12  }
   0x3   : > { %s38_s17 = ssub.s32 %s904_s14, %s944_s16  ;;  %s41_s18 = sadd.s32 1, %s900_s13 }
   0x4   : > { %p39_p0 = scmp.eq.s32.totalorder %s38_s17, 0  ;;  %p48_p1 = scmp.ne.s32.totalorder %s900_s13, %s896_s12 }
   0x5   : > { %p49_p2 = scmp.eq.s32.totalorder %s904_s14, 0  ;;  %p746_p4 = scmp.ge.s32.totalorder %s904_s14, 2 }
   0x6   : > { %s953_s19 = scalar_select %p39_p0, %s900_s13, %s41_s18  }
   0x7   : > { %p50_p3 = por %p49_p2, %p48_p1  ;;  %127 = sbr.rel (%p746_p4) target bundleno = 34 (0x22), region = 24 }
   0xc   : > { %130 = sbr.rel (!%p50_p3) target bundleno = 34 (0x22), region = 28  ;;  %s132_s20 = sand.u32 (%p50_p3), 1, %s900_s13  }
   0xd   : > { %s795_s21 = sshll.u32 (%p50_p3), %s904_s14, 3  ;;  %s797_s22 = smul.u32 (%p50_p3), 288, %s132_s20 }
   0xe   : > { %s961_s25 = scalar_lea.vmem (%p50_p3), %s1109_s1, %s795_s21 }
   0xf   : > { %v236_v0 = vld [vmem:[%s961_s25] sm:$0xff] (%p50_p3)  ;;  %v238_v1 = vld [vmem:[%s961_s25 + $0x10] sm:$0xff] (%p50_p3)  ;;  %s969_s26 = scalar_lea.vmem (%p50_p3), [#allocation2], %s797_s22 }
  0x10   : > { %v240_v2 = vld [vmem:[%s961_s25 + $0x20] sm:$0xff] (%p50_p3)  ;;  %v242_v3 = vld [vmem:[%s961_s25 + $0x30] sm:$0xff] (%p50_p3)  ;;  %237 = vst [vmem:[%s969_s26] sm:$0xff] (%p50_p3), %v236_v0  ;;  %239 = vst [vmem:[%s969_s26 + $0x8] sm:$0xff] (%p50_p3), %v238_v1 }
  0x11   : > { %v244_v4 = vld [vmem:[%s961_s25 + $0x40] sm:$0xff]  ;;  %v246_v5 = vld [vmem:[%s961_s25 + $0x50] sm:$0xff]  ;;  %241 = vst [vmem:[%s969_s26 + $0x10] sm:$0xff] %v240_v2  ;;  %243 = vst [vmem:[%s969_s26 + $0x18] sm:$0xff] %v242_v3 }
  0x12   : > { %245 = vst [vmem:[%s969_s26 + $0x20] sm:$0xff] %v244_v4  ;;  %247 = vst [vmem:[%s969_s26 + $0x28] sm:$0xff] %v246_v5  ;;  %v248_v6 = vld [vmem:[%s961_s25 + $0x60] sm:$0xff]  ;;  %v250_v7 = vld [vmem:[%s961_s25 + $0x70] sm:$0xff] }
  0x13   : > { %v252_v8 = vld [vmem:[%s961_s25 + $0x80] sm:$0xff]  ;;  %249 = vst [vmem:[%s969_s26 + $0x30] sm:$0xff] %v248_v6  ;;  %251 = vst [vmem:[%s969_s26 + $0x38] sm:$0xff] %v250_v7  ;;  %v254_v9 = vld [vmem:[%s961_s25 + $0x90] sm:$0xff] }
  0x14   : > { %253 = vst [vmem:[%s969_s26 + $0x40] sm:$0xff] %v252_v8  ;;  %v256_v10 = vld [vmem:[%s961_s25 + $0xa0] sm:$0xff]  ;;  %v258_v11 = vld [vmem:[%s961_s25 + $0xb0] sm:$0xff]  ;;  %255 = vst [vmem:[%s969_s26 + $0x48] sm:$0xff] %v254_v9 }
  0x15   : > { %257 = vst [vmem:[%s969_s26 + $0x50] sm:$0xff] %v256_v10  ;;  %259 = vst [vmem:[%s969_s26 + $0x58] sm:$0xff] %v258_v11  ;;  %v260_v12 = vld [vmem:[%s961_s25 + $0xc0] sm:$0xff]  ;;  %v262_v13 = vld [vmem:[%s961_s25 + $0xd0] sm:$0xff] }
  0x16   : > { %v264_v14 = vld [vmem:[%s961_s25 + $0xe0] sm:$0xff]  ;;  %261 = vst [vmem:[%s969_s26 + $0x60] sm:$0xff] %v260_v12  ;;  %263 = vst [vmem:[%s969_s26 + $0x68] sm:$0xff] %v262_v13  ;;  %v266_v15 = vld [vmem:[%s961_s25 + $0xf0] sm:$0xff] }
  0x17   : > { %265 = vst [vmem:[%s969_s26 + $0x70] sm:$0xff] %v264_v14  ;;  %v268_v16 = vld [vmem:[%s961_s25 + $0x100] sm:$0xff]  ;;  %v270_v17 = vld [vmem:[%s961_s25 + $0x110] sm:$0xff]  ;;  %267 = vst [vmem:[%s969_s26 + $0x78] sm:$0xff] %v266_v15 }
  0x18   : > { %269 = vst [vmem:[%s969_s26 + $0x80] sm:$0xff] %v268_v16  ;;  %271 = vst [vmem:[%s969_s26 + $0x88] sm:$0xff] %v270_v17  ;;  %v272_v18 = vld [vmem:[%s961_s25 + $0x120] sm:$0xff]  ;;  %v274_v19 = vld [vmem:[%s961_s25 + $0x130] sm:$0xff] }
  0x19   : > { %v276_v20 = vld [vmem:[%s961_s25 + $0x140] sm:$0xff]  ;;  %273 = vst [vmem:[%s969_s26 + $0x90] sm:$0xff] %v272_v18  ;;  %275 = vst [vmem:[%s969_s26 + $0x98] sm:$0xff] %v274_v19  ;;  %v278_v21 = vld [vmem:[%s961_s25 + $0x150] sm:$0xff] }
  0x1a   : > { %277 = vst [vmem:[%s969_s26 + $0xa0] sm:$0xff] %v276_v20  ;;  %v280_v22 = vld [vmem:[%s961_s25 + $0x160] sm:$0xff]  ;;  %v282_v23 = vld [vmem:[%s961_s25 + $0x170] sm:$0xff]  ;;  %279 = vst [vmem:[%s969_s26 + $0xa8] sm:$0xff] %v278_v21 }
  0x1b   : > { %281 = vst [vmem:[%s969_s26 + $0xb0] sm:$0xff] %v280_v22  ;;  %283 = vst [vmem:[%s969_s26 + $0xb8] sm:$0xff] %v282_v23  ;;  %v284_v24 = vld [vmem:[%s961_s25 + $0x180] sm:$0xff]  ;;  %v286_v25 = vld [vmem:[%s961_s25 + $0x190] sm:$0xff] }
  0x1c   : > { %v288_v26 = vld [vmem:[%s961_s25 + $0x1a0] sm:$0xff]  ;;  %285 = vst [vmem:[%s969_s26 + $0xc0] sm:$0xff] %v284_v24  ;;  %287 = vst [vmem:[%s969_s26 + $0xc8] sm:$0xff] %v286_v25  ;;  %v290_v27 = vld [vmem:[%s961_s25 + $0x1b0] sm:$0xff] }
  0x1d   : > { %289 = vst [vmem:[%s969_s26 + $0xd0] sm:$0xff] %v288_v26  ;;  %v292_v28 = vld [vmem:[%s961_s25 + $0x1c0] sm:$0xff]  ;;  %v294_v29 = vld [vmem:[%s961_s25 + $0x1d0] sm:$0xff]  ;;  %291 = vst [vmem:[%s969_s26 + $0xd8] sm:$0xff] %v290_v27 }
  0x1e   : > { %293 = vst [vmem:[%s969_s26 + $0xe0] sm:$0xff] %v292_v28  ;;  %295 = vst [vmem:[%s969_s26 + $0xe8] sm:$0xff] %v294_v29  ;;  %v296_v30 = vld [vmem:[%s961_s25 + $0x1e0] sm:$0xff]  ;;  %v298_v31 = vld [vmem:[%s961_s25 + $0x1f0] sm:$0xff] }
  0x1f   : > { %v300_v32 = vld [vmem:[%s961_s25 + $0x200] sm:$0xff]  ;;  %297 = vst [vmem:[%s969_s26 + $0xf0] sm:$0xff] %v296_v30  ;;  %299 = vst [vmem:[%s969_s26 + $0xf8] sm:$0xff] %v298_v31  ;;  %v302_v33 = vld [vmem:[%s961_s25 + $0x210] sm:$0xff] }
  0x20   : > { %301 = vst [vmem:[%s969_s26 + $0x100] sm:$0xff] %v300_v32  ;;  %v304_v34 = vld [vmem:[%s961_s25 + $0x220] sm:$0xff]  ;;  %v306_v35 = vld [vmem:[%s961_s25 + $0x230] sm:$0xff]  ;;  %303 = vst [vmem:[%s969_s26 + $0x108] sm:$0xff] %v302_v33 }
  0x21   : > { %305 = vst [vmem:[%s969_s26 + $0x110] sm:$0xff] %v304_v34  ;;  %307 = vst [vmem:[%s969_s26 + $0x118] sm:$0xff] %v306_v35 }
  0x22 PF: > { %p749_p5 = scmp.ge.s32.totalorder %s904_s14, 1  ;;  %p312_p6 = scmp.lt.s32.totalorder %s904_s14, 3 }
  0x24   : > { %p313_p7 = pnand %p749_p5, %p312_p6 }
  0x25   : > { %s319_s27 = sand.u32 (!%p313_p7), 1, %s896_s12   ;;  %s750_s9 = sshll.u32 (!%p313_p7), %s743_s15, 1 }
  0x26   : > { %316 = sbr.rel (%p313_p7) target bundleno = 313 (0x139), region = 66  ;;  %p344_p8 = scmp.lt.s32.totalorder (!%p313_p7), %s750_s9, 3 }
  0x27   : > { %s798_s28 = smul.u32 (!%p313_p7), 288, %s319_s27 }
  0x29   : > { %s1050_s6 = scalar_lea.vmem (!%p313_p7), [#allocation2], %s798_s28 }
  0x2b   : > { %v906_v36 = vmov 0   ;;  %v1043_v37 = vld [vmem:[%s1108_s0] sm:$0xff]  ;;  %v825_v40 = vld [vmem:[%s1050_s6 + $0x74] ss:$8 sps:$4 sm:$0xff]   ;;  %v827_v41 = vld [vmem:[%s1050_s6 + $0x70] ss:$8 sps:$4 sm:$0xff]  }
  0x2c   : > { %661 = vmatprep.mubr.bf16.mxu1 %v906_v36  ;;  %824 = vset.pattern.permute.xlu0 %v906_v36  ;;  %v388_v38 = vld [vmem:[%s1110_s2] sm:$0xff]  ;;  %v753_v39 = vcombine.high %v1043_v37, %v1043_v37  ;;  %v831_v44 = vld [vmem:[%s1050_s6 + $0x54] ss:$8 sps:$4 sm:$0xff]   ;;  %v833_v45 = vld [vmem:[%s1050_s6 + $0x50] ss:$8 sps:$4 sm:$0xff]   ;;  %vm584_vm0 = vcmask 261120   ;;  %v752_v13 = vcombine.low %v1043_v37, %v1043_v37 }
  0x2d   : > { %391 = vperm.xlu0 %824, %v388_v38   ;;  %588 = vmatprep.subr.bf16.mxu0 %v825_v40  ;;  %v828_v42 = vld [vmem:[%s1050_s6 + $0x64] ss:$8 sps:$4 sm:$0xff]   ;;  %v830_v43 = vld [vmem:[%s1050_s6 + $0x60] ss:$8 sps:$4 sm:$0xff]   ;;  %v837_v48 = vld [vmem:[%s1050_s6 + $0x34] ss:$8 sps:$4 sm:$0xff]  }
  0x2e   : > { %620 = vmatprep.mubr.bf16.mxu0 %v753_v39  ;;  %589 = vmatpush1.bf16.msra.mxu0 %v827_v41  ;;  %v834_v46 = vld [vmem:[%s1050_s6 + $0x44] ss:$8 sps:$4 sm:$0xff]   ;;  %v836_v47 = vld [vmem:[%s1050_s6 + $0x40] ss:$8 sps:$4 sm:$0xff]   ;;  %v839_v49 = vld [vmem:[%s1050_s6 + $0x30] ss:$8 sps:$4 sm:$0xff]  }
  0x2f   : > { %590 = vmatprep.subr.bf16.mxu0 %v828_v42  ;;  %v840_v50 = vld [vmem:[%s1050_s6 + $0x24] ss:$8 sps:$4 sm:$0xff]   ;;  %v842_v51 = vld [vmem:[%s1050_s6 + $0x20] ss:$8 sps:$4 sm:$0xff]   ;;  %v866_v52 = vld [vmem:[%s1050_s6 + $0x114] ss:$8 sps:$4 sm:$0xff]  }
  0x30   : > { %v869_v53 = vld [vmem:[%s1050_s6 + $0x110] ss:$8 sps:$4 sm:$0xff]   ;;  %v843_v54 = vld [vmem:[%s1050_s6 + $0x14] ss:$8 sps:$4 sm:$0xff]   ;;  %641 = vmatprep.subr.bf16.mxu1 %v866_v52  ;;  %v872_v55 = vld [vmem:[%s1050_s6 + $0x104] ss:$8 sps:$4 sm:$0xff]  }
  0x31   : > { %642 = vmatpush1.bf16.msra.mxu1 %v869_v53  ;;  %v875_v56 = vld [vmem:[%s1050_s6 + $0x100] ss:$8 sps:$4 sm:$0xff]   ;;  %v845_v57 = vld [vmem:[%s1050_s6 + $0x10] ss:$8 sps:$4 sm:$0xff]   ;;  %v846_v58 = vld [vmem:[%s1050_s6 + $0x4] ss:$8 sps:$4 sm:$0xff]  }
  0x32   : > { %591 = vmatpush1.bf16.msra.mxu0 %v830_v43  ;;  %643 = vmatprep.subr.bf16.mxu1 %v872_v55  ;;  %v878_v59 = vld [vmem:[%s1108_s0 + $0x8] ss:$0 sps:$4 sm:$0xff]   ;;  %v849_v61 = vld [vmem:[%s1050_s6 + $0xf4] ss:$8 sps:$4 sm:$0xff]   ;;  %v851_v62 = vld [vmem:[%s1050_s6 + $0xf0] ss:$8 sps:$4 sm:$0xff]  }
  0x33   : > { %592 = vmatprep.subr.bf16.mxu0 %v831_v44  ;;  %v848_v60 = vld [vmem:[%s1050_s6] ss:$8 sps:$4 sm:$0xff]   ;;  %v852_v63 = vld [vmem:[%s1050_s6 + $0xe4] ss:$8 sps:$4 sm:$0xff]   ;;  %v855_v1 = vld [vmem:[%s1050_s6 + $0xd4] ss:$8 sps:$4 sm:$0xff]  }
  0x34   : > { %v854_v0 = vld [vmem:[%s1050_s6 + $0xe0] ss:$8 sps:$4 sm:$0xff]   ;;  %v857_v2 = vld [vmem:[%s1050_s6 + $0xd0] ss:$8 sps:$4 sm:$0xff]   ;;  %v858_v3 = vld [vmem:[%s1050_s6 + $0xc4] ss:$8 sps:$4 sm:$0xff]  }
  0x35   : > { %644 = vmatpush1.bf16.msra.mxu1 %v875_v56  ;;  %v860_v4 = vld [vmem:[%s1050_s6 + $0xc0] ss:$8 sps:$4 sm:$0xff]   ;;  %v861_v5 = vld [vmem:[%s1050_s6 + $0xb4] ss:$8 sps:$4 sm:$0xff]   ;;  %v863_v6 = vld [vmem:[%s1050_s6 + $0xb0] ss:$8 sps:$4 sm:$0xff]  }
  0x36   : > { %593 = vmatpush1.bf16.msra.mxu0 %v833_v45  ;;  %v864_v7 = vld [vmem:[%s1050_s6 + $0xa4] ss:$8 sps:$4 sm:$0xff]   ;;  %v868_v8 = vld [vmem:[%s1050_s6 + $0xa0] ss:$8 sps:$4 sm:$0xff]   ;;  %v870_v9 = vld [vmem:[%s1050_s6 + $0x94] ss:$8 sps:$4 sm:$0xff]  }
  0x37   : > { %594 = vmatprep.subr.bf16.mxu0 %v834_v46  ;;  %v874_v10 = vld [vmem:[%s1050_s6 + $0x90] ss:$8 sps:$4 sm:$0xff]   ;;  %v876_v11 = vld [vmem:[%s1050_s6 + $0x84] ss:$8 sps:$4 sm:$0xff]   ;;  %v879_v12 = vld [vmem:[%s1050_s6 + $0x80] ss:$8 sps:$4 sm:$0xff]  }
  0x38   : > { %791 = vmatmul.mubr.msk.bf16.vlgmr.msra.gmra.mxu1 %vm584_vm0, %v878_v59  ;;  %s1116_s9 = smov (!%p344_p8, %s750_s9), 3 }
  0x39   : > { %s751_s10 = sshll.u32 %s1116_s9, 2 }
  0x3a   : > { %595 = vmatpush1.bf16.msra.mxu0 %v836_v47  ;;  %s347_s17 = scalar_lea.vmem %s1111_s3, %s751_s10 }
  0x3b   : > { %596 = vmatprep.subr.bf16.mxu0 %v837_v48 }
  0x3e   : > { %597 = vmatpush1.bf16.msra.mxu0 %v839_v49 }
  0x3f   : > { %598 = vmatprep.subr.bf16.mxu0 %v840_v50 }
  0x42   : > { %599 = vmatpush1.bf16.msra.mxu0 %v842_v51 }
  0x43   : > { %600 = vmatprep.subr.bf16.mxu0 %v843_v54 }
  0x46   : > { %601 = vmatpush1.bf16.msra.mxu0 %v845_v57 }
  0x47   : > { %602 = vmatprep.subr.bf16.mxu0 %v846_v58 }
  0x4a   : > { %603 = vmatpush1.bf16.msra.mxu0 %v848_v60 }
  0x4b   : > { %604 = vmatprep.subr.bf16.mxu0 %v849_v61 }
  0x4e   : > { %605 = vmatpush2.bf16.msra.mxu0 %v851_v62 }
  0x4f   : > { %606 = vmatprep.subr.bf16.mxu0 %v852_v63 }
  0x52   : > { %607 = vmatpush2.bf16.msra.mxu0 %v854_v0 }
  0x53   : > { %608 = vmatprep.subr.bf16.mxu0 %v855_v1 }
  0x56   : > { %609 = vmatpush2.bf16.msra.mxu0 %v857_v2 }
  0x57   : > { %610 = vmatprep.subr.bf16.mxu0 %v858_v3 }
  0x5a   : > { %611 = vmatpush2.bf16.msra.mxu0 %v860_v4 }
  0x5b   : > { %612 = vmatprep.subr.bf16.mxu0 %v861_v5 }
  0x5e   : > { %613 = vmatpush2.bf16.msra.mxu0 %v863_v6 }
  0x5f   : > { %614 = vmatprep.subr.bf16.mxu0 %v864_v7 }
  0x62   : > { %615 = vmatpush2.bf16.msra.mxu0 %v868_v8 }
  0x63   : > { %616 = vmatprep.subr.bf16.mxu0 %v870_v9 }
  0x66   : > { %617 = vmatpush2.bf16.msra.mxu0 %v874_v10 }
  0x67   : > { %618 = vmatprep.subr.bf16.mxu0 %v876_v11 }
  0x6a   : > { %619 = vmatpush2.bf16.msra.mxu0 %v879_v12 }
  0x6d   : > { %621 = vmatmul.mubr.bf16.vlgmr.msra.gmra.mxu0 %v752_v13 }
  0xa8   : > { %v392_v18 = vpop.permute.xlu0 %391 }
  0xf8   : > { %v663_v14 = vpop.f32.mrf.mxu1 }
  0xfa   : > { %v665_v15 = vpop.f32.mrf.mxu1 }
  0xfc   : > { %v667_v16 = vpop.f32.mrf.mxu1 }
  0xfe   : > { %v668_v17 = vpop.f32.mrf.mxu1 }
 0x12d   : > { %v622_v19 = vpop.f32.mrf.mxu0 }
 0x12e   : > { %v623_v20 = vadd.f32 %v622_v19, %v392_v18 }
 0x12f   : > { %v624_v21 = vpop.f32.mrf.mxu0 }
 0x130   : > { %v664_v22 = vadd.f32 %v663_v14, %v623_v20  ;;  %v625_v23 = vadd.f32 %v624_v21, %v392_v18 }
 0x131   : > { %v626_v24 = vpop.f32.mrf.mxu0 }
 0x132   : > { %v666_v25 = vadd.f32 %v665_v15, %v625_v23  ;;  %v670_v27 = vmax.f32 %v664_v22, 0.0 }
 0x133   : > { %v627_v26 = vpop.f32.mrf.mxu0 }
 0x134   : > { %v671_v28 = vmax.f32 %v666_v25, 0.0 }
 0x136   : > { %v796_v29 = vpack.c.bf16 %v671_v28, %v670_v27 }
 0x138   : > { %680 = vst [vmem:[%s347_s17] sm:$0xff] %v796_v29 }
 0x139 PF: > { %p10_p9 = scmp.ge.s32.totalorder %s944_s16, 4   ;;  %s1112_s12 = smov %s900_s13 }
 0x13a   : > { %s1113_s13 = smov %s953_s19  ;;  %s1114_s14 = smov %s944_s16 }
 0x13b   :  { %12 = sbr.rel (!%p10_p9) target bundleno = 2 (0x2), region = 105 }

// kernel: seg_detector_forward.30
= control target key start
LH: loop header
LB: loop body
LE: loop exit
PB: predicated region body
PF: predicated region fallthrough
CT: control target
= control target key end

     0   :  { %s528_s12 = smov 0   ;;  %s530_s13 = smov 0   ;;  %s596_s0 = inlined_call_operand.vmem [shape: bf16[32,8], index: 0, kind: input, shape index: {}]   ;;  %s597_s1 = inlined_call_operand.vmem [shape: bf16[8,512], index: 1, kind: input, shape index: {}]   ;;  %s598_s2 = inlined_call_operand.vmem [shape: f32[32,1], index: 2, kind: input, shape index: {}]   ;;  %s599_s3 = inlined_call_operand.vmem [shape: bf16[32,512], index: 3, kind: output, shape index: {}]  }
   0x1   :  { %s532_s14 = smov 0  }
   0x2 LB: > { %s541_s15 = sadd.s32 4294967295, %s505_s14   ;;  %s543_s16 = sadd.s32 1, %s505_s14   ;;  %s505_s14 = sphi %s532_s14, %s603_s14   ;;  %s501_s13 = sphi %s530_s13, %s602_s13   ;;  %s497_s12 = sphi %s528_s12, %s601_s12  }
   0x3   : > { %s85_s17 = ssub.s32 %s505_s14, %s543_s16  ;;  %s88_s18 = sadd.s32 1, %s501_s13 }
   0x4   : > { %p86_p0 = scmp.eq.s32.totalorder %s85_s17, 0  ;;  %p98_p1 = scmp.ne.s32.totalorder %s501_s13, %s497_s12 }
   0x5   : > { %p99_p2 = scmp.eq.s32.totalorder %s541_s15, 1  ;;  %p425_p3 = scmp.ge.s32.totalorder %s505_s14, 1 }
   0x6   : > { %s551_s19 = scalar_select %p86_p0, %s501_s13, %s88_s18  }
   0x7   : > { %p553_p4 = por %p99_p2, %p98_p1  ;;  %p138_p5 = scmp.lt.s32.totalorder %s505_s14, 3 }
   0x9   : > { %p139_p6 = pnand %p425_p3, %p138_p5 }
   0xa   : > { %s427_s21 = sshll.u32 (!%p139_p6), %s541_s15, 1  ;;  %s158_s11 = sand.u32 (!%p139_p6), 1, %s497_s12  }
   0xb   : > { %142 = sbr.rel (%p139_p6) target bundleno = 241 (0xf1), region = 32  ;;  %p162_p7 = scmp.lt.s32.totalorder (!%p139_p6), %s427_s21, 3 }
   0xc   : > { %s426_s14 = sshll.u32 (!%p139_p6), %s158_s11, 5 }
   0xd   : > { %s160_s12 = scalar_lea.vmem (!%p139_p6), [#allocation2], %s426_s14 }
  0x10   : > { %v507_v0 = vmov 0   ;;  %v176_v1 = vld [vmem:[%s598_s2 + $0x10] sm:$0xff]  ;;  %s605_s21 = smov (!%p162_p7, %s427_s21), 3  ;;  %v174_v2 = vld [vmem:[%s598_s2] sm:$0xff]  ;;  %v177_v3 = vld [vmem:[%s598_s2 + $0x18] sm:$0xff]  ;;  %vm220_vm0 = vcmask 1043456  }
  0x11   : > { %259 = vmatprep.mubr.bf16.mxu0 %v507_v0  ;;  %269 = vmatprep.mubr.bf16.mxu1 %v507_v0  ;;  %s428_s28 = sshll.u32 %s605_s21, 2  ;;  %v175_v4 = vld [vmem:[%s598_s2 + $0x8] sm:$0xff]  ;;  %v481_v9 = vld [vmem:[%s596_s0] sm:$0xff]   ;;  %vm213_vm1 = vcmask 64512   ;;  %s449_s17 = sshll.u32 (%p553_p4), %s541_s15, 3 }
  0x12   : > { %478 = vset.pattern.permute.xlu1 %v507_v0  ;;  %477 = vset.pattern.permute.xlu0 %v507_v0  ;;  %s165_s6 = scalar_lea.vmem %s597_s1, %s428_s28  ;;  %v482_v10 = vld [vmem:[%s596_s0 + $0x8] sm:$0xff]   ;;  %s325_s22 = scalar_lea.vmem (%p553_p4), %s599_s3, %s449_s17 }
  0x13   : > { %190 = vperm.xlu1 %478, %v176_v1   ;;  %180 = vperm.xlu0 %477, %v174_v2   ;;  %v173_v5 = vld [vmem:[%s165_s6] sm:$0xff] }
  0x14   : > { %v432_v6 = vcombine.high %v173_v5, %v173_v5  ;;  %v431_v7 = vcombine.low %v173_v5, %v173_v5 }
  0x16   : > { %433 = vmatprep.subr.msk.bf16.mxu0 %vm220_vm0, %v432_v6  ;;  %450 = vmatprep.subr.msk.bf16.mxu1 %vm220_vm0, %v432_v6  ;;  %v222_v8 = vsel %vm220_vm0, %v431_v7, 0 }
  0x17   : > { %195 = vperm.xlu1 %478, %v177_v3   ;;  %185 = vperm.xlu0 %477, %v175_v4  }
  0x18   : > { %242 = vmatpush1.bf16.msra.mxu0 %v222_v8  ;;  %451 = vmatpush1.bf16.msra.mxu1 %v222_v8 }
  0x1b   : > { %434 = vmatmul.mubr.msk.bf16.vlgmr.msra.gmra.mxu0 %vm213_vm1, %v481_v9  ;;  %435 = vmatmul.mubr.msk.bf16.vlgmr.msra.gmra.mxu1 %vm213_vm1, %v482_v10 }
  0x8e   : > { %v191_v11 = vpop.permute.xlu1 %190  ;;  %v181_v12 = vpop.permute.xlu0 %180 }
  0x92   : > { %v196_v25 = vpop.permute.xlu1 %195  ;;  %v186_v26 = vpop.permute.xlu0 %185 }
  0xdb   : > { %v261_v13 = vpop.f32.mrf.mxu0  ;;  %v271_v14 = vpop.f32.mrf.mxu1 }
  0xdc   : > { %v262_v15 = vadd.f32 %v261_v13, %v181_v12  ;;  %v272_v16 = vadd.f32 %v271_v14, %v191_v11 }
  0xdd   : > { %v263_v17 = vpop.f32.mrf.mxu0  ;;  %v273_v18 = vpop.f32.mrf.mxu1 }
  0xde   : > { %v264_v19 = vadd.f32 %v263_v17, %v181_v12  ;;  %v274_v20 = vadd.f32 %v273_v18, %v191_v11  ;;  %v280_v23 = vmax.f32 %v262_v15, 0.0  ;;  %v284_v24 = vmax.f32 %v272_v16, 0.0 }
  0xdf   : > { %v265_v21 = vpop.f32.mrf.mxu0  ;;  %v275_v22 = vpop.f32.mrf.mxu1 }
  0xe0   : > { %v281_v27 = vmax.f32 %v264_v19, 0.0  ;;  %v285_v28 = vmax.f32 %v274_v20, 0.0  ;;  %v266_v29 = vadd.f32 %v265_v21, %v186_v26  ;;  %v276_v30 = vadd.f32 %v275_v22, %v196_v25 }
  0xe1   : > { %v267_v31 = vpop.f32.mrf.mxu0  ;;  %v277_v32 = vpop.f32.mrf.mxu1 }
  0xe2   : > { %v445_v33 = vpack.c.bf16 %v281_v27, %v280_v23  ;;  %v447_v34 = vpack.c.bf16 %v285_v28, %v284_v24  ;;  %v268_v35 = vadd.f32 %v267_v31, %v186_v26  ;;  %v278_v36 = vadd.f32 %v277_v32, %v196_v25 }
  0xe3   : > { %v282_v37 = vmax.f32 %v266_v29, 0.0  ;;  %v286_v38 = vmax.f32 %v276_v30, 0.0 }
  0xe4   : > { %312 = vst [vmem:[%s160_s12] sm:$0xff] %v445_v33  ;;  %314 = vst [vmem:[%s160_s12 + $0x10] sm:$0xff] %v447_v34  ;;  %v283_v39 = vmax.f32 %v268_v35, 0.0  ;;  %v287_v40 = vmax.f32 %v278_v36, 0.0  ;;  %322 = sbr.rel (!%p553_p4) target bundleno = 241 (0xf1), region = 36 }
  0xe6   : > { %v446_v41 = vpack.c.bf16 %v283_v39, %v282_v37  ;;  %v448_v42 = vpack.c.bf16 %v287_v40, %v286_v38 }
  0xe8   : > { %313 = vst [vmem:[%s160_s12 + $0x8] sm:$0xff] %v446_v41  ;;  %315 = vst [vmem:[%s160_s12 + $0x18] sm:$0xff] %v448_v42 }
  0xeb   : > { %v360_v43 = vld [vmem:[%s160_s12] sm:$0xff]  ;;  %v364_v45 = vld [vmem:[%s160_s12 + $0x10] sm:$0xff] }
  0xec   : > { %361 = vst [vmem:[%s325_s22] sm:$0xff] %v360_v43  ;;  %365 = vst [vmem:[%s325_s22 + $0x20] sm:$0xff] %v364_v45 }
  0xef   : > { %v362_v44 = vld [vmem:[%s160_s12 + $0x8] sm:$0xff]  ;;  %v366_v46 = vld [vmem:[%s160_s12 + $0x18] sm:$0xff] }
  0xf0   : > { %363 = vst [vmem:[%s325_s22 + $0x10] sm:$0xff] %v362_v44  ;;  %367 = vst [vmem:[%s325_s22 + $0x30] sm:$0xff] %v366_v46 }
  0xf1 PF: > { %p10_p8 = scmp.ge.s32.totalorder %s543_s16, 4   ;;  %s601_s12 = smov %s501_s13 }
  0xf2   : > { %s602_s13 = smov %s551_s19  ;;  %s603_s14 = smov %s543_s16 }
  0xf3   :  { %12 = sbr.rel (!%p10_p8) target bundleno = 2 (0x2), region = 100 }

// kernel: seg_detector_forward.31
= control target key start
LH: loop header
LB: loop body
LE: loop exit
PB: predicated region body
PF: predicated region fallthrough
CT: control target
= control target key end

     0   :  { %s637_s12 = smov 0   ;;  %s675_s0 = inlined_call_operand.vmem [shape: bf16[4,8], index: 0, kind: input, shape index: {}]   ;;  %s676_s1 = inlined_call_operand.vmem [shape: bf16[8,2048], index: 1, kind: input, shape index: {}]   ;;  %s677_s2 = inlined_call_operand.vmem [shape: f32[4,1], index: 2, kind: input, shape index: {}]   ;;  %s678_s3 = inlined_call_operand.vmem [shape: f32[4,2048], index: 3, kind: output, shape index: {}]  }
   0x1 LB: > { %s523_s13 = sadd.s32 4294967295, %s614_s12   ;;  %p527_p0 = scmp.ge.s32.totalorder %s614_s12, 1  ;;  %s614_s12 = sphi %s637_s12, %s13_s12  }
   0x2   : > { %p138_p1 = scmp.lt.s32.totalorder %s614_s12, 3 }
   0x4   : > { %p139_p2 = pnand %p527_p0, %p138_p1 }
   0x5   : > { %s528_s14 = sshll.u32 (!%p139_p2), %s523_s13, 3 }
   0x6   : > { %142 = sbr.rel (%p139_p2) target bundleno = 262 (0x106), region = 32  ;;  %p163_p3 = scmp.lt.s32.totalorder (!%p139_p2), %s528_s14, 15 }
   0xb   : > { %v616_v0 = vmov 0   ;;  %v180_v1 = vld [vmem:[%s677_s2] sm:$0xf]  ;;  %s680_s14 = smov (!%p163_p3, %s528_s14), 15  ;;  %vm210_vm0 = vcmask 1043456   ;;  %vm206_vm1 = vcmask 64512  }
   0xc   : > { %267 = vmatprep.mubr.bf16.mxu0 %v616_v0  ;;  %308 = vmatprep.mubr.bf16.mxu1 %v616_v0  ;;  %s529_s17 = sshll.u32 %s680_s14, 2  ;;  %v175_v16 = vld [vmem:[%s675_s0] sm:$0x3] }
   0xd   : > { %567 = vset.pattern.permute.xlu0 %v616_v0  ;;  %s166_s20 = scalar_lea.vmem %s676_s1, %s529_s17  ;;  %s172_s25 = scalar_lea.vmem %s678_s3, %s529_s17 }
   0xe   : > { %183 = vperm.xlu0 %567, %v180_v1   ;;  %v176_v2 = vld [vmem:[%s166_s20] sm:$0xff]  ;;  %v177_v3 = vld [vmem:[%s166_s20 + $0x8] sm:$0xff]  ;;  %v178_v4 = vld [vmem:[%s166_s20 + $0x10] sm:$0xff] }
   0xf   : > { %v533_v5 = vcombine.high %v176_v2, %v176_v2  ;;  %v535_v6 = vcombine.high %v177_v3, %v177_v3  ;;  %v532_v7 = vcombine.low %v176_v2, %v176_v2  ;;  %v534_v8 = vcombine.low %v177_v3, %v177_v3  ;;  %v179_v9 = vld [vmem:[%s166_s20 + $0x18] sm:$0xff] }
  0x10   : > { %v537_v10 = vcombine.high %v178_v4, %v178_v4  ;;  %v539_v11 = vcombine.high %v179_v9, %v179_v9  ;;  %v536_v12 = vcombine.low %v178_v4, %v178_v4  ;;  %v538_v13 = vcombine.low %v179_v9, %v179_v9 }
  0x11   : > { %540 = vmatprep.subr.msk.bf16.mxu0 %vm210_vm0, %v533_v5  ;;  %542 = vmatprep.subr.msk.bf16.mxu1 %vm210_vm0, %v535_v6  ;;  %v212_v14 = vsel %vm210_vm0, %v532_v7, 0  ;;  %v218_v15 = vsel %vm210_vm0, %v534_v8, 0 }
  0x12   : > { %250 = vmatpush1.bf16.msra.mxu0 %v212_v14  ;;  %291 = vmatpush1.bf16.msra.mxu1 %v218_v15  ;;  %v224_v17 = vsel %vm210_vm0, %v536_v12, 0  ;;  %v230_v18 = vsel %vm210_vm0, %v538_v13, 0 }
  0x13   : > { %544 = vmatprep.subr.msk.bf16.mxu0 %vm210_vm0, %v537_v10  ;;  %546 = vmatprep.subr.msk.bf16.mxu1 %vm210_vm0, %v539_v11 }
  0x15   : > { %541 = vmatmul.mubr.msk.bf16.vlgmr.msra.gmra.mxu0 %vm206_vm1, %v175_v16  ;;  %543 = vmatmul.mubr.msk.bf16.vlgmr.msra.gmra.mxu1 %vm206_vm1, %v175_v16 }
  0x16   : > { %332 = vmatpush1.bf16.msra.mxu0 %v224_v17  ;;  %373 = vmatpush1.bf16.msra.mxu1 %v230_v18 }
  0x17   : > { %349 = vmatprep.mubr.bf16.mxu0 %v616_v0  ;;  %390 = vmatprep.mubr.bf16.mxu1 %v616_v0 }
  0x1d   : > { %545 = vmatmul.mubr.msk.bf16.vlgmr.msra.gmra.mxu0 %vm206_vm1, %v175_v16  ;;  %547 = vmatmul.mubr.msk.bf16.vlgmr.msra.gmra.mxu1 %vm206_vm1, %v175_v16 }
  0x89   : > { %v184_v19 = vpop.permute.xlu0 %183 }
  0xd5   : > { %v269_v20 = vpop.f32.mrf.mxu0  ;;  %v310_v21 = vpop.f32.mrf.mxu1 }
  0xd6   : > { %v270_v22 = vadd.f32 %v269_v20, %v184_v19  ;;  %v311_v23 = vadd.f32 %v310_v21, %v184_v19 }
  0xd7   : > { %v271_v24 = vpop.f32.mrf.mxu0  ;;  %v312_v25 = vpop.f32.mrf.mxu1 }
  0xd8   : > { %v548_v26 = vmul.f32 -1.442695, %v270_v22  ;;  %v550_v27 = vmul.f32 -1.442695, %v311_v23  ;;  %v272_v28 = vadd.f32 %v271_v24, %v184_v19  ;;  %v313_v29 = vadd.f32 %v312_v25, %v184_v19 }
  0xd9   : > { %v273_v30 = vpop.f32.mrf.mxu0  ;;  %v314_v31 = vpop.f32.mrf.mxu1 }
  0xda   : > { %576 = vpow2.f32 %v548_v26  ;;  %v549_v32 = vmul.f32 -1.442695, %v272_v28  ;;  %v551_v33 = vmul.f32 -1.442695, %v313_v29 }
  0xdb   : > { %578 = vpow2.f32 %v550_v27  ;;  %v274_v34 = vpop.f32.mrf.mxu0  ;;  %v315_v35 = vpop.f32.mrf.mxu1 }
  0xdc   : > { %580 = vpow2.f32 %v549_v32 }
  0xdd   : > { %582 = vpow2.f32 %v551_v33  ;;  %v351_v36 = vpop.f32.mrf.mxu0  ;;  %v392_v37 = vpop.f32.mrf.mxu1 }
  0xde   : > { %v352_v38 = vadd.f32 %v351_v36, %v184_v19  ;;  %v393_v39 = vadd.f32 %v392_v37, %v184_v19 }
  0xdf   : > { %v353_v40 = vpop.f32.mrf.mxu0  ;;  %v394_v41 = vpop.f32.mrf.mxu1 }
  0xe0   : > { %v552_v42 = vmul.f32 -1.442695, %v352_v38  ;;  %v554_v43 = vmul.f32 -1.442695, %v393_v39  ;;  %v354_v44 = vadd.f32 %v353_v40, %v184_v19  ;;  %v395_v45 = vadd.f32 %v394_v41, %v184_v19 }
  0xe1   : > { %v355_v46 = vpop.f32.mrf.mxu0  ;;  %v396_v47 = vpop.f32.mrf.mxu1 }
  0xe2   : > { %584 = vpow2.f32 %v552_v42  ;;  %v553_v48 = vmul.f32 -1.442695, %v354_v44  ;;  %v555_v49 = vmul.f32 -1.442695, %v395_v45 }
  0xe3   : > { %586 = vpow2.f32 %v554_v43  ;;  %v356_v50 = vpop.f32.mrf.mxu0  ;;  %v397_v51 = vpop.f32.mrf.mxu1 }
  0xe4   : > { %588 = vpow2.f32 %v553_v48 }
  0xe5   : > { %590 = vpow2.f32 %v555_v49 }
  0xe7   : > { %v577_v52 = vpop.eup %576 }
  0xe8   : > { %v579_v53 = vpop.eup %578  ;;  %v423_v54 = vadd.f32 1.0, %v577_v52 }
  0xe9   : > { %v581_v55 = vpop.eup %580  ;;  %v425_v56 = vadd.f32 1.0, %v579_v53 }
  0xea   : > { %v583_v57 = vpop.eup %582  ;;  %592 = vrcp.f32 %v423_v54  ;;  %v424_v58 = vadd.f32 1.0, %v581_v55 }
  0xeb   : > { %594 = vrcp.f32 %v425_v56  ;;  %v426_v59 = vadd.f32 1.0, %v583_v57 }
  0xec   : > { %596 = vrcp.f32 %v424_v58 }
  0xed   : > { %598 = vrcp.f32 %v426_v59 }
  0xef   : > { %v585_v60 = vpop.eup %584 }
  0xf0   : > { %v587_v61 = vpop.eup %586  ;;  %v427_v62 = vadd.f32 1.0, %v585_v60 }
  0xf1   : > { %v589_v63 = vpop.eup %588  ;;  %v429_v0 = vadd.f32 1.0, %v587_v61 }
  0xf2   : > { %v591_v1 = vpop.eup %590  ;;  %600 = vrcp.f32 %v427_v62  ;;  %v428_v2 = vadd.f32 1.0, %v589_v63 }
  0xf3   : > { %602 = vrcp.f32 %v429_v0  ;;  %v430_v3 = vadd.f32 1.0, %v591_v1 }
  0xf4   : > { %604 = vrcp.f32 %v428_v2 }
  0xf5   : > { %606 = vrcp.f32 %v430_v3 }
  0xf7   : > { %v593_v4 = vpop.eup %592 }
  0xf8   : > { %v595_v5 = vpop.eup %594 }
  0xf9   : > { %v597_v6 = vpop.eup %596 }
  0xfa   : > { %v599_v7 = vpop.eup %598  ;;  %v455_v8 = vcombine.low %v593_v4, %v597_v6 }
  0xfb   : > { %v456_v9 = vcombine.low %v595_v5, %v599_v7 }
  0xfc   : > { %463 = vst [vmem:[%s172_s25] sm:$0xff] %v455_v8 }
  0xfd   : > { %464 = vst [vmem:[%s172_s25 + $0x8] sm:$0xff] %v456_v9 }
  0xff   : > { %v601_v10 = vpop.eup %600 }
 0x100   : > { %v603_v11 = vpop.eup %602 }
 0x101   : > { %v605_v12 = vpop.eup %604 }
 0x102   : > { %v607_v13 = vpop.eup %606  ;;  %v457_v14 = vcombine.low %v601_v10, %v605_v12 }
 0x103   : > { %v458_v15 = vcombine.low %v603_v11, %v607_v13 }
 0x104   : > { %465 = vst [vmem:[%s172_s25 + $0x10] sm:$0xff] %v457_v14 }
 0x105   : > { %466 = vst [vmem:[%s172_s25 + $0x18] sm:$0xff] %v458_v15 }
 0x106 PF: > { %s13_s12 = sadd.s32 1, %s614_s12  }
 0x107   : > { %p10_p4 = scmp.ge.s32.totalorder %s13_s12, 4  }
 0x109   :  { %12 = sbr.rel (!%p10_p4) target bundleno = 1 (0x1), region = 62 }

</bundles_post_ra>
